<compile_context>
chip_gen: v5e
topology: v5e:2x2
jax: 0.10.0
libtpu: 0.0.40
codegen_flags: <defaults>
</compile_context>

<pallas_src>
import functools

import jax
import jax.numpy as jnp
from jax import lax
from jax.experimental import pallas as pl
from jax.experimental.pallas import tpu as pltpu

NEG_SLOPE = 0.01                      # nn.LeakyReLU() default
_C_LIN = 0.5 * (1.0 + NEG_SLOPE)      # lrelu(v) = _C_LIN * v + _C_ABS * |v|
_C_ABS = 0.5 * (1.0 - NEG_SLOPE)


def _lrelu(v):
    return jnp.where(v > 0, v, NEG_SLOPE * v)


def _round_up(x, m):
    return (x + m - 1) // m * m


# --------------------------------------- kernel ---------------------------------------
def tgcn2_kernel(xfull_ref, xtile_ref, h_ref, a_ref, at_ref, deg_ref,
                 wl_ref, wdst_ref, bdst_ref, wcbd_ref, blall_ref, whzr_ref, wlhh_ref,
                 out_ref, hj_ref,
                 *, ROW_TILE, SRC_CHUNK, N_PAD, FP, MXU_DTYPE):
    F3 = 3 * FP
    t = pl.program_id(1)

    # (1) per-batch source transform hj = X @ W_l, computed once per batch (t == 0),
    #     kept resident in a VMEM scratch in the MXU dtype (halves its footprint).
    @pl.when(t == 0)
    def _():
        xb = xfull_ref[0].astype(MXU_DTYPE)                           # [N_pad, Fin]
        hj_ref[...] = jnp.dot(xb, wl_ref[...],
                              preferred_element_type=jnp.float32).astype(MXU_DTYPE)

    # (2) destination-row projections for this tile: one fused matmul.  Every logical
    #     block of the fused weight is 3*FP wide and FP is a multiple of 128, so all
    #     slices below are static and 128-lane aligned (no XLU lane-shift relayouts).
    x_t = xtile_ref[0].astype(MXU_DTYPE)                              # [T, Fin]
    proj = jnp.dot(x_t, wdst_ref[...],
                   preferred_element_type=jnp.float32) + bdst_ref[...]
    beta_m = proj[:, 0 * F3:1 * F3]       # film(x)      -> beta  (messages)
    gamma_m = proj[:, 1 * F3:2 * F3]      # film(x)      -> gamma (messages)
    hskip = proj[:, 2 * F3:3 * F3]        # x @ W_skip
    beta_s = proj[:, 3 * F3:4 * F3]       # film_skip(x) -> beta
    gamma_s = proj[:, 4 * F3:5 * F3]      # film_skip(x) -> gamma

    skip = _lrelu(gamma_s * hskip + beta_s)                           # [T, 3FP]

    # (3a) linear half of lrelu(v) = c1*v + c2*|v| collapses onto the MXU:
    #      gamma * (A_rows @ hj) + beta * deg  (deg precomputed in the wrapper;
    #      deg = 0 keeps isolated / padded nodes correct).
    agg_lin = jnp.dot(a_ref[...], hj_ref[...],
                      preferred_element_type=jnp.float32)             # [T, 3FP]
    msg_lin = gamma_m * agg_lin + beta_m * deg_ref[...]

    # (3b) |v| half: chunked accumulation over source nodes.  The fori_loop bounds the
    #      live range to one [SRC_CHUNK, T, 3FP] slab per iteration; A^T supplies the
    #      per-chunk weights through an aligned sublane slice; the reduction is over
    #      the leading axis (pure VALU adds).  On v6e/v7x this pass could run in bf16
    #      (do NOT on v5e: no bf16 VPU), kept f32 here for generation safety.
    def chunk_body(c, acc):
        j0 = pl.multiple_of(c * SRC_CHUNK, SRC_CHUNK)
        hj_c = hj_ref[pl.ds(j0, SRC_CHUNK), :].astype(jnp.float32)    # [C, 3FP]
        a_c = at_ref[pl.ds(j0, SRC_CHUNK), :].astype(jnp.float32)     # [C, T]
        v = jnp.abs(gamma_m[None, :, :] * hj_c[:, None, :] + beta_m[None, :, :])
        return acc + jnp.sum(a_c[:, :, None] * v, axis=0)             # [T, 3FP]

    msg_abs = lax.fori_loop(0, N_PAD // SRC_CHUNK, chunk_body,
                            jnp.zeros((ROW_TILE, F3), jnp.float32))

    conv = skip + (_C_LIN * msg_lin + _C_ABS * msg_abs)     # [conv_z | conv_r | conv_h]

    # (4) fused gate Linears: block-diagonal conv half ([T,3FP]@[3FP,3FP]) + a single
    #     H @ [wlh_z | wlh_r] matmul for the Z/R hidden halves.
    h_t = h_ref[0]                                                    # [T, FP]
    conv_lin = jnp.dot(conv.astype(MXU_DTYPE), wcbd_ref[...],
                       preferred_element_type=jnp.float32) + blall_ref[...]
    h_lin = jnp.dot(h_t.astype(MXU_DTYPE), whzr_ref[...],
                    preferred_element_type=jnp.float32)               # [T, 2FP]

    Z = jnp.tanh(conv_lin[:, 0 * FP:1 * FP] + h_lin[:, 0 * FP:1 * FP])
    R = jnp.tanh(conv_lin[:, 1 * FP:2 * FP] + h_lin[:, 1 * FP:2 * FP])
    Ht = _lrelu(conv_lin[:, 2 * FP:3 * FP]
                + jnp.dot((h_t * R).astype(MXU_DTYPE), wlhh_ref[...],
                          preferred_element_type=jnp.float32))

    # FP is a multiple of 128 -> lane-dense (unmasked) store.
    out_ref[0] = Z * h_t + (1.0 - Z) * Ht


# ------------------------------------ wrapper glue ------------------------------------
def _dense_mean_adjacency(edge_index, num_nodes):
    src, dst = edge_index[0], edge_index[1]
    counts = jnp.zeros((num_nodes, num_nodes), jnp.float32).at[dst, src].add(1.0)
    deg = counts.sum(axis=1, keepdims=True)
    return counts / jnp.maximum(deg, 1.0)


def _pad_last(a, new):
    pad = [(0, 0)] * a.ndim
    pad[-1] = (0, new - a.shape[-1])
    return jnp.pad(a, pad)


def _fuse_params(params, fp):
    """Wrapper-side weight plumbing: gate concat + 128-lane padding + block-diag."""
    f = params["wl"].shape[-1]

    def cat_gates(w):          # [3, In, F] -> [In, 3*Fp]
        w = _pad_last(w, fp)
        return jnp.concatenate([w[0], w[1], w[2]], axis=-1)

    def cat_bias(b):           # [3, 1, F] -> [1, 3*Fp]
        b = _pad_last(b, fp)
        return jnp.concatenate([b[0], b[1], b[2]], axis=-1)

    w_l = cat_gates(params["wl"])                                    # [Fin, 3Fp]
    # Column order must match the kernel's static slices: [wfb | wfg | ws | wsb | wsg].
    w_dst = jnp.concatenate([cat_gates(params["wfb"]),
                             cat_gates(params["wfg"]),
                             cat_gates(params["ws"]),
                             cat_gates(params["wsb"]),
                             cat_gates(params["wsg"])], axis=-1)     # [Fin, 15Fp]
    zeros3 = jnp.zeros((1, 3 * fp), jnp.float32)
    b_dst = jnp.concatenate([cat_bias(params["bfb"]),
                             cat_bias(params["bfg"]),
                             zeros3,
                             cat_bias(params["bsb"]),
                             cat_bias(params["bsg"])], axis=-1)      # [1, 15Fp]

    wc_bd = jnp.zeros((3 * fp, 3 * fp), jnp.float32)                 # block-diag gate conv
    for g in range(3):
        wc_bd = wc_bd.at[g * fp:g * fp + f, g * fp:g * fp + f].set(params["wlc"][g])
    bl_all = cat_bias(params["bl"])                                  # [1, 3Fp]
    wh_zr = jnp.zeros((fp, 2 * fp), jnp.float32)
    wh_zr = wh_zr.at[:f, 0:f].set(params["wlh"][0]).at[:f, fp:fp + f].set(params["wlh"][1])
    wlh_h = jnp.zeros((fp, fp), jnp.float32).at[:f, :f].set(params["wlh"][2])
    return w_l, w_dst, b_dst, wc_bd, bl_all, wh_zr, wlh_h


def _choose_tiles(n, row_tile, src_chunk):
    """ROW_TILE is the lane dim of the A^T block -> must be a multiple of 128 or cover
    the whole (8-padded) node axis; SRC_CHUNK must divide N_pad."""
    if n <= max(row_tile, 128):
        n_pad = _round_up(n, 8)
        row_tile = n_pad
    else:
        row_tile = max(128, _round_up(row_tile, 128))
        n_pad = _round_up(n, row_tile)
    src_chunk = max(8, min(src_chunk, n_pad))
    while n_pad % src_chunk:
        src_chunk //= 2
    src_chunk = max(src_chunk, 8) if n_pad % 8 == 0 else src_chunk
    return n_pad, row_tile, src_chunk


def _default_vmem_limit():
    # Per-generation sizing: ~3/4 of physical VMEM, capped at 100 MiB
    # (v5e/v6e 128 MiB -> 96 MiB, v7x 64 MiB -> 48 MiB).
    try:
        cap = int(pltpu.get_tpu_info().vmem_capacity_bytes)
    except Exception:
        cap = 128 * 1024 * 1024
    return min(cap * 3 // 4, 100 * 1024 * 1024)


def tgcn2_forward(X, edge_index, edge_weight, params, H=None, *,
                  row_tile=128, src_chunk=16,
                  matmul_dtype=jnp.bfloat16, vmem_limit_bytes=None):
    """Pallas forward of TGCN2. edge_weight is unused (as in the reference module)."""
    del edge_weight
    X = X.astype(jnp.float32)
    B, N, Fin = X.shape
    F = params["wl"].shape[-1]
    Fp = _round_up(F, 128)                       # 128-lane padding of the feature axis
    if H is None:
        H = jnp.zeros((B, N, F), jnp.float32)
    H = H.astype(jnp.float32)

    n_pad, tile, chunk = _choose_tiles(N, row_tile, src_chunk)
    n_tiles = n_pad // tile

    # Dense mean-aggregation adjacency, its transpose (source-major, for aligned
    # sublane chunking of the |v| pass), and the precomputed deg = rowsum(A).
    A = _dense_mean_adjacency(edge_index, N)
    deg = jnp.sum(A, axis=-1, keepdims=True)
    A_f = jnp.zeros((n_pad, n_pad), jnp.float32).at[:N, :N].set(A)
    A_p = A_f.astype(matmul_dtype)
    At_p = A_f.T.astype(matmul_dtype)
    deg_p = jnp.zeros((n_pad, 1), jnp.float32).at[:N].set(deg)

    X_p = jnp.zeros((B, n_pad, Fin), jnp.float32).at[:, :N, :].set(X)
    H_p = jnp.zeros((B, n_pad, Fp), jnp.float32).at[:, :N, :F].set(H)

    w_l, w_dst, b_dst, wc_bd, bl_all, wh_zr, wlh_h = _fuse_params(params, Fp)
    w_l, w_dst, wc_bd, wh_zr, wlh_h = (w.astype(matmul_dtype)
                                       for w in (w_l, w_dst, wc_bd, wh_zr, wlh_h))

    if vmem_limit_bytes is None:
        vmem_limit_bytes = _default_vmem_limit()

    kernel = functools.partial(tgcn2_kernel, ROW_TILE=tile, SRC_CHUNK=chunk,
                               N_PAD=n_pad, FP=Fp, MXU_DTYPE=matmul_dtype)

    grid_spec = pltpu.PrefetchScalarGridSpec(
        num_scalar_prefetch=0,
        grid=(B, n_tiles),
        in_specs=[
            pl.BlockSpec((1, n_pad, Fin), lambda b, t: (b, 0, 0)),    # X (full, per batch)
            pl.BlockSpec((1, tile, Fin), lambda b, t: (b, t, 0)),     # X (dst row tile)
            pl.BlockSpec((1, tile, Fp), lambda b, t: (b, t, 0)),      # H row tile
            pl.BlockSpec((tile, n_pad), lambda b, t: (t, 0)),         # A rows (dst)
            pl.BlockSpec((n_pad, tile), lambda b, t: (0, t)),         # A^T cols (dst)
            pl.BlockSpec((tile, 1), lambda b, t: (t, 0)),             # deg row tile
            pl.BlockSpec((Fin, 3 * Fp), lambda b, t: (0, 0)),         # W_l
            pl.BlockSpec((Fin, 15 * Fp), lambda b, t: (0, 0)),        # W_dst (fused)
            pl.BlockSpec((1, 15 * Fp), lambda b, t: (0, 0)),          # b_dst (fused)
            pl.BlockSpec((3 * Fp, 3 * Fp), lambda b, t: (0, 0)),      # Wc (block-diag)
            pl.BlockSpec((1, 3 * Fp), lambda b, t: (0, 0)),           # bl
            pl.BlockSpec((Fp, 2 * Fp), lambda b, t: (0, 0)),          # Wh_zr
            pl.BlockSpec((Fp, Fp), lambda b, t: (0, 0)),              # wlh_h
        ],
        out_specs=pl.BlockSpec((1, tile, Fp), lambda b, t: (b, t, 0)),
        scratch_shapes=[pltpu.VMEM((n_pad, 3 * Fp), matmul_dtype)],   # resident hj slab
    )

    out_p = pl.pallas_call(
        kernel,
        out_shape=jax.ShapeDtypeStruct((B, n_pad, Fp), jnp.float32),
        grid_spec=grid_spec,
        compiler_params=pltpu.CompilerParams(
            dimension_semantics=("parallel", "arbitrary"),   # batch across TCs on v7x
            vmem_limit_bytes=int(vmem_limit_bytes)),
    )(X_p, X_p, H_p, A_p, At_p, deg_p,
      w_l, w_dst, b_dst, wc_bd, bl_all, wh_zr, wlh_h)
    return out_p[:, :N, :F]


# ----------------------- pure-JAX reference (for the sanity check) ---------------------
def tgcn2_reference(X, edge_index, edge_weight, params, H=None):
    del edge_weight
    X = X.astype(jnp.float32)
    B, N, Fin = X.shape
    Fout = params["wl"].shape[-1]
    if H is None:
        H = jnp.zeros((B, N, Fout), jnp.float32)
    A = _dense_mean_adjacency(edge_index, N)

    def one(Xb, Hb):
        def film_conv(g):
            skip = _lrelu((Xb @ params["wsg"][g] + params["bsg"][g]) * (Xb @ params["ws"][g])
                          + (Xb @ params["wsb"][g] + params["bsb"][g]))
            hj = Xb @ params["wl"][g]
            beta = Xb @ params["wfb"][g] + params["bfb"][g]
            gamma = Xb @ params["wfg"][g] + params["bfg"][g]
            per_edge = _lrelu(gamma[:, None, :] * hj[None, :, :] + beta[:, None, :])
            msg = jnp.einsum("ij,ijf->if", A, per_edge)
            return skip + msg

        def gate_linear(g, c, h):
            return c @ params["wlc"][g] + h @ params["wlh"][g] + params["bl"][g]

        Z = jnp.tanh(gate_linear(0, film_conv(0), Hb))
        R = jnp.tanh(gate_linear(1, film_conv(1), Hb))
        Ht = _lrelu(gate_linear(2, film_conv(2), Hb * R))
        return Z * Hb + (1.0 - Z) * Ht

    return jax.vmap(one)(X, H)


# --------------------------------------- main ------------------------------------------
if __name__ == "__main__":
    B, N, Fin, Fout = 2, 16, 4, 32

    key = jax.random.PRNGKey(0)
    ks = jax.random.split(key, 20)

    def init(k, shape, scale=0.2):
        return scale * jax.random.normal(k, shape, dtype=jnp.float32)

    # Deterministic synthetic parameters (shapes implied by BatchedFiLMConv + Linear gates).
    params = {
        "wl":  init(ks[0],  (3, Fin, Fout)),   # FiLM message transform W      (gates z,r,h)
        "ws":  init(ks[1],  (3, Fin, Fout)),   # FiLM skip transform W_skip
        "wfb": init(ks[2],  (3, Fin, Fout)),   # film(x) -> beta  (messages)
        "wfg": init(ks[3],  (3, Fin, Fout)),   # film(x) -> gamma (messages)
        "bfb": init(ks[4],  (3, 1, Fout)),
        "bfg": init(ks[5],  (3, 1, Fout)),
        "wsb": init(ks[6],  (3, Fin, Fout)),   # film_skip(x) -> beta
        "wsg": init(ks[7],  (3, Fin, Fout)),   # film_skip(x) -> gamma
        "bsb": init(ks[8],  (3, 1, Fout)),
        "bsg": init(ks[9],  (3, 1, Fout)),
        "wlc": init(ks[10], (3, Fout, Fout)),  # gate Linear, conv half of concat
        "wlh": init(ks[11], (3, Fout, Fout)),  # gate Linear, hidden half of concat
        "bl":  init(ks[12], (3, 1, Fout)),
    }

    X = jax.random.normal(ks[13], (B, N, Fin), dtype=jnp.float32)
    H0 = jax.random.normal(ks[14], (B, N, Fout), dtype=jnp.float32)

    # Small deterministic graph: bidirectional ring + chords of stride 3.
    idx = jnp.arange(N)
    src = jnp.concatenate([idx, idx, idx])
    dst = jnp.concatenate([(idx + 1) % N, (idx - 1) % N, (idx + 3) % N])
    edge_index = jnp.stack([src, dst], axis=0)                    # [2, 48]
    edge_weight = jnp.ones((edge_index.shape[1],), jnp.float32)   # unused, API parity

    out = jax.block_until_ready(tgcn2_forward(X, edge_index, edge_weight, params, H0))
    ref = jax.block_until_ready(tgcn2_reference(X, edge_index, edge_weight, params, H0))

    assert out.shape == (B, N, Fout)
    err = jnp.abs(out - ref)
    max_err, mean_err = float(err.max()), float(err.mean())
    # bf16 MXU inputs (per the perf review) -> relaxed tolerance vs. the f32 reference;
    # a structural bug would produce O(0.5) errors, clearly outside these bounds.
    assert max_err < 1e-1 and mean_err < 2.5e-2, (max_err, mean_err)

    print("KERNEL_OK")
</pallas_src>

<mosaic_0001>
module attributes {stable_mosaic.version = 11 : i64} {
  func.func @tgcn2_kernel(%arg0: i32, %arg1: i32, %arg2: memref<1x16x4xf32, #tpu.memory_space<vmem>>, %arg3: memref<1x16x4xf32, #tpu.memory_space<vmem>>, %arg4: memref<1x16x128xf32, #tpu.memory_space<vmem>>, %arg5: memref<16x16xbf16, #tpu.memory_space<vmem>>, %arg6: memref<16x16xbf16, #tpu.memory_space<vmem>>, %arg7: memref<16x1xf32, #tpu.memory_space<vmem>>, %arg8: memref<4x384xbf16, #tpu.memory_space<vmem>>, %arg9: memref<4x1920xbf16, #tpu.memory_space<vmem>>, %arg10: memref<1x1920xf32, #tpu.memory_space<vmem>>, %arg11: memref<384x384xbf16, #tpu.memory_space<vmem>>, %arg12: memref<1x384xf32, #tpu.memory_space<vmem>>, %arg13: memref<128x256xbf16, #tpu.memory_space<vmem>>, %arg14: memref<128x128xbf16, #tpu.memory_space<vmem>>, %arg15: memref<1x16x128xf32, #tpu.memory_space<vmem>>, %arg16: memref<16x384xbf16, #tpu.memory_space<vmem>>) attributes {dimension_semantics = [#tpu.dimension_semantics<parallel>, #tpu.dimension_semantics<arbitrary>], iteration_bounds = array<i64: 2, 1>, scalar_prefetch = 0 : i64, scratch_operands = 1 : i64, tpu.core_type = #tpu.core_type<tc>, window_params = [{transform_indices = @transform_0, window_bounds = array<i64: 1, 16, 4>}, {transform_indices = @transform_1, window_bounds = array<i64: 1, 16, 4>}, {transform_indices = @transform_2, window_bounds = array<i64: 1, 16, 128>}, {transform_indices = @transform_3, window_bounds = array<i64: 16, 16>}, {transform_indices = @transform_4, window_bounds = array<i64: 16, 16>}, {transform_indices = @transform_5, window_bounds = array<i64: 16, 1>}, {pipeline_mode = #tpu.pipeline_mode<synchronous>, transform_indices = @transform_6, window_bounds = array<i64: 4, 384>}, {pipeline_mode = #tpu.pipeline_mode<synchronous>, transform_indices = @transform_7, window_bounds = array<i64: 4, 1920>}, {pipeline_mode = #tpu.pipeline_mode<synchronous>, transform_indices = @transform_8, window_bounds = array<i64: 1, 1920>}, {pipeline_mode = #tpu.pipeline_mode<synchronous>, transform_indices = @transform_9, window_bounds = array<i64: 384, 384>}, {pipeline_mode = #tpu.pipeline_mode<synchronous>, transform_indices = @transform_10, window_bounds = array<i64: 1, 384>}, {pipeline_mode = #tpu.pipeline_mode<synchronous>, transform_indices = @transform_11, window_bounds = array<i64: 128, 256>}, {pipeline_mode = #tpu.pipeline_mode<synchronous>, transform_indices = @transform_12, window_bounds = array<i64: 128, 128>}, {transform_indices = @transform_13, window_bounds = array<i64: 1, 16, 128>}]} {
    %c0_i32 = arith.constant 0 : i32
    %0 = arith.cmpi eq, %arg1, %c0_i32 : i32
    %1 = arith.extui %0 : i1 to i32
    %c0_i32_0 = arith.constant 0 : i32
    %2 = arith.cmpi ne, %1, %c0_i32_0 : i32
    scf.if %2 {
      %c0_43 = arith.constant 0 : index
      %c0_44 = arith.constant 0 : index
      %c0_45 = arith.constant 0 : index
      %98 = vector.load %arg2[%c0_43, %c0_44, %c0_45] : memref<1x16x4xf32, #tpu.memory_space<vmem>>, vector<1x16x4xf32>
      %99 = vector.shape_cast %98 : vector<1x16x4xf32> to vector<16x4xf32>
      %100 = arith.truncf %99 : vector<16x4xf32> to vector<16x4xbf16>
      %c0_46 = arith.constant 0 : index
      %c0_47 = arith.constant 0 : index
      %101 = vector.load %arg8[%c0_46, %c0_47] : memref<4x384xbf16, #tpu.memory_space<vmem>>, vector<4x384xbf16>
      %cst_48 = arith.constant dense<0.000000e+00> : vector<16x384xf32>
      %102 = tpu.matmul %100, %101, %cst_48 {dimension_numbers = #tpu.dot_dimension_numbers<[1], [0], [0], [1], [0, 0, 1, 1], [], []>} : vector<16x4xbf16>, vector<4x384xbf16>, vector<16x384xf32> -> vector<16x384xf32>
      %103 = arith.truncf %102 : vector<16x384xf32> to vector<16x384xbf16>
      %c0_49 = arith.constant 0 : index
      %c0_50 = arith.constant 0 : index
      %104 = vector.load %arg16[%c0_49, %c0_50] : memref<16x384xbf16, #tpu.memory_space<vmem>>, vector<16x384xbf16>
      tpu.vector_store %arg16[%c0_49, %c0_50], %103 {strides = array<i32>} : memref<16x384xbf16, #tpu.memory_space<vmem>>, vector<16x384xbf16>,
    } else {
    }
    %c0 = arith.constant 0 : index
    %c0_1 = arith.constant 0 : index
    %c0_2 = arith.constant 0 : index
    %3 = vector.load %arg3[%c0, %c0_1, %c0_2] : memref<1x16x4xf32, #tpu.memory_space<vmem>>, vector<1x16x4xf32>
    %4 = vector.shape_cast %3 : vector<1x16x4xf32> to vector<16x4xf32>
    %5 = arith.truncf %4 : vector<16x4xf32> to vector<16x4xbf16>
    %c0_3 = arith.constant 0 : index
    %c0_4 = arith.constant 0 : index
    %6 = vector.load %arg9[%c0_3, %c0_4] : memref<4x1920xbf16, #tpu.memory_space<vmem>>, vector<4x1920xbf16>
    %cst = arith.constant dense<0.000000e+00> : vector<16x1920xf32>
    %7 = tpu.matmul %5, %6, %cst {dimension_numbers = #tpu.dot_dimension_numbers<[1], [0], [0], [1], [0, 0, 1, 1], [], []>} : vector<16x4xbf16>, vector<4x1920xbf16>, vector<16x1920xf32> -> vector<16x1920xf32>
    %c0_5 = arith.constant 0 : index
    %c0_6 = arith.constant 0 : index
    %8 = vector.load %arg10[%c0_5, %c0_6] : memref<1x1920xf32, #tpu.memory_space<vmem>>, vector<1x1920xf32>
    %9 = vector.broadcast %8 : vector<1x1920xf32> to vector<16x1920xf32>
    %10 = arith.addf %7, %9 : vector<16x1920xf32>
    %11 = vector.extract_strided_slice %10 {offsets = [0, 0], sizes = [16, 384], strides = [1, 1]} : vector<16x1920xf32> to vector<16x384xf32>
    %12 = vector.extract_strided_slice %10 {offsets = [0, 384], sizes = [16, 384], strides = [1, 1]} : vector<16x1920xf32> to vector<16x384xf32>
    %13 = vector.extract_strided_slice %10 {offsets = [0, 768], sizes = [16, 384], strides = [1, 1]} : vector<16x1920xf32> to vector<16x384xf32>
    %14 = vector.extract_strided_slice %10 {offsets = [0, 1152], sizes = [16, 384], strides = [1, 1]} : vector<16x1920xf32> to vector<16x384xf32>
    %15 = vector.extract_strided_slice %10 {offsets = [0, 1536], sizes = [16, 384], strides = [1, 1]} : vector<16x1920xf32> to vector<16x384xf32>
    %16 = arith.mulf %15, %13 : vector<16x384xf32>
    %17 = arith.addf %16, %14 : vector<16x384xf32>
    %cst_7 = arith.constant 0.000000e+00 : f32
    %18 = vector.broadcast %cst_7 : f32 to vector<16x384xf32>
    %19 = arith.cmpf ogt, %17, %18 : vector<16x384xf32>
    %cst_8 = arith.constant 0.00999999977 : f32
    %20 = vector.broadcast %cst_8 : f32 to vector<16x384xf32>
    %21 = arith.mulf %20, %17 : vector<16x384xf32>
    %22 = arith.select %19, %17, %21 : vector<16x384xi1>, vector<16x384xf32>
    %c0_9 = arith.constant 0 : index
    %c0_10 = arith.constant 0 : index
    %23 = vector.load %arg5[%c0_9, %c0_10] : memref<16x16xbf16, #tpu.memory_space<vmem>>, vector<16x16xbf16>
    %c0_11 = arith.constant 0 : index
    %c0_12 = arith.constant 0 : index
    %24 = vector.load %arg16[%c0_11, %c0_12] : memref<16x384xbf16, #tpu.memory_space<vmem>>, vector<16x384xbf16>
    %cst_13 = arith.constant dense<0.000000e+00> : vector<16x384xf32>
    %25 = tpu.matmul %23, %24, %cst_13 {dimension_numbers = #tpu.dot_dimension_numbers<[1], [0], [0], [1], [0, 0, 1, 1], [], []>} : vector<16x16xbf16>, vector<16x384xbf16>, vector<16x384xf32> -> vector<16x384xf32>
    %26 = arith.mulf %12, %25 : vector<16x384xf32>
    %c0_14 = arith.constant 0 : index
    %c0_15 = arith.constant 0 : index
    %27 = vector.load %arg7[%c0_14, %c0_15] : memref<16x1xf32, #tpu.memory_space<vmem>>, vector<16x1xf32>
    %28 = vector.broadcast %27 : vector<16x1xf32> to vector<16x384xf32>
    %29 = arith.mulf %11, %28 : vector<16x384xf32>
    %30 = arith.addf %26, %29 : vector<16x384xf32>
    %cst_16 = arith.constant 0.000000e+00 : f32
    %31 = vector.broadcast %cst_16 : f32 to vector<16x384xf32>
    %c0_i32_17 = arith.constant 0 : i32
    %c16_i32 = arith.constant 16 : i32
    %32 = arith.muli %c0_i32_17, %c16_i32 : i32
    %33 = tpu.assume_multiple %32, 16 : i32
    %34 = arith.index_cast %33 : i32 to index
    %c0_18 = arith.constant 0 : index
    %35 = vector.load %arg16[%34, %c0_18] : memref<16x384xbf16, #tpu.memory_space<vmem>>, vector<16x384xbf16>
    %36 = arith.extf %35 : vector<16x384xbf16> to vector<16x384xf32>
    %37 = arith.index_cast %33 : i32 to index
    %c0_19 = arith.constant 0 : index
    %38 = vector.load %arg6[%37, %c0_19] : memref<16x16xbf16, #tpu.memory_space<vmem>>, vector<16x16xbf16>
    %39 = arith.extf %38 : vector<16x16xbf16> to vector<16x16xf32>
    %40 = vector.shape_cast %12 : vector<16x384xf32> to vector<1x16x384xf32>
    %41 = vector.shape_cast %36 : vector<16x384xf32> to vector<16x1x384xf32>
    %42 = vector.broadcast %40 : vector<1x16x384xf32> to vector<16x16x384xf32>
    %43 = vector.broadcast %41 : vector<16x1x384xf32> to vector<16x16x384xf32>
    %44 = arith.mulf %42, %43 : vector<16x16x384xf32>
    %45 = vector.shape_cast %11 : vector<16x384xf32> to vector<1x16x384xf32>
    %46 = vector.broadcast %45 : vector<1x16x384xf32> to vector<16x16x384xf32>
    %47 = arith.addf %44, %46 : vector<16x16x384xf32>
    %48 = math.absf %47 : vector<16x16x384xf32>
    %49 = vector.shape_cast %39 : vector<16x16xf32> to vector<16x16x1xf32>
    %50 = vector.broadcast %49 : vector<16x16x1xf32> to vector<16x16x384xf32>
    %51 = arith.mulf %50, %48 : vector<16x16x384xf32>
    %cst_20 = arith.constant dense<0.000000e+00> : vector<16x384xf32>
    %52 = vector.multi_reduction <add>, %51, %cst_20 [0] : vector<16x16x384xf32> to vector<16x384xf32>
    %53 = arith.addf %31, %52 : vector<16x384xf32>
    %c1_i32 = arith.constant 1 : i32
    %cst_21 = arith.constant 5.050000e-01 : f32
    %54 = vector.broadcast %cst_21 : f32 to vector<16x384xf32>
    %55 = arith.mulf %54, %30 : vector<16x384xf32>
    %cst_22 = arith.constant 4.950000e-01 : f32
    %56 = vector.broadcast %cst_22 : f32 to vector<16x384xf32>
    %57 = arith.mulf %56, %53 : vector<16x384xf32>
    %58 = arith.addf %55, %57 : vector<16x384xf32>
    %59 = arith.addf %22, %58 : vector<16x384xf32>
    %c0_23 = arith.constant 0 : index
    %c0_24 = arith.constant 0 : index
    %c0_25 = arith.constant 0 : index
    %60 = vector.load %arg4[%c0_23, %c0_24, %c0_25] : memref<1x16x128xf32, #tpu.memory_space<vmem>>, vector<1x16x128xf32>
    %61 = vector.shape_cast %60 : vector<1x16x128xf32> to vector<16x128xf32>
    %62 = arith.truncf %59 : vector<16x384xf32> to vector<16x384xbf16>
    %c0_26 = arith.constant 0 : index
    %c0_27 = arith.constant 0 : index
    %63 = vector.load %arg11[%c0_26, %c0_27] : memref<384x384xbf16, #tpu.memory_space<vmem>>, vector<384x384xbf16>
    %cst_28 = arith.constant dense<0.000000e+00> : vector<16x384xf32>
    %64 = tpu.matmul %62, %63, %cst_28 {dimension_numbers = #tpu.dot_dimension_numbers<[1], [0], [0], [1], [0, 0, 1, 1], [], []>} : vector<16x384xbf16>, vector<384x384xbf16>, vector<16x384xf32> -> vector<16x384xf32>
    %c0_29 = arith.constant 0 : index
    %c0_30 = arith.constant 0 : index
    %65 = vector.load %arg12[%c0_29, %c0_30] : memref<1x384xf32, #tpu.memory_space<vmem>>, vector<1x384xf32>
    %66 = vector.broadcast %65 : vector<1x384xf32> to vector<16x384xf32>
    %67 = arith.addf %64, %66 : vector<16x384xf32>
    %68 = arith.truncf %61 : vector<16x128xf32> to vector<16x128xbf16>
    %c0_31 = arith.constant 0 : index
    %c0_32 = arith.constant 0 : index
    %69 = vector.load %arg13[%c0_31, %c0_32] : memref<128x256xbf16, #tpu.memory_space<vmem>>, vector<128x256xbf16>
    %cst_33 = arith.constant dense<0.000000e+00> : vector<16x256xf32>
    %70 = tpu.matmul %68, %69, %cst_33 {dimension_numbers = #tpu.dot_dimension_numbers<[1], [0], [0], [1], [0, 0, 1, 1], [], []>} : vector<16x128xbf16>, vector<128x256xbf16>, vector<16x256xf32> -> vector<16x256xf32>
    %71 = vector.extract_strided_slice %67 {offsets = [0, 0], sizes = [16, 128], strides = [1, 1]} : vector<16x384xf32> to vector<16x128xf32>
    %72 = vector.extract_strided_slice %70 {offsets = [0, 0], sizes = [16, 128], strides = [1, 1]} : vector<16x256xf32> to vector<16x128xf32>
    %73 = arith.addf %71, %72 : vector<16x128xf32>
    %74 = math.tanh %73 : vector<16x128xf32>
    %75 = vector.extract_strided_slice %67 {offsets = [0, 128], sizes = [16, 128], strides = [1, 1]} : vector<16x384xf32> to vector<16x128xf32>
    %76 = vector.extract_strided_slice %70 {offsets = [0, 128], sizes = [16, 128], strides = [1, 1]} : vector<16x256xf32> to vector<16x128xf32>
    %77 = arith.addf %75, %76 : vector<16x128xf32>
    %78 = math.tanh %77 : vector<16x128xf32>
    %79 = vector.extract_strided_slice %67 {offsets = [0, 256], sizes = [16, 128], strides = [1, 1]} : vector<16x384xf32> to vector<16x128xf32>
    %80 = arith.mulf %61, %78 : vector<16x128xf32>
    %81 = arith.truncf %80 : vector<16x128xf32> to vector<16x128xbf16>
    %c0_34 = arith.constant 0 : index
    %c0_35 = arith.constant 0 : index
    %82 = vector.load %arg14[%c0_34, %c0_35] : memref<128x128xbf16, #tpu.memory_space<vmem>>, vector<128x128xbf16>
    %cst_36 = arith.constant dense<0.000000e+00> : vector<16x128xf32>
    %83 = tpu.matmul %81, %82, %cst_36 {dimension_numbers = #tpu.dot_dimension_numbers<[1], [0], [0], [1], [0, 0, 1, 1], [], []>} : vector<16x128xbf16>, vector<128x128xbf16>, vector<16x128xf32> -> vector<16x128xf32>
    %84 = arith.addf %79, %83 : vector<16x128xf32>
    %cst_37 = arith.constant 0.000000e+00 : f32
    %85 = vector.broadcast %cst_37 : f32 to vector<16x128xf32>
    %86 = arith.cmpf ogt, %84, %85 : vector<16x128xf32>
    %cst_38 = arith.constant 0.00999999977 : f32
    %87 = vector.broadcast %cst_38 : f32 to vector<16x128xf32>
    %88 = arith.mulf %87, %84 : vector<16x128xf32>
    %89 = arith.select %86, %84, %88 : vector<16x128xi1>, vector<16x128xf32>
    %90 = arith.mulf %74, %61 : vector<16x128xf32>
    %cst_39 = arith.constant 1.000000e+00 : f32
    %91 = vector.broadcast %cst_39 : f32 to vector<16x128xf32>
    %92 = arith.subf %91, %74 : vector<16x128xf32>
    %93 = arith.mulf %92, %89 : vector<16x128xf32>
    %94 = arith.addf %90, %93 : vector<16x128xf32>
    %c0_40 = arith.constant 0 : index
    %c0_41 = arith.constant 0 : index
    %c0_42 = arith.constant 0 : index
    %95 = vector.load %arg15[%c0_40, %c0_41, %c0_42] : memref<1x16x128xf32, #tpu.memory_space<vmem>>, vector<1x16x128xf32>
    %96 = vector.shape_cast %95 : vector<1x16x128xf32> to vector<16x128xf32>
    %97 = vector.shape_cast %94 : vector<16x128xf32> to vector<1x16x128xf32>
    tpu.vector_store %arg15[%c0_40, %c0_41, %c0_42], %97 {strides = array<i32>} : memref<1x16x128xf32, #tpu.memory_space<vmem>>, vector<1x16x128xf32>,
    return
  }
  func.func @transform_0(%arg0: i32, %arg1: i32) -> (i32, i32, i32) {
    %c0_i32 = arith.constant 0 : i32
    %c0_i32_0 = arith.constant 0 : i32
    %c0_i32_1 = arith.constant 0 : i32
    return %arg0, %c0_i32, %c0_i32_0 : i32, i32, i32
  }
  func.func @transform_1(%arg0: i32, %arg1: i32) -> (i32, i32, i32) {
    %c0_i32 = arith.constant 0 : i32
    %c0_i32_0 = arith.constant 0 : i32
    return %arg0, %arg1, %c0_i32 : i32, i32, i32
  }
  func.func @transform_2(%arg0: i32, %arg1: i32) -> (i32, i32, i32) {
    %c0_i32 = arith.constant 0 : i32
    %c0_i32_0 = arith.constant 0 : i32
    return %arg0, %arg1, %c0_i32 : i32, i32, i32
  }
  func.func @transform_3(%arg0: i32, %arg1: i32) -> (i32, i32) {
    %c0_i32 = arith.constant 0 : i32
    %c0_i32_0 = arith.constant 0 : i32
    return %arg1, %c0_i32 : i32, i32
  }
  func.func @transform_4(%arg0: i32, %arg1: i32) -> (i32, i32) {
    %c0_i32 = arith.constant 0 : i32
    %c0_i32_0 = arith.constant 0 : i32
    return %c0_i32, %arg1 : i32, i32
  }
  func.func @transform_5(%arg0: i32, %arg1: i32) -> (i32, i32) {
    %c0_i32 = arith.constant 0 : i32
    %c0_i32_0 = arith.constant 0 : i32
    return %arg1, %c0_i32 : i32, i32
  }
  func.func @transform_6(%arg0: i32, %arg1: i32) -> (i32, i32) {
    %c0_i32 = arith.constant 0 : i32
    %c0_i32_0 = arith.constant 0 : i32
    %c0_i32_1 = arith.constant 0 : i32
    return %c0_i32, %c0_i32_0 : i32, i32
  }
  func.func @transform_7(%arg0: i32, %arg1: i32) -> (i32, i32) {
    %c0_i32 = arith.constant 0 : i32
    %c0_i32_0 = arith.constant 0 : i32
    %c0_i32_1 = arith.constant 0 : i32
    return %c0_i32, %c0_i32_0 : i32, i32
  }
  func.func @transform_8(%arg0: i32, %arg1: i32) -> (i32, i32) {
    %c0_i32 = arith.constant 0 : i32
    %c0_i32_0 = arith.constant 0 : i32
    %c0_i32_1 = arith.constant 0 : i32
    return %c0_i32, %c0_i32_0 : i32, i32
  }
  func.func @transform_9(%arg0: i32, %arg1: i32) -> (i32, i32) {
    %c0_i32 = arith.constant 0 : i32
    %c0_i32_0 = arith.constant 0 : i32
    %c0_i32_1 = arith.constant 0 : i32
    return %c0_i32, %c0_i32_0 : i32, i32
  }
  func.func @transform_10(%arg0: i32, %arg1: i32) -> (i32, i32) {
    %c0_i32 = arith.constant 0 : i32
    %c0_i32_0 = arith.constant 0 : i32
    %c0_i32_1 = arith.constant 0 : i32
    return %c0_i32, %c0_i32_0 : i32, i32
  }
  func.func @transform_11(%arg0: i32, %arg1: i32) -> (i32, i32) {
    %c0_i32 = arith.constant 0 : i32
    %c0_i32_0 = arith.constant 0 : i32
    %c0_i32_1 = arith.constant 0 : i32
    return %c0_i32, %c0_i32_0 : i32, i32
  }
  func.func @transform_12(%arg0: i32, %arg1: i32) -> (i32, i32) {
    %c0_i32 = arith.constant 0 : i32
    %c0_i32_0 = arith.constant 0 : i32
    %c0_i32_1 = arith.constant 0 : i32
    return %c0_i32, %c0_i32_0 : i32, i32
  }
  func.func @transform_13(%arg0: i32, %arg1: i32) -> (i32, i32, i32) {
    %c0_i32 = arith.constant 0 : i32
    %c0_i32_0 = arith.constant 0 : i32
    return %arg0, %arg1, %c0_i32 : i32, i32, i32
  }
}

</mosaic_0001>

<bundles_post_ra>
// kernel: tpu_custom_call.1
= control target key start
LH: loop header
LB: loop body
LE: loop exit
PB: predicated region body
PF: predicated region fallthrough
CT: control target
= control target key end

     0   :  { %s5853_s0 = inlined_call_operand.vmem [shape: f32[2,16,4], index: 0, kind: input, shape index: {}]   ;;  %s5854_s1 = inlined_call_operand.vmem [shape: f32[2,16,4], index: 1, kind: input, shape index: {}]   ;;  %s5855_s2 = inlined_call_operand.hbm [shape: f32[2,16,128], index: 2, kind: input, shape index: {}]   ;;  %s5856_s3 = inlined_call_operand.hbm [shape: bf16[16,16], index: 3, kind: input, shape index: {}]   ;;  %s5857_s4 = inlined_call_operand.hbm [shape: bf16[16,16], index: 4, kind: input, shape index: {}]   ;;  %s5858_s5 = inlined_call_operand.vmem [shape: f32[16,1], index: 5, kind: input, shape index: {}]   ;;  %s5859_s6 = inlined_call_operand.hbm [shape: bf16[4,384], index: 6, kind: input, shape index: {}]   ;;  %s5860_s7 = inlined_call_operand.hbm [shape: bf16[4,1920], index: 7, kind: input, shape index: {}]   ;;  %s5861_s8 = inlined_call_operand.vmem [shape: f32[1,1920], index: 8, kind: input, shape index: {}]   ;;  %s5862_s9 = inlined_call_operand.hbm [shape: bf16[384,384], index: 9, kind: input, shape index: {}]   ;;  %s5863_s10 = inlined_call_operand.vmem [shape: f32[1,384], index: 10, kind: input, shape index: {}]   ;;  %s5864_s11 = inlined_call_operand.hbm [shape: bf16[128,256], index: 11, kind: input, shape index: {}]   ;;  %s5865_s12 = inlined_call_operand.vmem [shape: bf16[128,128], index: 12, kind: input, shape index: {}]   ;;  %s5866_s13 = inlined_call_operand.hbm [shape: f32[2,16,128], index: 13, kind: output, shape index: {}]  }
   0x1   :  { %5970 = sst [smem:[#allocation82_spill]] %s5856_s3 }
   0x2   :  { %5971 = sst [smem:[#allocation83_spill]] %s5857_s4 }
   0x3   :  { %5972 = sst [smem:[#allocation84_spill]] %s5858_s5 }
   0x4   :  { %5973 = sst [smem:[#allocation85_spill]] %s5859_s6 }
   0x5   :  { %5974 = sst [smem:[#allocation86_spill]] %s5861_s8 }
   0x6   :  { %5975 = sst [smem:[#allocation87_spill]] %s5862_s9 }
   0x7   :  { %5976 = sst [smem:[#allocation88_spill]] %s5863_s10 }
   0x8   :  { %5977 = sst [smem:[#allocation89_spill]] %s5865_s12 }
   0x9   :  { %5978 = sst [smem:[#allocation90_spill]] %s5866_s13 }
   0xa   :  { %18 = vsyncpa [#allocation4], 0 }
   0xb   :  { %20 = vsyncpa [#allocation4 + $0x1], 0 }
   0xc   :  { %21 = vsyncpa [#allocation7], 0 }
   0xd   :  { %22 = vsyncpa [#allocation10], 0 }
   0xe   :  { %23 = vsyncpa [#allocation13], 0 }
   0xf   :  { %24 = vsyncpa [#allocation5], 0 }
  0x10   :  { %26 = vsyncpa [#allocation5 + $0x1], 0  ;;  %s4333_s25 = smov 0   ;;  %s4335_s26 = smov 0  }
  0x11   :  { %s4337_s27 = smov 0   ;;  %s4339_s28 = smov 0  }
  0x12   :  { %s4341_s29 = smov 0   ;;  %s4343_s30 = smov 0  }
  0x13 LB: > { %s5867_s14 = sadd.s32 4294967295, %s4246_s30   ;;  %p3148_p0 = scmp.ge.s32.totalorder %s4246_s30, 1  ;;  %s4246_s30 = sphi %s4343_s30, %s32_s30   ;;  %s4242_s29 = sphi %s4341_s29, %s6235_s29   ;;  %s4238_s28 = sphi %s4339_s28, %s6234_s28   ;;  %s4234_s27 = sphi %s4337_s27, %s6233_s27   ;;  %s4230_s26 = sphi %s4335_s26, %s6232_s26   ;;  %s4226_s25 = sphi %s4333_s25, %s6231_s25  }
  0x14   : > { %p4367_p1 = scmp.eq.s32.totalorder %s5867_s14, 0  ;;  %p384_p2 = scmp.lt.s32.totalorder %s4246_s30, 3 }
  0x15   : > { %s5980_s3 = sld [smem:[#allocation82_spill]]  ;;  %s4248_s20 = smov [#allocation6]  }
  0x16   : > { %p4375_p3 = pnand %p3148_p0, %p384_p2  ;;  %s400_s21 = sshll.u32 %s4248_s20, 4  ;;  %s401_s21 = int_to_ptr.vmem [resolvable:$true] %s400_s21 }
  0x17   : > { %p3156_p6 = scmp.ge.s32.totalorder %s4246_s30, 2  ;;  %s5983_s6 = sld [smem:[#allocation85_spill]] }
  0x18   : > { %p3735_p4 = pneg %p4375_p3  ;;  %s4249_s17 = smov 64  }
  0x19   : > { %s4250_s14 = smov 4   ;;  %s4251_s20 = smov [#allocation9]  }
  0x1a   : > { %p4383_p5 = pnand %p3735_p4, %p4367_p1  ;;  %s5984_s9 = sld [smem:[#allocation87_spill]] }
  0x1b   : > { %s398_s18 = sshll.u32 %s5980_s3, 4  ;;  %s440_s3 = sshll.u32 %s4251_s20, 4  ;;  %s399_s18 = int_to_ptr.hbm [resolvable:$true] %s398_s18  ;;  %s441_s3 = int_to_ptr.vmem [resolvable:$true] %s440_s3 }
  0x1c   : > { %3738 = dma.hbm_to_vmem [thread:$0]  (!%p4383_p5), %s399_s18, 128, %s401_s21, [#allocation7], %s4249_s17, %s4249_s17, %s4250_s14  }
  0x1d   : > { %s438_s16 = sshll.u32 %s5983_s6, 4  ;;  %s4252_s8 = smov [#allocation12]   ;;  %s439_s16 = int_to_ptr.hbm [resolvable:$true] %s438_s16 }
  0x1e   : > { %3744 = dma.hbm_to_vmem [thread:$0]  (!%p4383_p5), %s439_s16, 96, %s441_s3, [#allocation10]  }
  0x1f   : > { %s466_s23 = sshll.u32 %s4252_s8, 4  ;;  %s5985_s4 = sld [smem:[#allocation83_spill]]  ;;  %s467_s23 = int_to_ptr.vmem [resolvable:$true] %s466_s23 }
  0x20   : > { %s464_s10 = sshll.u32 %s5984_s9, 4  ;;  %s4253_s18 = smov 192   ;;  %s465_s10 = int_to_ptr.hbm [resolvable:$true] %s464_s10 }
  0x21   : > { %s4254_s21 = smov 12   ;;  %s4255_s12 = smov [#allocation8]  }
  0x22   : > { %3750 = dma.hbm_to_vmem [thread:$0]  (!%p4383_p5), %s465_s10, 9216, %s467_s23, [#allocation13], %s4253_s18, %s4253_s18, %s4254_s21  }
  0x23   : > { %s416_s13 = sshll.u32 %s4255_s12, 4  ;;  %s450_s3 = sshll.u32 %s5860_s7, 4  ;;  %s417_s13 = int_to_ptr.vmem [resolvable:$true] %s416_s13  ;;  %s451_s3 = int_to_ptr.hbm [resolvable:$true] %s450_s3 }
  0x24   : > { %s481_s16 = sshll.u32 %s5864_s11, 4  ;;  %s4256_s10 = smov [#allocation11]   ;;  %s482_s16 = int_to_ptr.hbm [resolvable:$true] %s481_s16 }
  0x25   : > { %s414_s5 = sshll.u32 %s5985_s4, 4  ;;  %s452_s23 = sshll.u32 %s4256_s10, 4  ;;  %s415_s5 = int_to_ptr.hbm [resolvable:$true] %s414_s5  ;;  %s453_s23 = int_to_ptr.vmem [resolvable:$true] %s452_s23 }
  0x26   : > { %3741 = dma.hbm_to_vmem [thread:$0]  (!%p4383_p5), %s415_s5, 128, %s417_s13, [#allocation7], %s4249_s17, %s4249_s17, %s4250_s14  }
  0x27   : > { %3747 = dma.hbm_to_vmem [thread:$0]  (!%p4383_p5), %s451_s3, 480, %s453_s23, [#allocation10]  }
  0x28   : > { %s4257_s9 = smov [#allocation14]   ;;  %s5872_s14 = smov 128  }
  0x29   : > { %s483_s5 = sshll.u32 %s4257_s9, 4  ;;  %s4259_s17 = smov 8   ;;  %s484_s5 = int_to_ptr.vmem [resolvable:$true] %s483_s5 }
  0x2a   : > { %3753 = dma.hbm_to_vmem [thread:$0]  (!%p4383_p5), %s482_s16, 2048, %s484_s5, [#allocation13], %s5872_s14, %s5872_s14, %s4259_s17  }
  0x2b   : > { %s44_s24 = sadd.s32 1, %s4242_s29  ;;  %s3147_s18 = sadd.s32 4294967294, %s4246_s30  }
  0x2c   : > { %p46_p7 = scmp.ge.s32.totalorder %s44_s24, 2  ;;  %s107_s21 = sadd.s32 1, %s4234_s27 }
  0x2d   : > { %p114_p8 = scmp.ne.s32.totalorder %s4234_s27, %s4230_s26  ;;  %p115_p9 = scmp.eq.s32.totalorder %s4246_s30, 0 }
  0x2e   : > { %s6237_s24 = smov (%p46_p7, %s44_s24), 0  ;;  %p120_p10 = scmp.ne.s32.totalorder %s4230_s26, %s4226_s25 }
  0x2f   : > { %s102_s12 = ssub.s32 %s4242_s29, %s6237_s24  ;;  %s5986_s22 = sadd.s32 4294967295, %s4246_s30  }
  0x30   : > { %p371_p11 = scmp.eq.s32.totalorder %s5986_s22, 1  ;;  %p105_p12 = scmp.eq.s32.totalorder %s102_s12, 0 }
  0x31   : > { %p4434_p13 = por %p4367_p1, %p120_p10  ;;  %p377_p2 = scmp.eq.s32.totalorder %s3147_s18, 1 }
  0x32   : > { %p4438_p0 = por %p371_p11, %p114_p8  ;;  %p116_p4 = por %p115_p9, %p114_p8 }
  0x33   : > { %s4443_s3 = scalar_select %p105_p12, %s4234_s27, %s107_s21  }
  0x34   : > { %p4445_p5 = por %p377_p2, %p120_p10  ;;  %s521_s8 = sand.u32 1, %s4234_s27  }
  0x35   : > { %s3599_s16 = sshll.u32 %s4242_s29, 4  ;;  %p3768_p7 = scmp.lt.s32.totalorder %s4246_s30, 2 }
  0x36   : > { %s3157_s10 = sshll.u32 %s521_s8, 4  ;;  %s532_s5 = scalar_lea.hbm %s5855_s2, %s3599_s16 }
  0x37   : > { %s533_s12 = sshll.u32 %s532_s5, 4  ;;  %s525_s22 = scalar_lea.vmem [#allocation3], %s3157_s10  ;;  %s534_s12 = int_to_ptr.hbm [resolvable:$true] %s533_s12 }
  0x38   : > { %s535_s14 = sshll.u32 %s525_s22, 4  ;;  %p3755_p11 = pnand %p3768_p7, %p116_p4  ;;  %s536_s14 = int_to_ptr.vmem [resolvable:$true] %s535_s14 }
  0x39   : > { %s522_s18 = scalar_lea.sflag [#allocation4], %s521_s8  ;;  %s5990_s21 = smov 128  }
  0x3a   : > { %3757 = dma.hbm_to_vmem [thread:$0]  (!%p3755_p11), %s534_s12, 256, %s536_s14, %s522_s18, %s5990_s21, %s5990_s21, %s4259_s17  }
  0x3b   : > { %547 = sbr.rel (%p4375_p3) target bundleno = 786 (0x312), region = 72 }
  0x40   : > { %s4461_s4 = sand.u32 1, %s4230_s26  }
  0x41   : > { %s3161_s16 = sshll.u32 %s4461_s4, 4  ;;  %s550_s10 = scalar_lea.sflag [#allocation4], %s4461_s4 }
  0x42   : > { %s4467_s23 = scalar_lea.vmem [#allocation3], %s3161_s16 }
  0x43   : > { %4205 = dma.done.wait (%p4434_p13), %s550_s10, 256  }
  0x44   : > { %4207 = vsyncadd (%p4434_p13), %s550_s10, 4294967040 }
  0x45   : > { %4209 = dma.done.wait (%p4367_p1), [#allocation7], 256  }
  0x46   : > { %4211 = vsyncadd (%p4367_p1), [#allocation7], 4294967040 }
  0x47   : > { %4213 = dma.done.wait (%p4367_p1), [#allocation10], 576  }
  0x48   : > { %4215 = vsyncadd (%p4367_p1), [#allocation10], 4294966720 }
  0x49   : > { %4217 = dma.done.wait (%p4367_p1), [#allocation13], 11264  }
  0x4a   : > { %4219 = vsyncadd (%p4367_p1), [#allocation13], 4294956032  ;;  %v1661_v0 = vlaneseq  ;;  %p646_p3 = scmp.lt.s32.totalorder %s4238_s28, 1  ;;  %v3704_v3 = vld [vmem:[#allocation8] sm:$0xff]   ;;  %v678_v4 = vld [vmem:[#allocation9] sm:$0x3f] }
  0x4b   : > { %v4498_v5 = vunpack.c.l.bf16 %v3704_v3  ;;  %680 = vst [vmem:[#allocation1] ss:$4 sm:$0xff] %v678_v4  ;;  %v749_v6 = vld [vmem:[#allocation11 + $0x8] sm:$0xff]  ;;  %vm688_vm0 = vcmask 1041408   ;;  %v748_v18 = vld [vmem:[#allocation11] sm:$0xff]  ;;  %vm684_vm1 = vcmask 31744   ;;  %v4532_v41 = vunpack.c.h.bf16 %v3704_v3 }
  0x4c   : > { %v4486_v1 = vshrl.u32 %v1661_v0, 7  ;;  %s4489_s19 = scalar_select %p646_p3, %s4238_s28, 1  ;;  %790 = vst [vmem:[#allocation1 + $0x20] ss:$4 sm:$0xff] %v749_v6  ;;  %v750_v31 = vld [vmem:[#allocation11 + $0x10] sm:$0xff]  ;;  %vm1215_vm2 = vcmask 1040384  }
  0x4d   : > { %v1686_v7 = vperm.slane %v4498_v5, 2  ;;  %v1699_v8 = vperm.slane %v4498_v5, 3  ;;  %v1712_v9 = vperm.slane %v4498_v5, 4  ;;  %v1725_v10 = vperm.slane %v4498_v5, 5  ;;  %v751_v59 = vld [vmem:[#allocation11 + $0x18] sm:$0x3f] }
  0x4e   : > { %3851 = vset.pattern.permute.xlu1 %v4486_v1  ;;  %3857 = vset.pattern.permute.xlu2 %v4486_v1  ;;  %v4494_v2 = vadd.s32 8, %v4486_v1  ;;  %s3600_s15 = sshll.u32 %s4489_s19, 4  ;;  %v1660_v11 = vperm.slane %v4498_v5, 0  ;;  %v1673_v12 = vperm.slane %v4498_v5, 1  ;;  %v1764_v43 = vperm.slane %v4532_v41, 0  ;;  %s5991_s18 = sld [smem:[#allocation84_spill]] }
  0x4f   : > { %s650_s13 = scalar_lea.vmem %s5853_s0, %s3600_s15  ;;  %v3852_v13 = vpack.i.bf16 %v1699_v8, %v1686_v7  ;;  %v3858_v16 = vpack.i.bf16 %v1725_v10, %v1712_v9  ;;  %s659_s5 = scalar_lea.vmem %s5854_s1, %s3600_s15  ;;  %v1777_v44 = vperm.slane %v4532_v41, 1  ;;  %v1738_v45 = vperm.slane %v4498_v5, 6 }
  0x50   : > { %3839 = vset.pattern.permute.xlu0 %v4494_v2  ;;  %v675_v14 = vld [vmem:[%s650_s13] sm:$0xff]  ;;  %v676_v15 = vld [vmem:[%s650_s13 + $0x8] sm:$0xff]  ;;  %v3840_v17 = vpack.i.bf16 %v1673_v12, %v1660_v11  ;;  %v1751_v46 = vperm.slane %v4498_v5, 7  ;;  %v1790_v49 = vperm.slane %v4532_v41, 2  ;;  %v1803_v50 = vperm.slane %v4532_v41, 3  ;;  %s5992_s14 = sld [smem:[#allocation86_spill]] }
  0x51   : > { %v677_v24 = vpack.c.bf16 %v676_v15, %v675_v14  ;;  %v745_v27 = vld [vmem:[%s659_s5] sm:$0xff]  ;;  %v746_v28 = vld [vmem:[%s659_s5 + $0x8] sm:$0xff]  ;;  %v3886_v48 = vpack.i.bf16 %v1777_v44, %v1764_v43  ;;  %v1816_v51 = vperm.slane %v4532_v41, 4  ;;  %v1829_v52 = vperm.slane %v4532_v41, 5  ;;  %s6228_s12 = sld [smem:[#allocation88_spill]]  ;;  %s3702_s13 = sshll.u32 %s4238_s28, 4 }
  0x52   : > { %v681_v19 = vld.sshfl [vmem:[#allocation1] sm:$0xff pattern:$0x73625140]  ;;  %v682_v20 = vld.sshfl [vmem:[#allocation1 + $0x8] sm:$0xff pattern:$0x73625140]  ;;  %v4526_v34 = vpack.c.bf16 %v746_v28, %v745_v27  ;;  %v3881_v47 = vpack.i.bf16 %v1751_v46, %v1738_v45  ;;  %v3898_v53 = vpack.i.bf16 %v1803_v50, %v1790_v49 }
  0x53   : > { %v689_v21 = vsel %vm688_vm0, %v681_v19, 0  ;;  %v691_v22 = vsel %vm688_vm0, %v682_v20, 0  ;;  %v683_v23 = vld.sshfl [vmem:[#allocation1 + $0x10] sm:$0xff pattern:$0x73625140]  ;;  %v3914_v54 = vpack.i.bf16 %v1829_v52, %v1816_v51  ;;  %v1842_v6 = vperm.slane %v4532_v41, 6 }
  0x54   : > { %702 = vmatpush.bf16.msra.mxu0 %v689_v21  ;;  %716 = vmatpush.bf16.msra.mxu1 %v691_v22  ;;  %v693_v25 = vsel %vm688_vm0, %v683_v23, 0  ;;  %787 = vst [vmem:[#allocation1] ss:$4 sm:$0xff] %v748_v18  ;;  %v795_v26 = vld.sshfl [vmem:[#allocation1 + $0x20] sm:$0xff pattern:$0x73625140] }
  0x55   : > { %730 = vmatpush.bf16.msra.mxu2 %v693_v25  ;;  %v796_v29 = vld.sshfl [vmem:[#allocation1 + $0x28] sm:$0xff pattern:$0x73625140]  ;;  %v823_v30 = vsel %vm688_vm0, %v795_v26, 0  ;;  %v1855_v7 = vperm.slane %v4532_v41, 7  ;;  %v4260_v9 = vmov 0  }
  0x56   : > { %3853 = vperm.xlu1 %3851, %v3852_v13   ;;  %3859 = vperm.xlu2 %3857, %v3858_v16   ;;  %v825_v38 = vsel %vm688_vm0, %v796_v29, 0  ;;  %v797_v56 = vld.sshfl [vmem:[#allocation1 + $0x30] sm:$0xff pattern:$0x73625140]  ;;  %v1165_v15 = vld [vmem:[%s5991_s18 + $0x8] sm:$0xff]  ;;  %v4602_v25 = vld [vmem:[%s5992_s14] sm:$0xff] }
  0x57   : > { %3173 = vmatmul.msk.bf16.vlgmr.msra.gmra.mxu0 %vm684_vm1, %v677_v24  ;;  %3174 = vmatmul.msk.bf16.vlgmr.msra.gmra.mxu1 %vm684_vm1, %v677_v24  ;;  %v827_v58 = vsel %vm688_vm0, %v797_v56, 0  ;;  %v798_v60 = vld.sshfl [vmem:[#allocation1 + $0x38] sm:$0xff pattern:$0x73625140]  ;;  %v3926_v8 = vpack.i.bf16 %v1855_v7, %v1842_v6  ;;  %vm5873_vm3 = vcmask 1041409   ;;  %vm1223_vm4 = vcmask 1042434  }
  0x58   : > { %3841 = vperm.xlu0 %3839, %v3840_v17   ;;  %3175 = vmatmul.msk.bf16.vlgmr.msra.gmra.mxu2 %vm684_vm1, %v677_v24  ;;  %802 = vst [vmem:[#allocation1 + $0x20] ss:$4 sm:$0xff] %v751_v59  ;;  %v829_v61 = vsel %vm688_vm0, %v798_v60, 0  ;;  %vm1228_vm5 = vcmask 1043459   ;;  %v759_v29 = vperm.slane %v4602_v25, 3  ;;  %vm1220_vm6 = vcmask 1042433  }
  0x59   : > { %vm1225_vm7 = vcmask 1043458   ;;  %vm1230_vm8 = vcmask 1044483   ;;  %vm1233_vm9 = vcmask 1044484   ;;  %vm1235_vm10 = vcmask 1045508   ;;  %v4611_v46 = vld [vmem:[#allocation6] sm:$0xff]  ;;  %s6229_s10 = sld [smem:[#allocation89_spill]] }
  0x5a   : > { %vm1238_vm11 = vcmask 1045509   ;;  %vm1240_vm12 = vcmask 1046533   ;;  %vm1243_vm13 = vcmask 1046534   ;;  %vm1248_vm14 = vcmask 1046528   ;;  %s2936_s28 = scalar_lea.sflag [#allocation5], %s4461_s4 }
  0x5b   : > { %v791_v32 = vld.sshfl [vmem:[#allocation1] sm:$0xff pattern:$0x73625140]  ;;  %v792_v33 = vld.sshfl [vmem:[#allocation1 + $0x8] sm:$0xff pattern:$0x73625140] }
  0x5c   : > { %v815_v35 = vsel %vm688_vm0, %v791_v32, 0  ;;  %v817_v36 = vsel %vm688_vm0, %v792_v33, 0  ;;  %v794_v37 = vld.sshfl [vmem:[#allocation1 + $0x18] sm:$0xff pattern:$0x73625140]  ;;  %vm1245_vm15 = vcmask 1045504  }
  0x5d   : > { %852 = vmatpush.bf16.msra.mxu3 %v815_v35  ;;  %866 = vmatpush.bf16.msrb.mxu0 %v817_v36  ;;  %v821_v39 = vsel %vm688_vm0, %v794_v37, 0  ;;  %v793_v40 = vld.sshfl [vmem:[#allocation1 + $0x10] sm:$0xff pattern:$0x73625140] }
  0x5e   : > { %3863 = vset.pattern.permute.xlu1 %v4494_v2  ;;  %3875 = vset.pattern.permute.xlu2 %v4494_v2  ;;  %800 = vst [vmem:[#allocation1] ss:$4 sm:$0xff] %v750_v31  ;;  %v819_v42 = vsel %vm688_vm0, %v793_v40, 0 }
  0x5f   : > { %894 = vmatpush.bf16.msrb.mxu2 %v821_v39  ;;  %880 = vmatpush.bf16.msrb.mxu1 %v819_v42  ;;  %v807_v0 = vld.sshfl [vmem:[#allocation1 + $0x20] sm:$0xff pattern:$0x73625140]  ;;  %v808_v12 = vld.sshfl [vmem:[#allocation1 + $0x28] sm:$0xff pattern:$0x73625140] }
  0x60   : > { %3845 = vset.pattern.permute.xlu0 %v4486_v1  ;;  %3176 = vmatmul.msk.bf16.vlgmr.msra.gmra.mxu3 %vm684_vm1, %v4526_v34  ;;  %v839_v5 = vsel %vm688_vm0, %v807_v0, 0  ;;  %v809_v14 = vld.sshfl [vmem:[#allocation1 + $0x30] sm:$0xff pattern:$0x73625140] }
  0x61   : > { %908 = vmatpush.bf16.msrb.mxu3 %v823_v30  ;;  %922 = vmatpush.bf16.msra.mxu0 %v825_v38 }
  0x63   : > { %936 = vmatpush.bf16.msra.mxu1 %v827_v58  ;;  %950 = vmatpush.bf16.msra.mxu2 %v829_v61 }
  0x65   : > { %v803_v55 = vld.sshfl [vmem:[#allocation1] sm:$0xff pattern:$0x73625140]  ;;  %v804_v62 = vld.sshfl [vmem:[#allocation1 + $0x8] sm:$0xff pattern:$0x73625140] }
  0x66   : > { %3865 = vperm.xlu1 %3863, %v3852_v13   ;;  %3877 = vperm.xlu2 %3875, %v3858_v16   ;;  %v831_v57 = vsel %vm688_vm0, %v803_v55, 0  ;;  %v805_v63 = vld.sshfl [vmem:[#allocation1 + $0x10] sm:$0xff pattern:$0x73625140]  ;;  %v833_v3 = vsel %vm688_vm0, %v804_v62, 0  ;;  %v841_v13 = vsel %vm688_vm0, %v808_v12, 0 }
  0x67   : > { %3177 = vmatmul.msk.bf16.vlgmr.msrb.gmra.mxu0 %vm684_vm1, %v4526_v34  ;;  %3178 = vmatmul.msk.bf16.vlgmr.msrb.gmra.mxu1 %vm684_vm1, %v4526_v34  ;;  %v835_v4 = vsel %vm688_vm0, %v805_v63, 0  ;;  %v806_v10 = vld.sshfl [vmem:[#allocation1 + $0x18] sm:$0xff pattern:$0x73625140]  ;;  %v756_v55 = vperm.slane %v4602_v25, 0 }
  0x68   : > { %3847 = vperm.xlu0 %3845, %v3840_v17   ;;  %3179 = vmatmul.msk.bf16.vlgmr.msrb.gmra.mxu2 %vm684_vm1, %v4526_v34  ;;  %v837_v11 = vsel %vm688_vm0, %v806_v10, 0 }
  0x69   : > { %964 = vmatpush.bf16.msra.mxu3 %v831_v57  ;;  %978 = vmatpush.bf16.msrb.mxu0 %v833_v3 }
  0x6a   : > { %992 = vmatpush.bf16.msrb.mxu1 %v835_v4  ;;  %1006 = vmatpush.bf16.msrb.mxu2 %v837_v11 }
  0x6e   : > { %3869 = vset.pattern.permute.xlu1 %v4486_v1  ;;  %3882 = vperm.xlu2 %3875, %v3881_v47  }
  0x70   : > { %3887 = vperm.xlu0 %3845, %v3886_v48   ;;  %3180 = vmatmul.msk.bf16.vlgmr.msrb.gmra.mxu3 %vm684_vm1, %v4526_v34 }
  0x71   : > { %1020 = vmatpush.bf16.msrb.mxu3 %v839_v5 }
  0x76   : > { %3871 = vperm.xlu1 %3869, %v3881_v47   ;;  %3897 = vset.pattern.permute.xlu2 %v4486_v1 }
  0x77   : > { %3181 = vmatmul.msk.bf16.vlgmr.msra.gmra.mxu0 %vm684_vm1, %v4526_v34  ;;  %3182 = vmatmul.msk.bf16.vlgmr.msra.gmra.mxu1 %vm684_vm1, %v4526_v34 }
  0x78   : > { %3913 = vset.pattern.permute.xlu0 %v4494_v2  ;;  %3183 = vmatmul.msk.bf16.vlgmr.msra.gmra.mxu2 %vm684_vm1, %v4526_v34 }
  0x79   : > { %1034 = vmatpush.bf16.msra.mxu0 %v841_v13 }
  0x7e   : > { %3891 = vset.pattern.permute.xlu1 %v4494_v2  ;;  %3899 = vperm.xlu2 %3897, %v3898_v53  }
  0x80   : > { %3915 = vperm.xlu0 %3913, %v3914_v54   ;;  %3184 = vmatmul.msk.bf16.vlgmr.msra.gmra.mxu3 %vm684_vm1, %v4526_v34 }
  0x86   : > { %3893 = vperm.xlu1 %3891, %v3886_v48   ;;  %3909 = vperm.xlu2 %3897, %v3914_v54  }
  0x87   : > { %3185 = vmatmul.msk.bf16.vlgmr.msrb.gmra.mxu0 %vm684_vm1, %v4526_v34  ;;  %3186 = vmatmul.msk.bf16.vlgmr.msrb.gmra.mxu1 %vm684_vm1, %v4526_v34 }
  0x88   : > { %3187 = vmatmul.msk.bf16.vlgmr.msrb.gmra.mxu2 %vm684_vm1, %v4526_v34 }
  0x8e   : > { %3904 = vperm.xlu1 %3891, %v3898_v53   ;;  %3925 = vset.pattern.permute.xlu2 %v4494_v2  ;;  %v1164_v2 = vld [vmem:[%s5991_s18] sm:$0xff] }
  0x90   : > { %3188 = vmatmul.msk.bf16.vlgmr.msrb.gmra.mxu3 %vm684_vm1, %v4526_v34 }
  0x96   : > { %3919 = vset.pattern.permute.xlu1 %v4486_v1  ;;  %3927 = vperm.xlu2 %3925, %v3926_v8   ;;  %v843_v1 = vsel %vm688_vm0, %v809_v14, 0 }
  0x97   : > { %1048 = vmatpush.bf16.msra.mxu1 %v843_v1  ;;  %3189 = vmatmul.msk.bf16.vlgmr.msra.gmra.mxu0 %vm684_vm1, %v4526_v34 }
  0x9a   : > { %3190 = vmatmul.msk.bf16.vlgmr.msra.gmra.mxu1 %vm684_vm1, %v4526_v34  ;;  %vm5874_vm1 = vcmask 1046529  }
  0x9e   : > { %3921 = vperm.xlu1 %3919, %v3926_v8   ;;  %3932 = vset.pattern.permute.xlu2 %v4260_v9 }
  0x9f   : > { %1173 = vperm.xlu2 %3932, %v1165_v15  }
  0xa6   : > { %3931 = vset.pattern.permute.xlu1 %v4260_v9 }
  0xa7   : > { %1168 = vperm.xlu1 %3931, %v1164_v2  }
  0xb0   : > { %v3860_v38 = vpop.permute.xlu2 %3859 }
  0xb1   : > { %v4656_v12 = vunpack.i.h.bf16 %v3860_v38 }
  0xb3   : > { %6002 = vst [vmem:[#allocation30_spill] sm:$0xff] %v4656_v12 }
  0xc0   : > { %v4658_v13 = vpop.permute.xlu2 %3877 }
  0xc8   : > { %v4616_v50 = vpop.permute.xlu1 %3853 }
  0xca   : > { %v4606_v39 = vpop.permute.xlu0 %3841 }
  0xd4   : > { %v704_v16 = vpop.f32.mrf.mxu0  ;;  %v718_v17 = vpop.f32.mrf.mxu1 }
  0xd5   : > { %v737_v18 = vpack.c.bf16 %v718_v17, %v704_v16 }
  0xd7   : > { %741 = vst [vmem:[#allocation2] sm:$0xff] %v737_v18  ;;  %v1196_v24 = vunpack.c.h.bf16 %v737_v18  ;;  %v1195_v26 = vunpack.c.l.bf16 %v737_v18  ;;  %v4666_v18 = vunpack.i.l.bf16 %v3860_v38 }
  0xd9   : > { %v1211_v27 = vrot.slane %v1196_v24, 7  ;;  %6004 = vst [vmem:[#allocation32_spill] sm:$0xff] %v4666_v18 }
  0xda   : > { %v3848_v15 = vpop.permute.xlu0 %3847 }
  0xdb   : > { %v732_v19 = vpop.f32.mrf.mxu2  ;;  %v1219_v37 = vsel %vm5873_vm3, %v1195_v26, %v1211_v27  ;;  %v1224_v42 = vsel %vm1223_vm4, %v1195_v26, %v1211_v27  ;;  %v1229_v43 = vsel %vm1228_vm5, %v1195_v26, %v1211_v27  ;;  %v1234_v45 = vsel %vm1233_vm9, %v1195_v26, %v1211_v27 }
  0xdc   : > { %v738_v20 = vpack.c.bf16 %v732_v19, %v732_v19  ;;  %v706_v21 = vpop.f32.mrf.mxu0  ;;  %v720_v22 = vpop.f32.mrf.mxu1  ;;  %v1216_v47 = vsel %vm1215_vm2, %v1195_v26, %v1211_v27  ;;  %v1239_v48 = vsel %vm1238_vm11, %v1195_v26, %v1211_v27  ;;  %v1244_v49 = vsel %vm1243_vm13, %v1195_v26, %v1211_v27 }
  0xdd   : > { %v4596_v23 = vpack.c.bf16 %v720_v22, %v706_v21  ;;  %vm1112_vm3 = vcmask 130048   ;;  %v1249_v54 = vsel %vm1248_vm14, %v1211_v27, %v1195_v26  ;;  %v4669_v19 = vunpack.i.h.bf16 %v4658_v13 }
  0xde   : > { %742 = vst [vmem:[#allocation2 + $0x8] sm:$0xf] %v738_v20  ;;  %v3197_v31 = vld [vmem:[#allocation2] sm:$0xf]  ;;  %v3603_v32 = vld [vmem:[#allocation2 + $0x4] sm:$0xf]  ;;  %v4672_v21 = vunpack.i.h.bf16 %v3848_v15 }
  0xdf   : > { %743 = vst [vmem:[#allocation2 + $0xc] sm:$0xff] %v4596_v23  ;;  %v1199_v20 = vunpack.c.h.bf16 %v4596_v23  ;;  %v4701_v38 = vunpack.c.l.bf16 %v4596_v23 }
  0xe0   : > { %6005 = vst [vmem:[#allocation33_spill] sm:$0xff] %v4669_v19 }
  0xe1   : > { %6006 = vst [vmem:[#allocation34_spill] sm:$0xff] %v4672_v21 }
  0xe3   : > { %v734_v28 = vpop.f32.mrf.mxu2  ;;  %v854_v2 = vpop.f32.mrf.mxu3 }
  0xe4   : > { %v740_v30 = vpack.c.bf16 %v734_v28, %v734_v28  ;;  %v4662_v1 = vadd.f32 %v854_v2, %v756_v55 }
  0xe5   : > { %v1192_v33 = vld [vmem:[#allocation2 + $0x8] sm:$0xf] }
  0xe6   : > { %v1197_v34 = vunpack.c.l.bf16 %v1192_v33  ;;  %744 = vst [vmem:[#allocation2 + $0x14] sm:$0xf] %v740_v30  ;;  %v3604_v35 = vld [vmem:[#allocation2 + $0x8] sm:$0xf0]  ;;  %v3199_v36 = vld [vmem:[#allocation2 + $0xc] sm:$0xf0]  ;;  %v4682_v30 = vpop.permute.xlu1 %3865 }
  0xe7   : > { %v3198_v40 = vor.u32 %v3604_v35, %v3197_v31  ;;  %v3202_v41 = vor.u32 %v3603_v32, %v3199_v36  ;;  %6003 = vst [vmem:[#allocation31_spill] sm:$0xff] %v4662_v1 }
  0xe8   : > { %v1212_v44 = vrot.slane %v1197_v34, 6  ;;  %v4693_v34 = vunpack.i.l.bf16 %v3848_v15 }
  0xe9   : > { %1123 = vmatpush.bf16.msra.mxu2 %v3198_v40  ;;  %1137 = vmatpush.bf16.msra.mxu3 %v3202_v41  ;;  %v4703_v40 = vrot.slane %v1199_v20, 7 }
  0xea   : > { %v1221_v51 = vsel %vm1220_vm6, %v1219_v37, %v1212_v44  ;;  %v1226_v52 = vsel %vm1225_vm7, %v1224_v42, %v1212_v44  ;;  %v1231_v53 = vsel %vm1230_vm8, %v1229_v43, %v1212_v44  ;;  %v1236_v58 = vsel %vm1235_vm10, %v1234_v45, %v1212_v44  ;;  %6007 = vst [vmem:[#allocation35_spill] sm:$0xff] %v4693_v34 }
  0xeb   : > { %v896_v56 = vpop.f32.mrf.mxu2  ;;  %v4623_v57 = vrot.slane %v1221_v51, 1  ;;  %v4627_v59 = vsel %vm688_vm0, %v1216_v47, %v1212_v44  ;;  %v4629_v60 = vrot.slane %v1226_v52, 2  ;;  %v4631_v61 = vrot.slane %v1231_v53, 3 }
  0xec   : > { %5994 = vst [vmem:[#allocation22_spill] sm:$0xff] %v4627_v59  ;;  %v1241_v62 = vsel %vm1240_vm12, %v1239_v48, %v1212_v44  ;;  %3207 = vmatmul.msk.bf16.vlgmr.msra.gmra.mxu2 %vm1112_vm3, %v4611_v46  ;;  %3208 = vmatmul.msk.bf16.vlgmr.msra.gmra.mxu3 %vm1112_vm3, %v4611_v46  ;;  %v4638_v63 = vrot.slane %v1236_v58, 4  ;;  %v1246_v3 = vsel %vm1245_vm15, %v1212_v44, %v1244_v49  ;;  %v1276_v8 = vperm.slane %v4627_v59, 0 }
  0xed   : > { %5993 = vst [vmem:[#allocation21_spill] sm:$0xff] %v4623_v57  ;;  %v4640_v0 = vrot.slane %v1241_v62, 5  ;;  %v1251_v4 = vsel %vm5874_vm1, %v1212_v44, %v1249_v54  ;;  %v4646_v5 = vadd.f32 %v896_v56, %v759_v29  ;;  %v4648_v6 = vrot.slane %v1246_v3, 6  ;;  %v1194_v14 = vld [vmem:[#allocation2 + $0x14] sm:$0xf] }
  0xee   : > { %5995 = vst [vmem:[#allocation23_spill] sm:$0xff] %v4629_v60  ;;  %v4650_v7 = vrot.slane %v1251_v4, 7  ;;  %v1279_v9 = vperm.slane %v4623_v57, 0  ;;  %v1282_v10 = vperm.slane %v4629_v60, 0  ;;  %v1285_v11 = vperm.slane %v4631_v61, 0 }
  0xef   : > { %5996 = vst [vmem:[#allocation24_spill] sm:$0xff] %v4631_v61  ;;  %v1288_v16 = vperm.slane %v4638_v63, 0  ;;  %v1291_v17 = vperm.slane %v4640_v0, 0  ;;  %v1294_v22 = vperm.slane %v4648_v6, 0  ;;  %v1372_v26 = vmul.f32 %v1276_v8, %v4646_v5  ;;  %v3605_v52 = vld [vmem:[#allocation2 + $0x10] sm:$0xf0] }
  0xf0   : > { %5997 = vst [vmem:[#allocation25_spill] sm:$0xff] %v4638_v63  ;;  %v5879_v24 = vperm.slane %v4650_v7, 0  ;;  %v1378_v27 = vmul.f32 %v1279_v9, %v4646_v5  ;;  %v1200_v28 = vunpack.c.l.bf16 %v1194_v14  ;;  %v1384_v31 = vmul.f32 %v1282_v10, %v4646_v5  ;;  %v3205_v3 = vld [vmem:[#allocation2 + $0x8] sm:$0xf] }
  0xf1   : > { %5998 = vst [vmem:[#allocation26_spill] sm:$0xff] %v4640_v0  ;;  %v1390_v32 = vmul.f32 %v1285_v11, %v4646_v5  ;;  %v1396_v33 = vmul.f32 %v1288_v16, %v4646_v5  ;;  %v1402_v35 = vmul.f32 %v1291_v17, %v4646_v5  ;;  %v1468_v36 = vadd.f32 %v1372_v26, %v4662_v1 }
  0xf2   : > { %5999 = vst [vmem:[#allocation27_spill] sm:$0xff] %v4646_v5  ;;  %v1474_v37 = vadd.f32 %v1378_v27, %v4662_v1  ;;  %v1480_v41 = vadd.f32 %v1384_v31, %v4662_v1  ;;  %v1408_v43 = vmul.f32 %v1294_v22, %v4646_v5  ;;  %v1414_v44 = vmul.f32 %v5879_v24, %v4646_v5  ;;  %v3883_v27 = vpop.permute.xlu2 %3882  ;;  %v868_v24 = vpop.f32.mrf.mxu0 }
  0xf3   : > { %6000 = vst [vmem:[#allocation28_spill] sm:$0xff] %v4648_v6  ;;  %v1486_v42 = vadd.f32 %v1390_v32, %v4662_v1  ;;  %v1564_v45 = vand.u32 2147483647, %v1468_v36  ;;  %v4714_v48 = vunpack.i.l.bf16 %v4616_v50  ;;  %v4716_v23 = vrot.slane %v1200_v28, 6 }
  0xf4   : > { %6001 = vst [vmem:[#allocation29_spill] sm:$0xff] %v4650_v7  ;;  %v1570_v47 = vand.u32 2147483647, %v1474_v37  ;;  %v1492_v49 = vadd.f32 %v1396_v33, %v4662_v1  ;;  %v1576_v51 = vand.u32 2147483647, %v1480_v41  ;;  %v4720_v53 = vunpack.i.h.bf16 %v4616_v50 }
  0xf5   : > { %6008 = vst [vmem:[#allocation36_spill] sm:$0xff] %v4714_v48  ;;  %v1498_v54 = vadd.f32 %v1402_v35, %v4662_v1  ;;  %v1582_v56 = vand.u32 2147483647, %v1486_v42  ;;  %v1868_v58 = vmul.f32 %v4693_v34, %v1564_v45  ;;  %v1253_v4 = vsel %vm1215_vm2, %v4701_v38, %v4703_v40  ;;  %v3872_v42 = vpop.permute.xlu1 %3871 }
  0xf6   : > { %6009 = vst [vmem:[#allocation37_spill] sm:$0xff] %v4720_v53  ;;  %v1874_v62 = vmul.f32 %v4672_v21, %v1570_v47  ;;  %vm6010_vm1 = vcmask 1041409   ;;  %v1258_v50 = vsel %vm1223_vm4, %v4701_v38, %v4703_v40  ;;  %v1504_v14 = vadd.f32 %v1408_v43, %v4662_v1 }
  0xf7   : > { %v1255_v2 = vsel %vm6010_vm1, %v4701_v38, %v4703_v40  ;;  %v1510_v15 = vadd.f32 %v1414_v44, %v4662_v1  ;;  %v3206_v20 = vor.u32 %v3605_v52, %v3205_v3  ;;  %v1261_v26 = vsel %vm1228_vm5, %v4701_v38, %v4703_v40 }
  0xf8   : > { %v1588_v28 = vand.u32 2147483647, %v1492_v49  ;;  %v1880_v31 = vmul.f32 %v4714_v48, %v1576_v51  ;;  %v1964_v32 = vadd.f32 %v1874_v62, %v1868_v58  ;;  %v4742_v33 = vsel %vm688_vm0, %v1253_v4, %v4716_v23 }
  0xf9   : > { %6011 = vst [vmem:[#allocation38_spill] sm:$0xff] %v4742_v33  ;;  %v1594_v35 = vand.u32 2147483647, %v1498_v54  ;;  %v1886_v36 = vmul.f32 %v4720_v53, %v1582_v56  ;;  %1151 = vmatpush.bf16.msrb.mxu0 %v3206_v20  ;;  %v1256_v37 = vsel %vm1220_vm6, %v1255_v2, %v4716_v23  ;;  %v1259_v41 = vsel %vm1225_vm7, %v1258_v50, %v4716_v23 }
  0xfa   : > { %v1965_v43 = vadd.f32 %v1964_v32, %v1880_v31  ;;  %v4749_v44 = vrot.slane %v1256_v37, 1  ;;  %v4751_v45 = vrot.slane %v1259_v41, 2  ;;  %v1262_v47 = vsel %vm1230_vm8, %v1261_v26, %v4716_v23  ;;  %v3888_v26 = vpop.permute.xlu0 %3887 }
  0xfb   : > { %v4755_v49 = vunpack.i.l.bf16 %v3872_v42  ;;  %v1600_v51 = vand.u32 2147483647, %v1504_v14  ;;  %v4757_v52 = vrot.slane %v1262_v47, 3  ;;  %v5878_v54 = vperm.slane %v4742_v33, 0 }
  0xfc   : > { %6012 = vst [vmem:[#allocation39_spill] sm:$0xff] %v4749_v44  ;;  %v4761_v56 = vunpack.i.l.bf16 %v4658_v13  ;;  %v1892_v58 = vmul.f32 %v4666_v18, %v1588_v28  ;;  %v1966_v62 = vadd.f32 %v1965_v43, %v1886_v36  ;;  %v5876_v3 = vperm.slane %v4749_v44, 0  ;;  %3209 = vmatmul.msk.bf16.vlgmr.msrb.gmra.mxu0 %vm1112_vm3, %v4611_v46  ;;  %v898_v46 = vpop.f32.mrf.mxu2 }
  0xfd   : > { %6013 = vst [vmem:[#allocation40_spill] sm:$0xff] %v4751_v45  ;;  %v4767_v4 = vunpack.i.h.bf16 %v3872_v42  ;;  %v1606_v2 = vand.u32 2147483647, %v1510_v15  ;;  %v1898_v50 = vmul.f32 %v4656_v12, %v1594_v35  ;;  %v5875_v14 = vperm.slane %v4751_v45, 0 }
  0xfe   : > { %6014 = vst [vmem:[#allocation41_spill] sm:$0xff] %v4755_v49  ;;  %v1967_v20 = vadd.f32 %v1966_v62, %v1892_v58  ;;  %v5877_v13 = vperm.slane %v4757_v52, 0  ;;  %v1420_v28 = vmul.f32 %v5878_v54, %v4646_v5  ;;  %v1426_v31 = vmul.f32 %v5876_v3, %v4646_v5 }
  0xff   : > { %6015 = vst [vmem:[#allocation42_spill] sm:$0xff] %v4757_v52  ;;  %v4778_v32 = vunpack.i.h.bf16 %v3883_v27  ;;  %v1904_v15 = vmul.f32 %v4755_v49, %v1600_v51  ;;  %v4781_v35 = vunpack.i.l.bf16 %v3888_v26  ;;  %v1432_v36 = vmul.f32 %v5875_v14, %v4646_v5  ;;  %v3900_v14 = vpop.permute.xlu2 %3899 }
 0x100   : > { %6016 = vst [vmem:[#allocation43_spill] sm:$0xff] %v4761_v56  ;;  %v1968_v37 = vadd.f32 %v1967_v20, %v1898_v50  ;;  %v1438_v41 = vmul.f32 %v5877_v13, %v4646_v5  ;;  %v1516_v42 = vadd.f32 %v1420_v28, %v4662_v1  ;;  %v1522_v43 = vadd.f32 %v1426_v31, %v4662_v1  ;;  %v856_v31 = vpop.f32.mrf.mxu3 }
 0x101   : > { %6017 = vst [vmem:[#allocation44_spill] sm:$0xff] %v4767_v4  ;;  %v1910_v47 = vmul.f32 %v4767_v4, %v1606_v2  ;;  %v4792_v58 = vunpack.i.h.bf16 %v3888_v26  ;;  %v1528_v51 = vadd.f32 %v1432_v36, %v4662_v1  ;;  %v4797_v62 = vadd.f32 %v898_v46, %v759_v29 }
 0x102   : > { %6018 = vst [vmem:[#allocation45_spill] sm:$0xff] %v4778_v32  ;;  %v1969_v50 = vadd.f32 %v1968_v37, %v1904_v15  ;;  %v1534_v20 = vadd.f32 %v1438_v41, %v4662_v1  ;;  %v1612_v3 = vand.u32 2147483647, %v1516_v42  ;;  %v1618_v13 = vand.u32 2147483647, %v1522_v43 }
 0x103   : > { %6019 = vst [vmem:[#allocation46_spill] sm:$0xff] %v4781_v35  ;;  %v4800_v54 = vunpack.i.l.bf16 %v3883_v27  ;;  %v4803_v28 = vunpack.i.h.bf16 %v4606_v39  ;;  %v4805_v2 = vunpack.i.h.bf16 %v3900_v14  ;;  %v4807_v26 = vunpack.i.l.bf16 %v3900_v14 }
 0x104   : > { %6020 = vst [vmem:[#allocation47_spill] sm:$0xff] %v4792_v58  ;;  %v4811_v29 = vadd.f32 %v856_v31, %v756_v55  ;;  %v1970_v46 = vadd.f32 %v1969_v50, %v1910_v47  ;;  %v1624_v15 = vand.u32 2147483647, %v1528_v51  ;;  %v1916_v36 = vmul.f32 %v4781_v35, %v1612_v3 }
 0x105   : > { %6021 = vst [vmem:[#allocation48_spill] sm:$0xff] %v4797_v62  ;;  %v1264_v27 = vsel %vm1233_vm9, %v4701_v38, %v4703_v40  ;;  %v1630_v37 = vand.u32 2147483647, %v1534_v20  ;;  %v1375_v41 = vmul.f32 %v1276_v8, %v4797_v62  ;;  %v1381_v14 = vmul.f32 %v1279_v9, %v4797_v62 }
 0x106   : > { %6022 = vst [vmem:[#allocation49_spill] sm:$0xff] %v4800_v54  ;;  %v1922_v55 = vmul.f32 %v4792_v58, %v1618_v13  ;;  %v1971_v42 = vadd.f32 %v1970_v46, %v1916_v36  ;;  %v1387_v3 = vmul.f32 %v1282_v10, %v4797_v62  ;;  %v1393_v43 = vmul.f32 %v1285_v11, %v4797_v62 }
 0x107   : > { %6023 = vst [vmem:[#allocation50_spill] sm:$0xff] %v4803_v28  ;;  %v4831_v47 = vunpack.i.l.bf16 %v4606_v39  ;;  %v5880_v8 = vperm.slane %v4602_v25, 1  ;;  %v1265_v51 = vsel %vm1235_vm10, %v1264_v27, %v4716_v23  ;;  %v1267_v9 = vsel %vm1238_vm11, %v4701_v38, %v4703_v40 }
 0x108   : > { %6024 = vst [vmem:[#allocation51_spill] sm:$0xff] %v4805_v2  ;;  %v1928_v13 = vmul.f32 %v4807_v26, %v1624_v15  ;;  %v1972_v50 = vadd.f32 %v1971_v42, %v1922_v55  ;;  %v1399_v10 = vmul.f32 %v1288_v16, %v4797_v62  ;;  %v1471_v11 = vadd.f32 %v1375_v41, %v4811_v29 }
 0x109   : > { %6025 = vst [vmem:[#allocation52_spill] sm:$0xff] %v4807_v26  ;;  %v4845_v39 = vunpack.i.h.bf16 %v4682_v30  ;;  %v1268_v20 = vsel %vm1240_vm12, %v1267_v9, %v4716_v23  ;;  %v1477_v31 = vadd.f32 %v1381_v14, %v4811_v29  ;;  %v1483_v46 = vadd.f32 %v1387_v3, %v4811_v29 }
 0x10a   : > { %6026 = vst [vmem:[#allocation53_spill] sm:$0xff] %v4811_v29  ;;  %v1934_v36 = vmul.f32 %v4805_v2, %v1630_v37  ;;  %v1973_v15 = vadd.f32 %v1972_v50, %v1928_v13  ;;  %v1405_v27 = vmul.f32 %v1291_v17, %v4797_v62  ;;  %v1489_v16 = vadd.f32 %v1393_v43, %v4811_v29  ;;  %v3910_v50 = vpop.permute.xlu2 %3909 }
 0x10b   : > { %6027 = vst [vmem:[#allocation54_spill] sm:$0xff] %v4831_v47  ;;  %v4857_v41 = vunpack.i.l.bf16 %v4682_v30  ;;  %v4859_v55 = vrot.slane %v1265_v51, 4  ;;  %v1567_v42 = vand.u32 2147483647, %v1471_v11  ;;  %v1573_v9 = vand.u32 2147483647, %v1477_v31 }
 0x10c   : > { %6028 = vst [vmem:[#allocation55_spill] sm:$0xff] %v4845_v39  ;;  %v4861_v14 = vadd.f32 %v1973_v15, %v1934_v36  ;;  %v1411_v37 = vmul.f32 %v1294_v22, %v4797_v62  ;;  %v1495_v3 = vadd.f32 %v1399_v10, %v4811_v29  ;;  %v1579_v13 = vand.u32 2147483647, %v1483_v46  ;;  %v4885_v15 = vpop.f32.mrf.mxu3 }
 0x10d   : > { %6029 = vst [vmem:[#allocation56_spill] sm:$0xff] %v4857_v41  ;;  %v4869_v17 = vadd.f32 %v868_v24, %v5880_v8  ;;  %v4871_v30 = vrot.slane %v1268_v20, 5  ;;  %v1871_v51 = vmul.f32 %v4831_v47, %v1567_v42  ;;  %v6033_v11 = vperm.slane %v4650_v7, 0 }
 0x10e   : > { %6030 = vst [vmem:[#allocation57_spill] sm:$0xff] %v4859_v55  ;;  %v1501_v22 = vadd.f32 %v1405_v27, %v4811_v29  ;;  %v1585_v36 = vand.u32 2147483647, %v1489_v16  ;;  %v1877_v10 = vmul.f32 %v4803_v28, %v1573_v9  ;;  %v4880_v46 = vunpack.i.h.bf16 %v3910_v50 }
 0x10f   : > { %6031 = vst [vmem:[#allocation58_spill] sm:$0xff] %v4861_v14  ;;  %v1417_v31 = vmul.f32 %v6033_v11, %v4797_v62  ;;  %v4882_v24 = vunpack.i.l.bf16 %v3910_v50  ;;  %v1312_v20 = vperm.slane %v4859_v55, 0  ;;  %v6036_v42 = vperm.slane %v4742_v33, 0 }
 0x110   : > { %6032 = vst [vmem:[#allocation59_spill] sm:$0xff] %v4871_v30  ;;  %v1507_v8 = vadd.f32 %v1411_v37, %v4811_v29  ;;  %v1591_v11 = vand.u32 2147483647, %v1495_v3  ;;  %v1883_v27 = vmul.f32 %v4857_v41, %v1579_v13  ;;  %v2009_v16 = vadd.f32 %v1877_v10, %v1871_v51  ;;  %v870_v51 = vpop.f32.mrf.mxu0 }
 0x111   : > { %6034 = vst [vmem:[#allocation60_spill] sm:$0xff] %v4880_v46  ;;  %v1423_v43 = vmul.f32 %v6036_v42, %v4797_v62  ;;  %v1315_v2 = vperm.slane %v4871_v30, 0  ;;  %v6037_v50 = vperm.slane %v4749_v44, 0  ;;  %v1270_v58 = vsel %vm1243_vm13, %v4701_v38, %v4703_v40 }
 0x112   : > { %6035 = vst [vmem:[#allocation61_spill] sm:$0xff] %v4882_v24  ;;  %v1513_v42 = vadd.f32 %v1417_v31, %v4811_v29  ;;  %v1597_v35 = vand.u32 2147483647, %v1501_v22  ;;  %v1889_v37 = vmul.f32 %v4845_v39, %v1585_v36  ;;  %v2010_v3 = vadd.f32 %v2009_v16, %v1883_v27 }
 0x113   : > { %v1429_v26 = vmul.f32 %v6037_v50, %v4797_v62  ;;  %v1444_v9 = vmul.f32 %v1312_v20, %v4646_v5  ;;  %v1519_v50 = vadd.f32 %v1423_v43, %v4811_v29  ;;  %v1603_v4 = vand.u32 2147483647, %v1507_v8 }
 0x114   : > { %v1895_v49 = vmul.f32 %v4761_v56, %v1591_v11  ;;  %v2011_v12 = vadd.f32 %v2010_v3, %v1889_v37  ;;  %v1450_v36 = vmul.f32 %v1315_v2, %v4646_v5  ;;  %v1609_v10 = vand.u32 2147483647, %v1513_v42  ;;  %v3894_v37 = vpop.permute.xlu1 %3893 }
 0x115   : > { %v1525_v27 = vadd.f32 %v1429_v26, %v4811_v29  ;;  %v1901_v13 = vmul.f32 %v4669_v19, %v1597_v35  ;;  %v1540_v11 = vadd.f32 %v1444_v9, %v4662_v1  ;;  %v1271_v3 = vsel %vm1245_vm15, %v4716_v23, %v1270_v58  ;;  %v912_v9 = vpop.f32.mrf.mxu3 }
 0x116   : > { %v2012_v18 = vadd.f32 %v2011_v12, %v1895_v49  ;;  %v4919_v22 = vunpack.i.l.bf16 %v3894_v37  ;;  %v1615_v26 = vand.u32 2147483647, %v1519_v50  ;;  %v1907_v16 = vmul.f32 %v4800_v54, %v1603_v4 }
 0x117   : > { %v1546_v42 = vadd.f32 %v1450_v36, %v4662_v1  ;;  %v4923_v35 = vunpack.i.h.bf16 %v3894_v37  ;;  %v1621_v12 = vand.u32 2147483647, %v1525_v27  ;;  %v1273_v49 = vsel %vm1248_vm14, %v4703_v40, %v4701_v38 }
 0x118   : > { %6038 = vst [vmem:[#allocation62_spill] sm:$0xff] %v4919_v22  ;;  %v2013_v31 = vadd.f32 %v2012_v18, %v1901_v13  ;;  %v1913_v43 = vmul.f32 %v4778_v32, %v1609_v10  ;;  %v4929_v58 = vrot.slane %v1271_v3, 6  ;;  %vm6040_vm0 = vcmask 1046529  }
 0x119   : > { %6039 = vst [vmem:[#allocation63_spill] sm:$0xff] %v4923_v35  ;;  %v1274_v50 = vsel %vm6040_vm0, %v4716_v23, %v1273_v49  ;;  %v6041_v13 = vperm.slane %v4602_v25, 1  ;;  %v1636_v38 = vand.u32 2147483647, %v1540_v11  ;;  %v1919_v40 = vmul.f32 %v4919_v22, %v1615_v26 }
 0x11a   : > { %v2014_v8 = vadd.f32 %v2013_v31, %v1907_v16  ;;  %v6042_v31 = vperm.slane %v4602_v25, 4  ;;  %v1642_v37 = vand.u32 2147483647, %v1546_v42  ;;  %v4946_v3 = vrot.slane %v1274_v50, 7 }
 0x11b   : > { %v4937_v36 = vadd.f32 %v870_v51, %v6041_v13  ;;  %v1447_v49 = vmul.f32 %v1312_v20, %v4797_v62  ;;  %v1925_v51 = vmul.f32 %v4923_v35, %v1621_v12  ;;  %v5898_v4 = vperm.slane %v4929_v58, 0 }
 0x11c   : > { %v2015_v10 = vadd.f32 %v2014_v8, %v1913_v43  ;;  %v4943_v16 = vadd.f32 %v912_v9, %v6042_v31  ;;  %6043 = vst [vmem:[#allocation64_spill] sm:$0xff] %v4946_v3  ;;  %v5897_v11 = vperm.slane %v4623_v57, 1  ;;  %v6044_v43 = vmov %v6042_v31  ;;  %v3928_v9 = vpop.permute.xlu2 %3927 }
 0x11d   : > { %v4956_v26 = vadd.f32 %v4885_v15, %v6044_v43  ;;  %v5903_v42 = vperm.slane %v4602_v25, 5  ;;  %v1453_v50 = vmul.f32 %v1315_v2, %v4797_v62  ;;  %v4961_v20 = vmul.f32 %v4882_v24, %v1636_v38  ;;  %v3905_v38 = vpop.permute.xlu1 %3904 }
 0x11e   : > { %v2016_v13 = vadd.f32 %v2015_v10, %v1919_v40  ;;  %v924_v40 = vpop.f32.mrf.mxu0  ;;  %v3916_v10 = vpop.permute.xlu0 %3915  ;;  %v6047_v31 = vperm.slane %v4627_v59, 1  ;;  %v1382_v15 = vmul.f32 %v5897_v11, %v4943_v16  ;;  %v4972_v43 = vmul.f32 %v4880_v46, %v1642_v37 }
 0x11f   : > { %6045 = vst [vmem:[#allocation65_spill] sm:$0xff] %v4956_v26  ;;  %v4979_v23 = vunpack.i.l.bf16 %v3928_v9  ;;  %v5906_v27 = vperm.slane %v4629_v60, 1  ;;  %v4987_v37 = vadd.f32 %v924_v40, %v5903_v42  ;;  %v882_v11 = vpop.f32.mrf.mxu1  ;;  %v4989_v18 = vunpack.i.h.bf16 %v3916_v10 }
 0x120   : > { %6046 = vst [vmem:[#allocation66_spill] sm:$0xff] %v4961_v20  ;;  %v4963_v12 = vadd.f32 %v2016_v13, %v1925_v51  ;;  %v1376_v8 = vmul.f32 %v6047_v31, %v4943_v16  ;;  %v1543_v51 = vadd.f32 %v1447_v49, %v4811_v29  ;;  %v4977_v13 = vunpack.i.h.bf16 %v3928_v9 }
 0x121   : > { %6048 = vst [vmem:[#allocation67_spill] sm:$0xff] %v4972_v43  ;;  %v1459_v31 = vmul.f32 %v5898_v4, %v4797_v62  ;;  %v1549_v2 = vadd.f32 %v1453_v50, %v4811_v29  ;;  %v1388_v9 = vmul.f32 %v5906_v27, %v4943_v16  ;;  %v6053_v4 = vperm.slane %v4751_v45, 0 }
 0x122   : > { %6049 = vst [vmem:[#allocation68_spill] sm:$0xff] %v4977_v13  ;;  %v1472_v24 = vadd.f32 %v1376_v8, %v4937_v36  ;;  %v1478_v40 = vadd.f32 %v1382_v15, %v4937_v36  ;;  %v6054_v42 = vperm.slane %v4946_v3, 0  ;;  %v5004_v50 = vunpack.i.l.bf16 %v3916_v10 }
 0x123   : > { %6050 = vst [vmem:[#allocation69_spill] sm:$0xff] %v4979_v23  ;;  %v1435_v46 = vmul.f32 %v6053_v4, %v4797_v62  ;;  %v1639_v49 = vand.u32 2147483647, %v1543_v51  ;;  %v5916_v53 = vperm.slane %v4638_v63, 1  ;;  %v6056_v14 = vperm.slane %v4602_v25, 2 }
 0x124   : > { %6051 = vst [vmem:[#allocation70_spill] sm:$0xff] %v4987_v37  ;;  %v1465_v43 = vmul.f32 %v6054_v42, %v4797_v62  ;;  %v1555_v20 = vadd.f32 %v1459_v31, %v4811_v29  ;;  %v6058_v4 = vperm.slane %v4631_v61, 1  ;;  %v6059_v15 = vperm.slane %v4757_v52, 0 }
 0x125   : > { %6052 = vst [vmem:[#allocation71_spill] sm:$0xff] %v4989_v18  ;;  %v5009_v27 = vadd.f32 %v882_v11, %v6056_v14  ;;  %v1645_v42 = vand.u32 2147483647, %v1549_v2  ;;  %v5018_v10 = vunpack.i.h.bf16 %v3905_v38  ;;  %v1400_v14 = vmul.f32 %v5916_v53, %v4943_v16 }
 0x126   : > { %6055 = vst [vmem:[#allocation72_spill] sm:$0xff] %v5004_v50  ;;  %v1394_v8 = vmul.f32 %v6058_v4, %v4943_v16  ;;  %v1441_v48 = vmul.f32 %v6059_v15, %v4797_v62  ;;  %v1484_v11 = vadd.f32 %v1388_v9, %v4937_v36  ;;  %v1531_v31 = vadd.f32 %v1435_v46, %v4811_v29 }
 0x127   : > { %6057 = vst [vmem:[#allocation73_spill] sm:$0xff] %v5009_v27  ;;  %v1568_v21 = vand.u32 2147483647, %v1472_v24  ;;  %v1574_v34 = vand.u32 2147483647, %v1478_v40  ;;  %v5027_v4 = vadd.f32 %v1465_v43, %v4811_v29  ;;  %v1943_v15 = vmul.f32 %v5004_v50, %v1639_v49 }
 0x128   : > { %6060 = vst [vmem:[#allocation74_spill] sm:$0xff] %v5018_v10  ;;  %v5030_v2 = vunpack.i.l.bf16 %v3905_v38  ;;  %v1651_v51 = vand.u32 2147483647, %v1555_v20  ;;  %v6062_v1 = vperm.slane %v4640_v0, 1  ;;  %v1490_v9 = vadd.f32 %v1394_v8, %v4937_v36 }
 0x129   : > { %v1537_v46 = vadd.f32 %v1441_v48, %v4811_v29  ;;  %v5039_v24 = vmul.f32 %v4989_v18, %v1645_v42  ;;  %v1307_v43 = vperm.slane %v4751_v45, 1  ;;  %v6064_v38 = vperm.slane %v4648_v6, 1 }
 0x12a   : > { %6061 = vst [vmem:[#allocation75_spill] sm:$0xff] %v5030_v2  ;;  %v1406_v53 = vmul.f32 %v6062_v1, %v4943_v16  ;;  %v1496_v40 = vadd.f32 %v1400_v14, %v4937_v36  ;;  %v1580_v20 = vand.u32 2147483647, %v1484_v11  ;;  %v1627_v62 = vand.u32 2147483647, %v1531_v31 }
 0x12b   : > { %6063 = vst [vmem:[#allocation76_spill] sm:$0xff] %v5039_v24  ;;  %v1412_v49 = vmul.f32 %v6064_v38, %v4943_v16  ;;  %v1872_v27 = vmul.f32 %v4831_v47, %v1568_v21  ;;  %v1878_v1 = vmul.f32 %v4803_v28, %v1574_v34  ;;  %v1310_v8 = vperm.slane %v4757_v52, 1 }
 0x12c   : > { %v6065_v42 = vperm.slane %v4650_v7, 1  ;;  %v6066_v24 = vperm.slane %v4742_v33, 1  ;;  %v1502_v14 = vadd.f32 %v1406_v53, %v4937_v36  ;;  %v1586_v11 = vand.u32 2147483647, %v1490_v9 }
 0x12d   : > { %v1633_v31 = vand.u32 2147483647, %v1537_v46  ;;  %v1931_v21 = vmul.f32 %v5030_v2, %v1627_v62  ;;  %v6067_v34 = vperm.slane %v4749_v44, 1  ;;  %v1436_v48 = vmul.f32 %v1307_v43, %v4943_v16 }
 0x12e   : > { %v1418_v18 = vmul.f32 %v6065_v42, %v4943_v16  ;;  %v1424_v38 = vmul.f32 %v6066_v24, %v4943_v16  ;;  %v1508_v47 = vadd.f32 %v1412_v49, %v4937_v36  ;;  %v1592_v29 = vand.u32 2147483647, %v1496_v40 }
 0x12f   : > { %v1430_v28 = vmul.f32 %v6067_v34, %v4943_v16  ;;  %v1884_v42 = vmul.f32 %v4857_v41, %v1580_v20  ;;  %v1937_v5 = vmul.f32 %v5018_v10, %v1633_v31  ;;  %v2018_v24 = vadd.f32 %v4963_v12, %v1931_v21 }
 0x130   : > { %v2024_v53 = vadd.f32 %v1878_v1, %v1872_v27  ;;  %v1433_v9 = vmul.f32 %v1307_v43, %v4956_v26  ;;  %v1442_v62 = vmul.f32 %v1310_v8, %v4943_v16  ;;  %v6068_v46 = vperm.slane %v4859_v55, 1 }
 0x131   : > { %v1514_v33 = vadd.f32 %v1418_v18, %v4937_v36  ;;  %v1598_v7 = vand.u32 2147483647, %v1502_v14  ;;  %v1890_v49 = vmul.f32 %v4845_v39, %v1586_v11  ;;  %v2019_v40 = vadd.f32 %v2018_v24, %v1937_v5 }
 0x132   : > { %v1448_v34 = vmul.f32 %v6068_v46, %v4943_v16  ;;  %v2025_v20 = vadd.f32 %v2024_v53, %v1884_v42  ;;  %v1439_v31 = vmul.f32 %v1310_v8, %v4956_v26  ;;  %v1520_v12 = vadd.f32 %v1424_v38, %v4937_v36 }
 0x133   : > { %v1526_v27 = vadd.f32 %v1430_v28, %v4937_v36  ;;  %v1532_v43 = vadd.f32 %v1436_v48, %v4937_v36  ;;  %v1604_v1 = vand.u32 2147483647, %v1508_v47  ;;  %v1896_v21 = vmul.f32 %v4761_v56, %v1592_v29 }
 0x134   : > { %v5078_v41 = vadd.f32 %v2019_v40, %v1943_v15  ;;  %v2026_v46 = vadd.f32 %v2025_v20, %v1890_v49  ;;  %v1657_v18 = vand.u32 2147483647, %v5027_v4  ;;  %v5082_v14 = vmul.f32 %v4979_v23, %v1651_v51  ;;  %v6110_v23 = vld [vmem:[#allocation35_spill] sm:$0xff] }
 0x135   : > { %v1538_v5 = vadd.f32 %v1442_v62, %v4937_v36  ;;  %v1544_v8 = vadd.f32 %v1448_v34, %v4937_v36  ;;  %v6071_v28 = vperm.slane %v4623_v57, 1  ;;  %v1610_v47 = vand.u32 2147483647, %v1514_v33  ;;  %v926_v34 = vpop.f32.mrf.mxu0 }
 0x136   : > { %6069 = vst [vmem:[#allocation77_spill] sm:$0xff] %v5078_v41  ;;  %v1902_v29 = vmul.f32 %v4669_v19, %v1598_v7  ;;  %v2027_v15 = vadd.f32 %v2026_v46, %v1896_v21  ;;  %v6072_v48 = vperm.slane %v4629_v60, 1  ;;  %v5098_v51 = vadd.f32 %v1433_v9, %v4869_v17  ;;  %v5123_v46 = vpop.permute.xlu1 %3921  ;;  %v3296_v41 = vld [vmem:[#allocation12 + $0xa8] sm:$0xf] }
 0x137   : > { %6070 = vst [vmem:[#allocation78_spill] sm:$0xff] %v5082_v14  ;;  %v5089_v38 = vmul.f32 %v6071_v28, %v4956_v26  ;;  %v5101_v11 = vadd.f32 %v1439_v31, %v4869_v17  ;;  %v1616_v42 = vand.u32 2147483647, %v1520_v12  ;;  %v1622_v24 = vand.u32 2147483647, %v1526_v27 }
 0x138   : > { %v5095_v4 = vmul.f32 %v6072_v48, %v4956_v26  ;;  %v1628_v53 = vand.u32 2147483647, %v1532_v43  ;;  %v1908_v62 = vmul.f32 %v4800_v54, %v1604_v1  ;;  %v2028_v33 = vadd.f32 %v2027_v15, %v1902_v29 }
 0x139   : > { %v5105_v7 = vmul.f32 %v4977_v13, %v1657_v18  ;;  %v6074_v49 = vperm.slane %v4631_v61, 1  ;;  %v1634_v9 = vand.u32 2147483647, %v1538_v5  ;;  %v1640_v20 = vand.u32 2147483647, %v1544_v8 }
 0x13a   : > { %v6075_v31 = vperm.slane %v4638_v63, 1  ;;  %v6076_v27 = vperm.slane %v4640_v0, 1  ;;  %v1914_v1 = vmul.f32 %v4778_v32, %v1610_v47  ;;  %v2029_v21 = vadd.f32 %v2028_v33, %v1908_v62 }
 0x13b   : > { %6073 = vst [vmem:[#allocation79_spill] sm:$0xff] %v5105_v7  ;;  %v5110_v40 = vmul.f32 %v6074_v49, %v4956_v26  ;;  %v6077_v18 = vperm.slane %v4749_v44, 1  ;;  %v6078_v29 = vperm.slane %v4602_v25, 5  ;;  %v1920_v48 = vmul.f32 %v4919_v22, %v1616_v42  ;;  %v6118_v7 = vld [vmem:[#allocation58_spill] sm:$0xff] }
 0x13c   : > { %v5115_v12 = vmul.f32 %v6075_v31, %v4956_v26  ;;  %v5120_v43 = vmul.f32 %v6076_v27, %v4956_v26  ;;  %v1926_v47 = vmul.f32 %v4923_v35, %v1622_v24  ;;  %v1932_v62 = vmul.f32 %v5030_v2, %v1628_v53 }
 0x13d   : > { %v5128_v5 = vmul.f32 %v6077_v18, %v4956_v26  ;;  %v5134_v15 = vadd.f32 %v926_v34, %v6078_v29  ;;  %v2030_v33 = vadd.f32 %v2029_v21, %v1914_v1  ;;  %v1938_v49 = vmul.f32 %v5018_v10, %v1634_v9  ;;  %v6089_v10 = vld [vmem:[#allocation29_spill] sm:$0xff] }
 0x13e   : > { %v1944_v31 = vmul.f32 %v5004_v50, %v1640_v20  ;;  %v5142_v27 = vunpack.i.l.bf16 %v5123_v46  ;;  %v6081_v8 = vperm.slane %v4627_v59, 2  ;;  %v6082_v24 = vperm.slane %v4623_v57, 2 }
 0x13f   : > { %6079 = vst [vmem:[#allocation80_spill] sm:$0xff] %v5134_v15  ;;  %v2031_v28 = vadd.f32 %v2030_v33, %v1920_v48  ;;  %v6080_v48 = vperm.slane %v4627_v59, 1  ;;  %v6083_v9 = vperm.slane %v4629_v60, 2  ;;  %v6085_v21 = vperm.slane %v4638_v63, 2  ;;  %v6109_v60 = vld [vmem:[#allocation31_spill] sm:$0xff]  ;;  %v5332_v59 = vpop.f32.mrf.mxu0  ;;  %v6116_v15 = vld [vmem:[#allocation36_spill] sm:$0xff] }
 0x140   : > { %v1374_v29 = vmul.f32 %v6081_v8, %v4987_v37  ;;  %v1380_v42 = vmul.f32 %v6082_v24, %v4987_v37  ;;  %v6086_v8 = vperm.slane %v4640_v0, 2  ;;  %v6087_v24 = vperm.slane %v4648_v6, 1 }
 0x141   : > { %v2032_v1 = vadd.f32 %v2031_v28, %v1926_v47  ;;  %v1373_v33 = vmul.f32 %v6080_v48, %v4956_v26  ;;  %v1386_v53 = vmul.f32 %v6083_v9, %v4987_v37  ;;  %v6084_v28 = vperm.slane %v4631_v61, 2 }
 0x142   : > { %v1398_v48 = vmul.f32 %v6085_v21, %v4987_v37  ;;  %v1404_v34 = vmul.f32 %v6086_v8, %v4987_v37  ;;  %v1409_v18 = vmul.f32 %v6087_v24, %v4956_v26  ;;  %v6088_v9 = vperm.slane %v4648_v6, 2 }
 0x143   : > { %v1392_v47 = vmul.f32 %v6084_v28, %v4987_v37  ;;  %v2033_v20 = vadd.f32 %v2032_v1, %v1932_v62  ;;  %v6090_v28 = vperm.slane %v6089_v10, 1  ;;  %v6091_v21 = vperm.slane %v6089_v10, 2  ;;  %v6092_v1 = vld [vmem:[#allocation38_spill] sm:$0xff] }
 0x144   : > { %v1410_v50 = vmul.f32 %v6088_v9, %v4987_v37  ;;  %v6093_v35 = vperm.slane %v6092_v1, 1  ;;  %v6094_v22 = vperm.slane %v6092_v1, 2  ;;  %v6095_v9 = vperm.slane %v4749_v44, 2 }
 0x145   : > { %v1415_v2 = vmul.f32 %v6090_v28, %v4956_v26  ;;  %v1416_v62 = vmul.f32 %v6091_v21, %v4987_v37  ;;  %v2034_v32 = vadd.f32 %v2033_v20, %v1938_v49  ;;  %v6096_v28 = vperm.slane %v4751_v45, 2 }
 0x146   : > { %v1421_v8 = vmul.f32 %v6093_v35, %v4956_v26  ;;  %v1422_v24 = vmul.f32 %v6094_v22, %v4987_v37  ;;  %v1428_v54 = vmul.f32 %v6095_v9, %v4987_v37  ;;  %v6097_v21 = vperm.slane %v4757_v52, 2  ;;  %v6103_v52 = vld [vmem:[#allocation27_spill] sm:$0xff] }
 0x147   : > { %v1434_v19 = vmul.f32 %v6096_v28, %v4987_v37  ;;  %v6098_v35 = vperm.slane %v4859_v55, 1  ;;  %v6099_v22 = vperm.slane %v4859_v55, 2  ;;  %v6100_v20 = vperm.slane %v4871_v30, 1 }
 0x148   : > { %v1440_v56 = vmul.f32 %v6097_v21, %v4987_v37  ;;  %v6101_v45 = vperm.slane %v4871_v30, 2  ;;  %v5213_v44 = vadd.f32 %v2034_v32, %v1944_v31  ;;  %v6104_v21 = vperm.slane %v4929_v58, 0  ;;  %v6108_v31 = vld [vmem:[#allocation73_spill] sm:$0xff] }
 0x149   : > { %v1445_v39 = vmul.f32 %v6098_v35, %v4956_v26  ;;  %v1446_v49 = vmul.f32 %v6099_v22, %v4987_v37  ;;  %v1451_v9 = vmul.f32 %v6100_v20, %v4956_v26  ;;  %v6105_v35 = vperm.slane %v4929_v58, 1 }
 0x14a   : > { %v1452_v28 = vmul.f32 %v6101_v45, %v4987_v37  ;;  %6102 = vst [vmem:[#allocation81_spill] sm:$0xff] %v5213_v44  ;;  %v1456_v1 = vmul.f32 %v6104_v21, %v6103_v52  ;;  %v6106_v22 = vperm.slane %v4929_v58, 2  ;;  %v6107_v20 = vperm.slane %v4946_v3, 0 }
 0x14b   : > { %v5221_v10 = vmul.f32 %v6105_v35, %v4956_v26  ;;  %v1469_v32 = vadd.f32 %v1373_v33, %v4869_v17  ;;  %v1470_v6 = vadd.f32 %v1374_v29, %v6108_v31  ;;  %v1475_v21 = vadd.f32 %v5089_v38, %v4869_v17 }
 0x14c   : > { %v5226_v55 = vmul.f32 %v6106_v22, %v4987_v37  ;;  %v5231_v45 = vmul.f32 %v6107_v20, %v6103_v52  ;;  %v1476_v35 = vadd.f32 %v1380_v42, %v6108_v31  ;;  %v1481_v0 = vadd.f32 %v5095_v4, %v4869_v17  ;;  %v5245_v20 = vpop.f32.mrf.mxu1 }
 0x14d   : > { %v1482_v22 = vadd.f32 %v1386_v53, %v6108_v31  ;;  %v5243_v63 = vadd.f32 %v5110_v40, %v4869_v17  ;;  %v5248_v33 = vadd.f32 %v1392_v47, %v6108_v31  ;;  %v5252_v29 = vadd.f32 %v5115_v12, %v4869_v17 }
 0x14e   : > { %v5255_v38 = vadd.f32 %v1398_v48, %v6108_v31  ;;  %v5259_v4 = vadd.f32 %v5120_v43, %v4869_v17  ;;  %v5262_v42 = vadd.f32 %v1404_v34, %v6108_v31  ;;  %v5265_v40 = vadd.f32 %v1409_v18, %v4869_v17 }
 0x14f   : > { %v5268_v53 = vadd.f32 %v1410_v50, %v6108_v31  ;;  %v5271_v47 = vadd.f32 %v1415_v2, %v4869_v17  ;;  %v5274_v12 = vadd.f32 %v1416_v62, %v6108_v31  ;;  %v5277_v48 = vadd.f32 %v1421_v8, %v4869_v17 }
 0x150   : > { %v5280_v43 = vadd.f32 %v1422_v24, %v6108_v31  ;;  %v1565_v34 = vand.u32 2147483647, %v1469_v32  ;;  %v5284_v18 = vadd.f32 %v5128_v5, %v4869_v17  ;;  %v5287_v50 = vadd.f32 %v1428_v54, %v6108_v31 }
 0x151   : > { %v5290_v2 = vadd.f32 %v1434_v19, %v6108_v31  ;;  %v1566_v61 = vand.u32 2147483647, %v1470_v6  ;;  %v5293_v62 = vadd.f32 %v1440_v56, %v6108_v31  ;;  %v5296_v8 = vadd.f32 %v1445_v39, %v4869_v17 }
 0x152   : > { %v5299_v24 = vadd.f32 %v1446_v49, %v6108_v31  ;;  %v1571_v32 = vand.u32 2147483647, %v1475_v21  ;;  %v5302_v5 = vadd.f32 %v1451_v9, %v4869_v17  ;;  %v1552_v54 = vadd.f32 %v1456_v1, %v6109_v60  ;;  %v6117_v1 = vld [vmem:[#allocation66_spill] sm:$0xff] }
 0x153   : > { %v1572_v13 = vand.u32 2147483647, %v1476_v35  ;;  %v1577_v44 = vand.u32 2147483647, %v1481_v0  ;;  %v1578_v19 = vand.u32 2147483647, %v1482_v22  ;;  %v1869_v57 = vmul.f32 %v6110_v23, %v1565_v34 }
 0x154   : > { %v1583_v6 = vand.u32 2147483647, %v5243_v63  ;;  %v1584_v56 = vand.u32 2147483647, %v5248_v33  ;;  %v1589_v39 = vand.u32 2147483647, %v5252_v29  ;;  %v1870_v9 = vmul.f32 %v6110_v23, %v1566_v61  ;;  %v5316_v22 = vpop.f32.mrf.mxu1  ;;  %v5318_v33 = vpop.f32.mrf.mxu3 }
 0x155   : > { %v1590_v49 = vand.u32 2147483647, %v5255_v38  ;;  %v1595_v21 = vand.u32 2147483647, %v5259_v4  ;;  %v6111_v35 = vld [vmem:[#allocation34_spill] sm:$0xff]  ;;  %6112 = vst [vmem:[#allocation73_spill] sm:$0xff] %v5316_v22  ;;  %v5324_v23 = vpop.f32.mrf.mxu2  ;;  %v5327_v34 = vadd.f32 %v1452_v28, %v6108_v31  ;;  %v1882_v0 = vmul.f32 %v6116_v15, %v1578_v19 }
 0x156   : > { %v1875_v63 = vmul.f32 %v6111_v35, %v1571_v32  ;;  %6113 = vst [vmem:[#allocation31_spill] sm:$0xff] %v5318_v33  ;;  %v1876_v61 = vmul.f32 %v6111_v35, %v1572_v13  ;;  %v1648_v4 = vand.u32 2147483647, %v1552_v54  ;;  %v1881_v13 = vmul.f32 %v6116_v15, %v1577_v44  ;;  %v3628_v38 = vld [vmem:[#allocation12 + $0xb0] sm:$0xf0]  ;;  %v6120_v15 = vld [vmem:[#allocation37_spill] sm:$0xff] }
 0x157   : > { %6114 = vst [vmem:[#allocation35_spill] sm:$0xff] %v5324_v23  ;;  %v1975_v30 = vadd.f32 %v6118_v7, %v6117_v1  ;;  %v6119_v44 = vperm.slane %v4946_v3, 1  ;;  %v5349_v28 = vadd.f32 %v5221_v10, %v4869_v17  ;;  %v1887_v19 = vmul.f32 %v6120_v15, %v1583_v6  ;;  %v3652_v35 = vld [vmem:[#allocation12 + $0x170] sm:$0xf0]  ;;  %v3488_v6 = vld [vmem:[#allocation12 + $0x228] sm:$0xf] }
 0x158   : > { %6115 = vst [vmem:[#allocation34_spill] sm:$0xff] %v5332_v59  ;;  %v1952_v32 = vmul.f32 %v5142_v27, %v1648_v4  ;;  %v1979_v14 = vadd.f32 %v1875_v63, %v1869_v57  ;;  %v1994_v29 = vadd.f32 %v1876_v61, %v1870_v9  ;;  %v3392_v4 = vld [vmem:[#allocation12 + $0x168] sm:$0xf]  ;;  %v1888_v7 = vmul.f32 %v6120_v15, %v1584_v56  ;;  %v6121_v57 = vld [vmem:[#allocation67_spill] sm:$0xff] }
 0x159   : > { %v1463_v54 = vmul.f32 %v6119_v44, %v4956_v26  ;;  %v1976_v9 = vadd.f32 %v1975_v30, %v6121_v57  ;;  %v5357_v61 = vadd.f32 %v5226_v55, %v6108_v31  ;;  %v6122_v44 = vld [vmem:[#allocation32_spill] sm:$0xff]  ;;  %v3297_v52 = vor.u32 %v3628_v38, %v3296_v41  ;;  %v3676_v23 = vld [vmem:[#allocation12 + $0x230] sm:$0xf0]  ;;  %v3284_v22 = vld [vmem:[#allocation12 + $0x90] sm:$0xf] }
 0x15a   : > { %v1980_v1 = vadd.f32 %v1979_v14, %v1881_v13  ;;  %v1995_v63 = vadd.f32 %v1994_v29, %v1882_v0  ;;  %v1893_v26 = vmul.f32 %v6122_v44, %v1589_v39  ;;  %v1894_v10 = vmul.f32 %v6122_v44, %v1590_v49  ;;  %v3625_v0 = vld [vmem:[#allocation12 + $0x98] sm:$0xf0]  ;;  %v3380_v29 = vld [vmem:[#allocation12 + $0x150] sm:$0xf]  ;;  %v6125_v38 = vld [vmem:[#allocation30_spill] sm:$0xff] }
 0x15b   : > { %v5363_v33 = vadd.f32 %v1976_v9, %v1952_v32  ;;  %v3393_v14 = vor.u32 %v3652_v35, %v3392_v4  ;;  %v3649_v13 = vld [vmem:[#allocation12 + $0x158] sm:$0xf0]  ;;  %v6124_v55 = vperm.slane %v4946_v3, 2  ;;  %v5370_v49 = vadd.f32 %v5231_v45, %v6109_v60  ;;  %2577 = vmatpush.bf16.msrb.mxu1 %v3297_v52  ;;  %v3622_v44 = vld [vmem:[#allocation12 + $0x80] sm:$0xf0] }
 0x15c   : > { %v5361_v59 = vpop.f32.mrf.mxu1  ;;  %v1981_v56 = vadd.f32 %v1980_v1, %v1887_v19  ;;  %v1996_v30 = vadd.f32 %v1995_v63, %v1888_v7  ;;  %v1899_v15 = vmul.f32 %v6125_v38, %v1595_v21  ;;  %v5374_v32 = vpop.f32.mrf.mxu3  ;;  %v3476_v19 = vld [vmem:[#allocation12 + $0x210] sm:$0xf]  ;;  %v3673_v35 = vld [vmem:[#allocation12 + $0x218] sm:$0xf0]  ;;  %v6128_v7 = vand.u32 2147483647, %v5262_v42 }
 0x15d   : > { %6123 = vst [vmem:[#allocation36_spill] sm:$0xff] %v5361_v59  ;;  %v1464_v39 = vmul.f32 %v6124_v55, %v4987_v37  ;;  %v5376_v4 = vpop.f32.mrf.mxu2  ;;  %2591 = vmatpush.bf16.msrb.mxu2 %v3393_v14  ;;  %v3489_v45 = vor.u32 %v3676_v23, %v3488_v6  ;;  %v3272_v63 = vld [vmem:[#allocation12 + $0x78] sm:$0xf]  ;;  %v1650_v55 = vand.u32 2147483647, %v5357_v61  ;;  %v6130_v41 = vld [vmem:[#allocation41_spill] sm:$0xff]  ;;  %v3381_v3 = vor.u32 %v3649_v13, %v3380_v29  ;;  %v5385_v59 = vpop.f32.mrf.mxu0 }
 0x15e   : > { %6126 = vst [vmem:[#allocation66_spill] sm:$0xff] %v5374_v32  ;;  %v1900_v57 = vmul.f32 %v6125_v38, %v6128_v7  ;;  %v1982_v9 = vadd.f32 %v1981_v56, %v1893_v26  ;;  %v1997_v1 = vadd.f32 %v1996_v30, %v1894_v10  ;;  %v6129_v21 = vand.u32 2147483647, %v5265_v40  ;;  %v3368_v37 = vld [vmem:[#allocation12 + $0x138] sm:$0xf] }
 0x15f   : > { %6127 = vst [vmem:[#allocation58_spill] sm:$0xff] %v5376_v4  ;;  %v3285_v32 = vor.u32 %v3625_v0, %v3284_v22  ;;  %v3646_v4 = vld [vmem:[#allocation12 + $0x140] sm:$0xf0]  ;;  %v6131_v42 = vand.u32 2147483647, %v5268_v53  ;;  %2605 = vmatpush.bf16.msrb.mxu3 %v3489_v45  ;;  %v3477_v6 = vor.u32 %v3673_v35, %v3476_v19  ;;  %v6132_v56 = vperm.slane %v4602_v25, 2 }
 0x160   : > { %v1905_v52 = vmul.f32 %v6130_v41, %v6129_v21  ;;  %v1983_v10 = vadd.f32 %v1982_v9, %v1899_v15  ;;  %v1998_v23 = vadd.f32 %v1997_v1, %v1900_v57  ;;  %v5396_v22 = vadd.f32 %v1463_v54, %v4869_v17  ;;  %v6134_v14 = vld [vmem:[#allocation44_spill] sm:$0xff]  ;;  %v3670_v13 = vld [vmem:[#allocation12 + $0x200] sm:$0xf0]  ;;  %v3619_v35 = vld [vmem:[#allocation12 + $0x68] sm:$0xf0] }
 0x161   : > { %v1906_v26 = vmul.f32 %v6130_v41, %v6131_v42  ;;  %v5393_v40 = vadd.f32 %v5245_v20, %v6132_v56  ;;  %v6133_v30 = vand.u32 2147483647, %v5271_v47  ;;  %2578 = vmatpush.bf16.msrb.mxu1 %v3285_v32  ;;  %v3273_v53 = vor.u32 %v3622_v44, %v3272_v63  ;;  %v3464_v29 = vld [vmem:[#allocation12 + $0x1f8] sm:$0xf]  ;;  %v3260_v41 = vld [vmem:[#allocation12 + $0x60] sm:$0xf]  ;;  %2592 = vmatpush.bf16.msrb.mxu2 %v3381_v3 }
 0x162   : > { %v6135_v38 = vand.u32 2147483647, %v5274_v12  ;;  %v1984_v25 = vadd.f32 %v1983_v10, %v1905_v52  ;;  %v3369_v20 = vor.u32 %v3646_v4, %v3368_v37  ;;  %v3627_v54 = vld [vmem:[#allocation12 + $0xac] sm:$0xf]  ;;  %v3298_v7 = vld [vmem:[#allocation12 + $0xb4] sm:$0xf0]  ;;  %v5405_v47 = vunpack.i.h.bf16 %v5123_v46 }
 0x163   : > { %v1911_v0 = vmul.f32 %v6134_v14, %v6133_v30  ;;  %v1999_v19 = vadd.f32 %v1998_v23, %v1906_v26  ;;  %v5408_v32 = vadd.f32 %v1464_v39, %v6108_v31  ;;  %v1654_v57 = vand.u32 2147483647, %v5370_v49  ;;  %v6137_v12 = vld [vmem:[#allocation46_spill] sm:$0xff]  ;;  %v3356_v63 = vld [vmem:[#allocation12 + $0x120] sm:$0xf]  ;;  %2606 = vmatpush.bf16.msrb.mxu3 %v3477_v6  ;;  %v6140_v26 = vld [vmem:[#allocation47_spill] sm:$0xff]  ;;  %v5497_v49 = vpop.permute.xlu2 %1173 }
 0x164   : > { %v1912_v15 = vmul.f32 %v6134_v14, %v6135_v38  ;;  %v6136_v9 = vand.u32 2147483647, %v5277_v48  ;;  %v5414_v45 = vpop.f32.mrf.mxu1  ;;  %v3643_v3 = vld [vmem:[#allocation12 + $0x128] sm:$0xf0]  ;;  %v6138_v37 = vand.u32 2147483647, %v5280_v43  ;;  %v3465_v21 = vor.u32 %v3670_v13, %v3464_v29 }
 0x165   : > { %v1985_v44 = vadd.f32 %v1984_v25, %v1911_v0  ;;  %v3624_v39 = vld [vmem:[#allocation12 + $0x94] sm:$0xf]  ;;  %v3286_v52 = vld [vmem:[#allocation12 + $0x9c] sm:$0xf0]  ;;  %v1655_v42 = vand.u32 2147483647, %v5396_v22  ;;  %2579 = vmatpush.bf16.msrb.mxu1 %v3273_v53  ;;  %v3261_v23 = vor.u32 %v3619_v35, %v3260_v41  ;;  %v3301_v14 = vor.u32 %v3627_v54, %v3298_v7  ;;  %2593 = vmatpush.bf16.msrb.mxu2 %v3369_v20 }
 0x166   : > { %v1917_v1 = vmul.f32 %v6137_v12, %v6136_v9  ;;  %v1918_v4 = vmul.f32 %v6137_v12, %v6138_v37  ;;  %v2000_v46 = vadd.f32 %v1999_v19, %v1912_v15  ;;  %v6139_v48 = vand.u32 2147483647, %v5284_v18  ;;  %v3452_v56 = vld [vmem:[#allocation12 + $0x1e0] sm:$0xf]  ;;  %v3667_v30 = vld [vmem:[#allocation12 + $0x1e8] sm:$0xf0]  ;;  %v5437_v9 = vpop.f32.mrf.mxu2 }
 0x167   : > { %v6141_v43 = vand.u32 2147483647, %v5287_v50  ;;  %v3357_v29 = vor.u32 %v3643_v3, %v3356_v63  ;;  %v3248_v13 = vld [vmem:[#allocation12 + $0x48] sm:$0xf]  ;;  %v3616_v15 = vld [vmem:[#allocation12 + $0x50] sm:$0xf0]  ;;  %v5435_v50 = vpop.f32.mrf.mxu3  ;;  %2619 = vmatpush.bf16.msra.mxu0 %v3301_v14  ;;  %v3289_v20 = vor.u32 %v3624_v39, %v3286_v52  ;;  %2607 = vmatpush.bf16.msrb.mxu3 %v3465_v21  ;;  %v3453_v37 = vor.u32 %v3667_v30, %v3452_v56  ;;  %v5451_v21 = vpop.f32.mrf.mxu0 }
 0x168   : > { %v1923_v10 = vmul.f32 %v6140_v26, %v6139_v48  ;;  %v1986_v38 = vadd.f32 %v1985_v44, %v1917_v1  ;;  %v2001_v6 = vadd.f32 %v2000_v46, %v1918_v4  ;;  %v6142_v18 = vperm.slane %v4929_v58, 1  ;;  %v6144_v19 = vld [vmem:[#allocation52_spill] sm:$0xff]  ;;  %v3344_v54 = vld [vmem:[#allocation12 + $0x108] sm:$0xf]  ;;  %v3640_v7 = vld [vmem:[#allocation12 + $0x110] sm:$0xf0] }
 0x169   : > { %v1924_v0 = vmul.f32 %v6140_v26, %v6141_v43  ;;  %v1656_v53 = vand.u32 2147483647, %v5408_v32  ;;  %v6143_v41 = vand.u32 2147483647, %v5098_v51  ;;  %v6145_v12 = vand.u32 2147483647, %v5290_v2  ;;  %2580 = vmatpush.bf16.msrb.mxu1 %v3261_v23  ;;  %2594 = vmatpush.bf16.msrb.mxu2 %v3357_v29 }
 0x16a   : > { %v5429_v25 = vmul.f32 %v6142_v18, %v4943_v16  ;;  %v1987_v63 = vadd.f32 %v1986_v38, %v1923_v10  ;;  %v3621_v4 = vld [vmem:[#allocation12 + $0x7c] sm:$0xf]  ;;  %v3274_v51 = vld [vmem:[#allocation12 + $0x84] sm:$0xf0]  ;;  %v6146_v44 = vand.u32 2147483647, %v5101_v11  ;;  %v3249_v43 = vor.u32 %v3616_v15, %v3248_v13 }
 0x16b   : > { %v1929_v35 = vmul.f32 %v6144_v19, %v6143_v41  ;;  %v1930_v1 = vmul.f32 %v6144_v19, %v6145_v12  ;;  %v2002_v3 = vadd.f32 %v2001_v6, %v1924_v0  ;;  %v6147_v46 = vld [vmem:[#allocation51_spill] sm:$0xff]  ;;  %v6148_v26 = vand.u32 2147483647, %v5293_v62  ;;  %v6150_v14 = vld [vmem:[#allocation61_spill] sm:$0xff]  ;;  %v3440_v10 = vld [vmem:[#allocation12 + $0x1c8] sm:$0xf]  ;;  %2620 = vmatpush.bf16.msra.mxu0 %v3289_v20  ;;  %2608 = vmatpush.bf16.msrb.mxu3 %v3453_v37 }
 0x16c   : > { %v1935_v48 = vmul.f32 %v6147_v46, %v6146_v44  ;;  %v6149_v52 = vand.u32 2147483647, %v5296_v8  ;;  %v3664_v0 = vld [vmem:[#allocation12 + $0x1d0] sm:$0xf0]  ;;  %v6151_v56 = vand.u32 2147483647, %v5299_v24  ;;  %v3345_v8 = vor.u32 %v3640_v7, %v3344_v54  ;;  %v5473_v12 = vpop.f32.mrf.mxu1 }
 0x16d   : > { %v1936_v39 = vmul.f32 %v6147_v46, %v6148_v26  ;;  %v1988_v30 = vadd.f32 %v1987_v63, %v1929_v35  ;;  %v2003_v38 = vadd.f32 %v2002_v3, %v1930_v1  ;;  %v5459_v62 = vld [vmem:[%s5992_s14 + $0x8] sm:$0xff]  ;;  %v3236_v6 = vld [vmem:[#allocation12 + $0x30] sm:$0xf]  ;;  %v3613_v23 = vld [vmem:[#allocation12 + $0x38] sm:$0xf0]  ;;  %v3277_v7 = vor.u32 %v3621_v4, %v3274_v51  ;;  %2581 = vmatpush.bf16.msrb.mxu1 %v3249_v43 }
 0x16e   : > { %v1941_v2 = vmul.f32 %v6150_v14, %v6149_v52  ;;  %v1942_v11 = vmul.f32 %v6150_v14, %v6151_v56  ;;  %v6152_v13 = vand.u32 2147483647, %v5302_v5  ;;  %v6153_v15 = vld [vmem:[#allocation60_spill] sm:$0xff]  ;;  %v6154_v41 = vand.u32 2147483647, %v5327_v34  ;;  %v5470_v19 = vld [vmem:[%s5992_s14] sm:$0xff]  ;;  %2595 = vmatpush.bf16.msrb.mxu2 %v3345_v8 }
 0x16f   : > { %v5969_v35 = vperm.slane %v5470_v19, 6  ;;  %v3332_v29 = vld [vmem:[#allocation12 + $0xf0] sm:$0xf]  ;;  %v3637_v54 = vld [vmem:[#allocation12 + $0xf8] sm:$0xf0]  ;;  %v1989_v5 = vadd.f32 %v1988_v30, %v1935_v48  ;;  %v2004_v1 = vadd.f32 %v2003_v38, %v1936_v39  ;;  %v5966_v63 = vperm.slane %v5459_v62, 0  ;;  %2621 = vmatpush.bf16.msra.mxu0 %v3277_v7  ;;  %v5510_v7 = vpop.permute.xlu1 %1168 }
 0x170   : > { %v1947_v18 = vmul.f32 %v6153_v15, %v6152_v13  ;;  %v1948_v24 = vmul.f32 %v6153_v15, %v6154_v41  ;;  %v3441_v34 = vor.u32 %v3664_v0, %v3440_v10  ;;  %v3618_v3 = vld [vmem:[#allocation12 + $0x64] sm:$0xf]  ;;  %v3262_v44 = vld [vmem:[#allocation12 + $0x6c] sm:$0xf0]  ;;  %v6155_v46 = vand.u32 2147483647, %v5349_v28 }
 0x171   : > { %v5968_v52 = vperm.slane %v5470_v19, 7  ;;  %v5967_v14 = vperm.slane %v5459_v62, 4  ;;  %v3237_v20 = vor.u32 %v3613_v23, %v3236_v6  ;;  %v3428_v56 = vld [vmem:[#allocation12 + $0x1b0] sm:$0xf]  ;;  %v3661_v4 = vld [vmem:[#allocation12 + $0x1b8] sm:$0xf0]  ;;  %v1954_v51 = vmul.f32 %v5142_v27, %v1650_v55  ;;  %v5505_v23 = vpop.f32.mrf.mxu3 }
 0x172   : > { %v1953_v26 = vmul.f32 %v5142_v27, %v6155_v46  ;;  %v1990_v37 = vadd.f32 %v1989_v5, %v1941_v2  ;;  %v2005_v48 = vadd.f32 %v2004_v1, %v1942_v11  ;;  %v3333_v39 = vor.u32 %v3637_v54, %v3332_v29  ;;  %v3224_v10 = vld [vmem:[#allocation12 + $0x18] sm:$0xf]  ;;  %v3610_v28 = vld [vmem:[#allocation12 + $0x20] sm:$0xf0]  ;;  %2609 = vmatpush.bf16.msrb.mxu3 %v3441_v34  ;;  %v3212_v41 = vld [vmem:[#allocation12] sm:$0xf] }
 0x173   : > { %v3320_v0 = vld [vmem:[#allocation12 + $0xd8] sm:$0xf]  ;;  %v1958_v30 = vmul.f32 %v5405_v47, %v1654_v57  ;;  %v1959_v43 = vmul.f32 %v5405_v47, %v1655_v42  ;;  %v1960_v61 = vmul.f32 %v5405_v47, %v1656_v53  ;;  %v3634_v27 = vld [vmem:[#allocation12 + $0xe0] sm:$0xf0]  ;;  %v3265_v11 = vor.u32 %v3618_v3, %v3262_v44  ;;  %v3615_v42 = vld [vmem:[#allocation12 + $0x4c] sm:$0xf]  ;;  %2582 = vmatpush.bf16.msrb.mxu1 %v3237_v20 }
 0x174   : > { %v5493_v55 = vld [vmem:[#allocation12 + $0x198] sm:$0xf]  ;;  %v5495_v2 = vld [vmem:[#allocation12 + $0x1a0] sm:$0xf0]  ;;  %v1991_v38 = vadd.f32 %v1990_v37, %v1947_v18  ;;  %v2006_v8 = vadd.f32 %v2005_v48, %v1948_v24  ;;  %v3429_v57 = vor.u32 %v3661_v4, %v3428_v56  ;;  %v5965_v22 = vperm.slane %v5459_v62, 6  ;;  %v5508_v18 = vpop.f32.mrf.mxu2  ;;  %2596 = vmatpush.bf16.msrb.mxu2 %v3333_v39  ;;  %v1050_v56 = vpop.f32.mrf.mxu1 }
 0x175   : > { %v3250_v6 = vld [vmem:[#allocation12 + $0x54] sm:$0xf0]  ;;  %v6156_v32 = vld [vmem:[#allocation53_spill] sm:$0xff]  ;;  %v765_v53 = vperm.slane %v5459_v62, 1  ;;  %v767_v13 = vperm.slane %v5459_v62, 3  ;;  %v3225_v15 = vor.u32 %v3610_v28, %v3224_v10  ;;  %v769_v5 = vperm.slane %v5459_v62, 5  ;;  %2622 = vmatpush.bf16.msra.mxu0 %v3265_v11  ;;  %v5524_v4 = vpop.f32.mrf.mxu0 }
 0x176   : > { %v5502_v47 = vmul.f32 %v5497_v49, %v6156_v32  ;;  %v3607_v24 = vld [vmem:[#allocation12 + $0x8] sm:$0xf0]  ;;  %v1992_v29 = vadd.f32 %v1991_v38, %v1953_v26  ;;  %v2007_v54 = vadd.f32 %v2006_v8, %v1954_v51  ;;  %v3321_v1 = vor.u32 %v3634_v27, %v3320_v0  ;;  %v3308_v34 = vld [vmem:[#allocation12 + $0xc0] sm:$0xf]  ;;  %v6157_v26 = vld [vmem:[#allocation31_spill] sm:$0xff]  ;;  %2610 = vmatpush.bf16.msrb.mxu3 %v3429_v57 }
 0x177   : > { %v3631_v3 = vld [vmem:[#allocation12 + $0xc8] sm:$0xf0]  ;;  %v5515_v44 = vmul.f32 %v5497_v49, %v4937_v36  ;;  %v5519_v46 = vmul.f32 %v5510_v7, %v6109_v60  ;;  %v967_v20 = vadd.f32 %v6157_v26, %v5966_v63  ;;  %v3253_v51 = vor.u32 %v3615_v42, %v3250_v6  ;;  %v3394_v48 = vld [vmem:[#allocation12 + $0x174] sm:$0xf0]  ;;  %v6158_v10 = vld [vmem:[#allocation73_spill] sm:$0xff]  ;;  %2583 = vmatpush.bf16.msrb.mxu1 %v3225_v15 }
 0x178   : > { %v3651_v37 = vld [vmem:[#allocation12 + $0x16c] sm:$0xf]  ;;  %v939_v28 = vadd.f32 %v6158_v10, %v5969_v35  ;;  %v1023_v60 = vadd.f32 %v5435_v50, %v5967_v14  ;;  %v1051_v0 = vadd.f32 %v1050_v56, %v5965_v22  ;;  %v3417_v27 = vor.u32 %v5495_v2, %v5493_v55  ;;  %v3490_v11 = vld [vmem:[#allocation12 + $0x234] sm:$0xf0]  ;;  %v3612_v38 = vld [vmem:[#allocation12 + $0x34] sm:$0xf]  ;;  %2597 = vmatpush.bf16.msrb.mxu2 %v3321_v1 }
 0x179   : > { %v3675_v39 = vld [vmem:[#allocation12 + $0x22c] sm:$0xf]  ;;  %v3238_v8 = vld [vmem:[#allocation12 + $0x3c] sm:$0xf0]  ;;  %v6159_v42 = vld [vmem:[#allocation35_spill] sm:$0xff]  ;;  %v766_v32 = vperm.slane %v5459_v62, 2  ;;  %v3213_v26 = vor.u32 %v3607_v24, %v3212_v41  ;;  %v5541_v57 = vadd.f32 %v5363_v33, %v1958_v30  ;;  %v3309_v56 = vor.u32 %v3631_v3, %v3308_v34  ;;  %2623 = vmatpush.bf16.msra.mxu0 %v3253_v51 }
 0x17a   : > { %v953_v6 = vadd.f32 %v6159_v42, %v5968_v52  ;;  %v3404_v10 = vld [vmem:[#allocation12 + $0x180] sm:$0xf]  ;;  %v3655_v50 = vld [vmem:[#allocation12 + $0x188] sm:$0xf0]  ;;  %v3397_v22 = vor.u32 %v3651_v37, %v3394_v48  ;;  %v3304_v55 = vld [vmem:[#allocation12 + $0xb0] sm:$0xf]  ;;  %v5543_v63 = vadd.f32 %v1992_v29, %v1959_v43  ;;  %v2008_v14 = vadd.f32 %v2007_v54, %v1960_v61  ;;  %2611 = vmatpush.bf16.msrb.mxu3 %v3417_v27 }
 0x17b   : > { %v3629_v2 = vld [vmem:[#allocation12 + $0xb8] sm:$0xf0]  ;;  %v1009_v42 = vadd.f32 %v5437_v9, %v767_v13  ;;  %v1057_v52 = vmul.f32 %v1051_v0, %v967_v20  ;;  %v3493_v15 = vor.u32 %v3675_v39, %v3490_v11  ;;  %v3241_v41 = vor.u32 %v3612_v38, %v3238_v8  ;;  %v3648_v24 = vld [vmem:[#allocation12 + $0x154] sm:$0xf]  ;;  %v3382_v35 = vld [vmem:[#allocation12 + $0x15c] sm:$0xf0]  ;;  %2584 = vmatpush.bf16.msrb.mxu1 %v3213_v26 }
 0x17c   : > { %v3672_v33 = vld [vmem:[#allocation12 + $0x214] sm:$0xf]  ;;  %v6160_v30 = vld [vmem:[#allocation34_spill] sm:$0xff]  ;;  %v1055_v34 = vmul.f32 %v1023_v60, %v939_v28  ;;  %v1037_v43 = vadd.f32 %v5451_v21, %v769_v5  ;;  %v3405_v61 = vor.u32 %v3655_v50, %v3404_v10  ;;  %v3478_v29 = vld [vmem:[#allocation12 + $0x21c] sm:$0xf0]  ;;  %v1178_v3 = vmul.f32 %v5510_v7, %v6108_v31  ;;  %v5562_v60 = vpop.f32.mrf.mxu2  ;;  %v5564_v21 = vpop.f32.mrf.mxu3  ;;  %2598 = vmatpush.bf16.msrb.mxu2 %v3309_v56 }
 0x17d   : > { %v981_v1 = vadd.f32 %v6160_v30, %v765_v53  ;;  %v3609_v9 = vld [vmem:[#allocation12 + $0x1c] sm:$0xf]  ;;  %v3226_v54 = vld [vmem:[#allocation12 + $0x24] sm:$0xf0]  ;;  %v6161_v20 = vperm.slane %v5470_v19, 6  ;;  %v6163_v48 = vperm.slane %v5459_v62, 4  ;;  %v3305_v28 = vor.u32 %v3629_v2, %v3304_v55  ;;  %2624 = vmatpush.bf16.msra.mxu0 %v3241_v41  ;;  %v1153_v55 = vpop.f32.mrf.mxu0 }
 0x17e   : > { %v6162_v51 = vld [vmem:[#allocation36_spill] sm:$0xff]  ;;  %v6164_v0 = vperm.slane %v5470_v19, 7  ;;  %v6165_v27 = vld [vmem:[#allocation58_spill] sm:$0xff]  ;;  %v5572_v31 = vadd.f32 %v5385_v59, %v765_v53  ;;  %v3385_v38 = vor.u32 %v3648_v24, %v3382_v35  ;;  %v1063_v10 = vadd.f32 %v1057_v52, %v1009_v42  ;;  %2612 = vmatpush.bf16.msrb.mxu3 %v3405_v61  ;;  %v3280_v53 = vld [vmem:[#allocation12 + $0x80] sm:$0xf] }
 0x17f   : > { %v941_v37 = vadd.f32 %v6162_v51, %v6161_v20  ;;  %v1025_v39 = vadd.f32 %v5505_v23, %v6163_v48  ;;  %2633 = vmatpush.bf16.msra.mxu1 %v3397_v22  ;;  %v3292_v8 = vld [vmem:[#allocation12 + $0x98] sm:$0xf]  ;;  %v3626_v23 = vld [vmem:[#allocation12 + $0xa0] sm:$0xf0]  ;;  %v3645_v26 = vld [vmem:[#allocation12 + $0x13c] sm:$0xf]  ;;  %v3481_v50 = vor.u32 %v3672_v33, %v3478_v29  ;;  %v3229_v2 = vor.u32 %v3609_v9, %v3226_v54 }
 0x180   : > { %v955_v11 = vadd.f32 %v6165_v27, %v6164_v0  ;;  %2647 = vmatpush.bf16.msra.mxu2 %v3493_v15  ;;  %v3370_v19 = vld [vmem:[#allocation12 + $0x144] sm:$0xf0]  ;;  %v3669_v30 = vld [vmem:[#allocation12 + $0x1fc] sm:$0xf]  ;;  %v995_v51 = vadd.f32 %v5414_v45, %v766_v32  ;;  %v5575_v48 = vadd.f32 %v1055_v34, %v981_v1  ;;  %v1056_v59 = vmul.f32 %v1037_v43, %v953_v6  ;;  %v3623_v56 = vld [vmem:[#allocation12 + $0x88] sm:$0xf0] }
 0x181   : > { %v3466_v20 = vld [vmem:[#allocation12 + $0x204] sm:$0xf0]  ;;  %v3606_v24 = vld [vmem:[#allocation12 + $0x4] sm:$0xf]  ;;  %v3214_v52 = vld [vmem:[#allocation12 + $0xc] sm:$0xf0]  ;;  %v997_v42 = vadd.f32 %v5473_v12, %v766_v32  ;;  %v1058_v15 = vmul.f32 %v1025_v39, %v941_v37  ;;  %v1039_v41 = vadd.f32 %v5524_v4, %v769_v5  ;;  %v3293_v33 = vor.u32 %v3626_v23, %v3292_v8  ;;  %2625 = vmatpush.bf16.msra.mxu0 %v3229_v2 }
 0x182   : > { %v6166_v22 = vld [vmem:[#allocation70_spill] sm:$0xff]  ;;  %2661 = vmatpush.bf16.msra.mxu3 %v3305_v28  ;;  %v3642_v45 = vld [vmem:[#allocation12 + $0x124] sm:$0xf]  ;;  %v3400_v1 = vld [vmem:[#allocation12 + $0x170] sm:$0xf]  ;;  %v3373_v61 = vor.u32 %v3645_v26, %v3370_v19  ;;  %vm1069_vm2 = vcmp.gt.f32.partialorder %v1063_v10, 0.0  ;;  %v3469_v32 = vor.u32 %v3669_v30, %v3466_v20  ;;  %v3217_v5 = vor.u32 %v3606_v24, %v3214_v52 }
 0x183   : > { %v1160_v35 = vmul.f32 %v1153_v55, %v6166_v22  ;;  %v3653_v34 = vld [vmem:[#allocation12 + $0x178] sm:$0xf0]  ;;  %2634 = vmatpush.bf16.msra.mxu1 %v3385_v38  ;;  %v2068_v43 = vmul.f32 0.495, %v2008_v14  ;;  %v3358_v29 = vld [vmem:[#allocation12 + $0x12c] sm:$0xf0]  ;;  %v1059_v23 = vmul.f32 %v1039_v41, %v955_v11  ;;  %v3281_v26 = vor.u32 %v3623_v56, %v3280_v53 }
 0x184   : > { %v3666_v9 = vld [vmem:[#allocation12 + $0x1e4] sm:$0xf]  ;;  %v6167_v54 = vld [vmem:[#allocation76_spill] sm:$0xff]  ;;  %v1075_v12 = vmul.f32 0.01, %v1063_v10  ;;  %2648 = vmatpush.bf16.msra.mxu2 %v3481_v50  ;;  %v3401_v39 = vor.u32 %v3653_v34, %v3400_v1  ;;  %v6169_v28 = vld [vmem:[#allocation78_spill] sm:$0xff]  ;;  %v1556_v50 = vadd.f32 %v5429_v25, %v4937_v36  ;;  %v3361_v30 = vor.u32 %v3642_v45, %v3358_v29  ;;  %v1127_v11 = vpop.f32.mrf.mxu2  ;;  %v1141_v53 = vpop.f32.mrf.mxu3 }
 0x185   : > { %v1184_v6 = vadd.f32 %v1178_v3, %v1160_v35  ;;  %v6168_v0 = vld [vmem:[#allocation77_spill] sm:$0xff]  ;;  %v3454_v4 = vld [vmem:[#allocation12 + $0x1ec] sm:$0xf0]  ;;  %v6172_v55 = vld [vmem:[#allocation64_spill] sm:$0xff]  ;;  %2626 = vmatpush.bf16.msra.mxu0 %v3217_v5  ;;  %v5598_v25 = vadd.f32 %v1058_v15, %v5572_v31  ;;  %v5610_v31 = vadd.f32 %v1059_v23, %v997_v42  ;;  %vm1067_vm3 = vcmp.gt.f32.partialorder %v5575_v48, 0.0 }
 0x186   : > { %v2021_v27 = vadd.f32 %v6168_v0, %v6167_v54  ;;  %v6170_v3 = vld [vmem:[#allocation59_spill] sm:$0xff]  ;;  %2662 = vmatpush.bf16.msra.mxu3 %v3293_v33  ;;  %v6173_v19 = vperm.slane %v6172_v55, 1  ;;  %v3457_v20 = vor.u32 %v3666_v9, %v3454_v4  ;;  %v3268_v35 = vld [vmem:[#allocation12 + $0x68] sm:$0xf]  ;;  %v1081_v34 = vsel %vm1069_vm2, %v1063_v10, %v1075_v12  ;;  %v6176_v10 = vld [vmem:[#allocation65_spill] sm:$0xff] }
 0x187   : > { %v2062_v37 = vmul.f32 0.505, %v1184_v6  ;;  %v6171_v14 = vperm.slane %v6170_v3, 1  ;;  %2635 = vmatpush.bf16.msra.mxu1 %v3373_v61  ;;  %v3620_v24 = vld [vmem:[#allocation12 + $0x70] sm:$0xf0]  ;;  %v5600_v33 = vadd.f32 %v1056_v59, %v995_v51  ;;  %v1159_v61 = vmul.f32 %v5564_v21, %v6176_v10  ;;  %v6177_v51 = vld [vmem:[#allocation48_spill] sm:$0xff] }
 0x188   : > { %v2022_v8 = vadd.f32 %v2021_v27, %v6169_v28  ;;  %v1466_v22 = vmul.f32 %v6173_v19, %v4943_v16  ;;  %v6174_v52 = vld [vmem:[#allocation79_spill] sm:$0xff]  ;;  %2649 = vmatpush.bf16.msra.mxu2 %v3469_v32  ;;  %v3269_v29 = vor.u32 %v3620_v24, %v3268_v35  ;;  %v1652_v54 = vand.u32 2147483647, %v1556_v50  ;;  %v6182_v5 = vld [vmem:[#allocation21_spill] sm:$0xff]  ;;  %v6186_v50 = vld [vmem:[#allocation68_spill] sm:$0xff] }
 0x189   : > { %v1454_v38 = vmul.f32 %v6171_v14, %v4943_v16  ;;  %v2074_v2 = vadd.f32 %v2068_v43, %v2062_v37  ;;  %v6175_v45 = vld [vmem:[#allocation27_spill] sm:$0xff]  ;;  %2675 = vmatpush.bf16.msrb.mxu0 %v3401_v39  ;;  %v1161_v59 = vmul.f32 %v1127_v11, %v6177_v51  ;;  %v1073_v15 = vmul.f32 0.01, %v5575_v48  ;;  %v6184_v28 = vld [vmem:[#allocation69_spill] sm:$0xff] }
 0x18a   : > { %v2023_v1 = vadd.f32 %v2022_v8, %v6174_v52  ;;  %v1562_v41 = vadd.f32 %v1466_v22, %v4937_v36  ;;  %v1158_v6 = vmul.f32 %v5562_v60, %v6175_v45  ;;  %2663 = vmatpush.bf16.msra.mxu3 %v3281_v26  ;;  %v1162_v60 = vmul.f32 %v1141_v53, %v4943_v16  ;;  %v6178_v0 = vld [vmem:[#allocation71_spill] sm:$0xff]  ;;  %v6185_v14 = vld [vmem:[#allocation81_spill] sm:$0xff] }
 0x18b   : > { %v1550_v56 = vadd.f32 %v1454_v38, %v4937_v36  ;;  %v5604_v43 = vadd.f32 %v2074_v2, %v1081_v34  ;;  %v1177_v36 = vmul.f32 %v5510_v7, %v4869_v17  ;;  %2636 = vmatpush.bf16.msra.mxu1 %v3361_v30  ;;  %vm1070_vm4 = vcmp.gt.f32.partialorder %v5598_v25, 0.0  ;;  %v6179_v17 = vld [vmem:[#allocation80_spill] sm:$0xff]  ;;  %v6180_v7 = vld [vmem:[#allocation22_spill] sm:$0xff]  ;;  %v6187_v35 = vld [vmem:[#allocation23_spill] sm:$0xff] }
 0x18c   : > { %2650 = vmatpush.bf16.msra.mxu2 %v3457_v20  ;;  %v1658_v21 = vand.u32 2147483647, %v1562_v41  ;;  %v1074_v12 = vmul.f32 0.01, %v5600_v33  ;;  %v6181_v42 = vperm.slane %v6180_v7, 2  ;;  %v6183_v4 = vperm.slane %v6182_v5, 2 }
 0x18d   : > { %v1646_v9 = vand.u32 2147483647, %v1550_v56  ;;  %v1182_v37 = vadd.f32 %v5519_v46, %v1158_v6  ;;  %v1183_v39 = vadd.f32 %v1177_v36, %v1159_v61  ;;  %v1956_v8 = vmul.f32 %v6184_v28, %v1652_v54  ;;  %v6189_v6 = vld [vmem:[#allocation24_spill] sm:$0xff]  ;;  %v6191_v61 = vld [vmem:[#allocation25_spill] sm:$0xff]  ;;  %v6193_v54 = vld [vmem:[#allocation26_spill] sm:$0xff] }
 0x18e   : > { %v1377_v32 = vmul.f32 %v6181_v42, %v6179_v17  ;;  %v1383_v16 = vmul.f32 %v6183_v4, %v6179_v17  ;;  %2664 = vmatpush.bf16.msra.mxu3 %v3269_v29  ;;  %v1076_v23 = vmul.f32 0.01, %v5598_v25  ;;  %vm1071_vm5 = vcmp.gt.f32.partialorder %v5610_v31, 0.0  ;;  %v6199_v4 = vld [vmem:[#allocation38_spill] sm:$0xff] }
 0x18f   : > { %v1950_v27 = vmul.f32 %v6178_v0, %v1646_v9  ;;  %v1185_v26 = vadd.f32 %v5502_v47, %v1161_v59  ;;  %v1186_v19 = vadd.f32 %v5515_v44, %v1162_v60  ;;  %vm1068_vm6 = vcmp.gt.f32.partialorder %v5600_v33, 0.0  ;;  %v6195_v59 = vld [vmem:[#allocation28_spill] sm:$0xff] }
 0x190   : > { %v1077_v22 = vmul.f32 0.01, %v5610_v31  ;;  %v1079_v46 = vsel %vm1067_vm3, %v5575_v48, %v1073_v15  ;;  %v1962_v2 = vmul.f32 %v6186_v50, %v1658_v21  ;;  %v2066_v20 = vmul.f32 0.495, %v5541_v57  ;;  %v6197_v15 = vld [vmem:[#allocation29_spill] sm:$0xff] }
 0x191   : > { %v2036_v38 = vadd.f32 %v6185_v14, %v1950_v27  ;;  %v6188_v24 = vperm.slane %v6187_v35, 2  ;;  %v1473_v47 = vadd.f32 %v1377_v32, %v5393_v40  ;;  %v1479_v44 = vadd.f32 %v1383_v16, %v5393_v40 }
 0x192   : > { %v2060_v34 = vmul.f32 0.505, %v1182_v37  ;;  %v2061_v11 = vmul.f32 0.505, %v1183_v39  ;;  %v2067_v53 = vmul.f32 0.495, %v5543_v63 }
 0x193   : > { %v2037_v30 = vadd.f32 %v2036_v38, %v1956_v8  ;;  %v1389_v52 = vmul.f32 %v6188_v24, %v6179_v17  ;;  %v2063_v41 = vmul.f32 0.505, %v1185_v26  ;;  %v2069_v48 = vmul.f32 0.495, %v2023_v1  ;;  %v6201_v39 = vld [vmem:[#allocation39_spill] sm:$0xff]  ;;  %v6203_v38 = vld [vmem:[#allocation40_spill] sm:$0xff] }
 0x194   : > { %v2064_v45 = vmul.f32 0.505, %v1186_v19  ;;  %v6190_v10 = vperm.slane %v6189_v6, 2  ;;  %v6192_v29 = vperm.slane %v6191_v61, 2  ;;  %v6194_v36 = vperm.slane %v6193_v54, 2 }
 0x195   : > { %v2038_v56 = vadd.f32 %v2037_v30, %v1962_v2  ;;  %v6196_v60 = vperm.slane %v6195_v59, 2  ;;  %v6198_v1 = vperm.slane %v6197_v15, 2  ;;  %v1485_v7 = vadd.f32 %v1389_v52, %v5393_v40  ;;  %v6207_v59 = vld [vmem:[#allocation56_spill] sm:$0xff] }
 0x196   : > { %v1395_v57 = vmul.f32 %v6190_v10, %v6179_v17  ;;  %v1401_v9 = vmul.f32 %v6192_v29, %v6179_v17  ;;  %v1407_v51 = vmul.f32 %v6194_v36, %v6179_v17  ;;  %v1569_v42 = vand.u32 2147483647, %v1473_v47 }
 0x197   : > { %v1413_v63 = vmul.f32 %v6196_v60, %v6179_v17  ;;  %v1419_v21 = vmul.f32 %v6198_v1, %v6179_v17  ;;  %v2070_v27 = vmul.f32 0.495, %v2038_v56  ;;  %v1575_v32 = vand.u32 2147483647, %v1479_v44 }
 0x198   : > { %v2072_v5 = vadd.f32 %v2066_v20, %v2060_v34  ;;  %v6200_v16 = vperm.slane %v6199_v4, 2  ;;  %v6202_v8 = vperm.slane %v6201_v39, 2  ;;  %v6204_v26 = vperm.slane %v6203_v38, 2  ;;  %v6209_v4 = vld [vmem:[#allocation43_spill] sm:$0xff]  ;;  %v3442_v39 = vld [vmem:[#allocation12 + $0x1d4] sm:$0xf0] }
 0x199   : > { %v2073_v2 = vadd.f32 %v2067_v53, %v2061_v11  ;;  %v2075_v30 = vadd.f32 %v2069_v48, %v2063_v41  ;;  %v2076_v35 = vadd.f32 %v2070_v27, %v2064_v45  ;;  %v1491_v24 = vadd.f32 %v1395_v57, %v5393_v40  ;;  %v6205_v11 = vld [vmem:[#allocation54_spill] sm:$0xff] }
 0x19a   : > { %v1425_v37 = vmul.f32 %v6200_v16, %v6179_v17  ;;  %v1431_v14 = vmul.f32 %v6202_v8, %v6179_v17  ;;  %v1437_v19 = vmul.f32 %v6204_v26, %v6179_v17  ;;  %v1082_v20 = vsel %vm1070_vm4, %v5598_v25, %v1076_v23  ;;  %v6206_v41 = vld [vmem:[#allocation50_spill] sm:$0xff]  ;;  %v3256_v8 = vld [vmem:[#allocation12 + $0x50] sm:$0xf] }
 0x19b   : > { %v1497_v52 = vadd.f32 %v1401_v9, %v5393_v40  ;;  %v1503_v47 = vadd.f32 %v1407_v51, %v5393_v40  ;;  %v5677_v44 = vadd.f32 %v1413_v63, %v5393_v40  ;;  %v5680_v34 = vadd.f32 %v1419_v21, %v5393_v40 }
 0x19c   : > { %v1581_v56 = vand.u32 2147483647, %v1485_v7  ;;  %v1873_v53 = vmul.f32 %v6205_v11, %v1569_v42  ;;  %v1879_v48 = vmul.f32 %v6206_v41, %v1575_v32  ;;  %v1083_v45 = vsel %vm1071_vm5, %v5610_v31, %v1077_v22  ;;  %v3346_v7 = vld [vmem:[#allocation12 + $0x114] sm:$0xf0]  ;;  %v3663_v42 = vld [vmem:[#allocation12 + $0x1cc] sm:$0xf] }
 0x19d   : > { %v5688_v25 = vadd.f32 %v1425_v37, %v5393_v40  ;;  %v5691_v23 = vadd.f32 %v1431_v14, %v5393_v40  ;;  %v5694_v6 = vadd.f32 %v1437_v19, %v5393_v40  ;;  %v1080_v10 = vsel %vm1068_vm6, %v5600_v33, %v1074_v12  ;;  %v6208_v12 = vld [vmem:[#allocation55_spill] sm:$0xff]  ;;  %v3617_v14 = vld [vmem:[#allocation12 + $0x58] sm:$0xf0] }
 0x19e   : > { %v2081_v57 = vadd.f32 %v2075_v30, %v1082_v20  ;;  %v2082_v61 = vadd.f32 %v2076_v35, %v1083_v45  ;;  %v1587_v29 = vand.u32 2147483647, %v1491_v24  ;;  %v2078_v9 = vadd.f32 %v2072_v5, %v1079_v46  ;;  %v3639_v46 = vld [vmem:[#allocation12 + $0x10c] sm:$0xf]  ;;  %v3650_v30 = vld [vmem:[#allocation12 + $0x160] sm:$0xf0] }
 0x19f   : > { %v2079_v54 = vadd.f32 %v2073_v2, %v1080_v10  ;;  %v1593_v36 = vand.u32 2147483647, %v1497_v52  ;;  %v1599_v31 = vand.u32 2147483647, %v1503_v47  ;;  %v1605_v22 = vand.u32 2147483647, %v5677_v44 }
 0x1a0   : > { %v1611_v51 = vand.u32 2147483647, %v5680_v34  ;;  %v1885_v60 = vmul.f32 %v6207_v59, %v1581_v56  ;;  %v2039_v63 = vadd.f32 %v1879_v48, %v1873_v53  ;;  %v1617_v15 = vand.u32 2147483647, %v5688_v25  ;;  %v3388_v2 = vld [vmem:[#allocation12 + $0x158] sm:$0xf] }
 0x1a1   : > { %v1623_v1 = vand.u32 2147483647, %v5691_v23  ;;  %v1629_v33 = vand.u32 2147483647, %v5694_v6  ;;  %v1891_v21 = vmul.f32 %v6208_v12, %v1587_v29  ;;  %v5706_v32 = vpack.c.bf16 %v2081_v57, %v2078_v9  ;;  %v3636_v35 = vld [vmem:[#allocation12 + $0xf4] sm:$0xf] }
 0x1a2   : > { %v2040_v27 = vadd.f32 %v2039_v63, %v1885_v60  ;;  %v5708_v5 = vpack.c.bf16 %v2082_v61, %v2079_v54  ;;  %v1897_v16 = vmul.f32 %v6209_v4, %v1593_v36  ;;  %v3349_v37 = vor.u32 %v3639_v46, %v3346_v7  ;;  %v6210_v24 = vld [vmem:[#allocation42_spill] sm:$0xff]  ;;  %v6212_v47 = vld [vmem:[#allocation33_spill] sm:$0xff]  ;;  %v3660_v11 = vld [vmem:[#allocation12 + $0x1b4] sm:$0xf] }
 0x1a3   : > { %v3445_v26 = vor.u32 %v3663_v42, %v3442_v39  ;;  %v3257_v19 = vor.u32 %v3617_v14, %v3256_v8  ;;  %2585 = vmatmul.bf16.vlgmr.msrb.gmra.mxu1 %v5706_v32  ;;  %v6211_v20 = vperm.slane %v6210_v24, 2  ;;  %v1903_v44 = vmul.f32 %v6212_v47, %v1599_v31  ;;  %v3334_v56 = vld [vmem:[#allocation12 + $0xfc] sm:$0xf0]  ;;  %2627 = vmatmul.bf16.vlgmr.msra.gmra.mxu0 %v5706_v32  ;;  %v3244_v10 = vld [vmem:[#allocation12 + $0x38] sm:$0xf] }
 0x1a4   : > { %v2041_v38 = vadd.f32 %v2040_v27, %v1891_v21  ;;  %2599 = vmatmul.bf16.vlgmr.msrb.gmra.mxu2 %v5708_v5  ;;  %2637 = vmatpush.bf16.msra.mxu1 %v3349_v37  ;;  %v3389_v34 = vor.u32 %v3650_v30, %v3388_v2  ;;  %v3430_v53 = vld [vmem:[#allocation12 + $0x1bc] sm:$0xf0]  ;;  %v3337_v48 = vor.u32 %v3636_v35, %v3334_v56  ;;  %v3614_v57 = vld [vmem:[#allocation12 + $0x40] sm:$0xf0]  ;;  %v3647_v31 = vld [vmem:[#allocation12 + $0x148] sm:$0xf0] }
 0x1a5   : > { %v1443_v52 = vmul.f32 %v6211_v20, %v6179_v17  ;;  %2651 = vmatpush.bf16.msra.mxu2 %v3445_v26  ;;  %2665 = vmatpush.bf16.msra.mxu3 %v3257_v19  ;;  %v3433_v45 = vor.u32 %v3660_v11, %v3430_v53  ;;  %v3376_v61 = vld [vmem:[#allocation12 + $0x140] sm:$0xf]  ;;  %v3245_v36 = vor.u32 %v3614_v57, %v3244_v10  ;;  %v3633_v59 = vld [vmem:[#allocation12 + $0xdc] sm:$0xf]  ;;  %v3322_v60 = vld [vmem:[#allocation12 + $0xe4] sm:$0xf0] }
 0x1a6   : > { %v2042_v41 = vadd.f32 %v2041_v38, %v1897_v16  ;;  %v6213_v29 = vld [vmem:[#allocation57_spill] sm:$0xff]  ;;  %2676 = vmatpush.bf16.msrb.mxu0 %v3389_v34  ;;  %v3377_v27 = vor.u32 %v3647_v31, %v3376_v61  ;;  %v3657_v46 = vld [vmem:[#allocation12 + $0x19c] sm:$0xf]  ;;  %v3418_v7 = vld [vmem:[#allocation12 + $0x1a4] sm:$0xf0]  ;;  %v6216_v4 = vperm.slane %v6170_v3, 2  ;;  %v3325_v14 = vor.u32 %v3633_v59, %v3322_v60 }
 0x1a7   : > { %v6214_v9 = vperm.slane %v6213_v29, 2  ;;  %v6215_v63 = vld [vmem:[#allocation49_spill] sm:$0xff]  ;;  %v5726_v37 = vadd.f32 %v1443_v52, %v5393_v40  ;;  %v3611_v38 = vld [vmem:[#allocation12 + $0x28] sm:$0xf0]  ;;  %v3364_v26 = vld [vmem:[#allocation12 + $0x128] sm:$0xf]  ;;  %v3421_v2 = vor.u32 %v3657_v46, %v3418_v7  ;;  %v1155_v46 = vpop.f32.mrf.mxu0 }
 0x1a8   : > { %v1909_v12 = vmul.f32 %v6215_v63, %v1605_v22  ;;  %v2043_v21 = vadd.f32 %v2042_v41, %v1903_v44  ;;  %v3232_v42 = vld [vmem:[#allocation12 + $0x20] sm:$0xf]  ;;  %v1455_v16 = vmul.f32 %v6216_v4, %v6179_v17  ;;  %2638 = vmatpush.bf16.msra.mxu1 %v3337_v48  ;;  %v3644_v19 = vld [vmem:[#allocation12 + $0x130] sm:$0xf0]  ;;  %v3630_v35 = vld [vmem:[#allocation12 + $0xc4] sm:$0xf] }
 0x1a9   : > { %v1449_v54 = vmul.f32 %v6214_v9, %v6179_v17  ;;  %v6217_v39 = vld [vmem:[#allocation45_spill] sm:$0xff]  ;;  %2652 = vmatpush.bf16.msra.mxu2 %v3433_v45  ;;  %2666 = vmatpush.bf16.msra.mxu3 %v3245_v36  ;;  %v3233_v30 = vor.u32 %v3611_v38, %v3232_v42  ;;  %v3310_v24 = vld [vmem:[#allocation12 + $0xcc] sm:$0xf0]  ;;  %v6218_v3 = vperm.slane %v4929_v58, 2  ;;  %v3220_v34 = vld [vmem:[#allocation12 + $0x8] sm:$0xf] }
 0x1aa   : > { %v1915_v8 = vmul.f32 %v6217_v39, %v1611_v51  ;;  %v2044_v22 = vadd.f32 %v2043_v21, %v1909_v12  ;;  %v3654_v20 = vld [vmem:[#allocation12 + $0x184] sm:$0xf]  ;;  %2677 = vmatpush.bf16.msrb.mxu0 %v3377_v27  ;;  %v3365_v51 = vor.u32 %v3644_v19, %v3364_v26  ;;  %v3406_v44 = vld [vmem:[#allocation12 + $0x18c] sm:$0xf0]  ;;  %v3608_v56 = vld [vmem:[#allocation12 + $0x10] sm:$0xf0]  ;;  %v1551_v61 = vadd.f32 %v1455_v16, %v5393_v40 }
 0x1ab   : > { %v1461_v52 = vmul.f32 %v6218_v3, %v6179_v17  ;;  %v1545_v47 = vadd.f32 %v1449_v54, %v5393_v40  ;;  %v6219_v11 = vld [vmem:[#allocation62_spill] sm:$0xff]  ;;  %v3352_v48 = vld [vmem:[#allocation12 + $0x110] sm:$0xf]  ;;  %v3641_v45 = vld [vmem:[#allocation12 + $0x118] sm:$0xf0]  ;;  %v6220_v57 = vperm.slane %v6172_v55, 2  ;;  %v3313_v54 = vor.u32 %v3630_v35, %v3310_v24 }
 0x1ac   : > { %v1921_v53 = vmul.f32 %v6219_v11, %v1617_v15  ;;  %v2045_v41 = vadd.f32 %v2044_v22, %v1915_v8  ;;  %v3496_v10 = vld [vmem:[#allocation12 + $0x230] sm:$0xf]  ;;  %2639 = vmatpush.bf16.msra.mxu1 %v3325_v14  ;;  %v3677_v36 = vld [vmem:[#allocation12 + $0x238] sm:$0xf0]  ;;  %v3693_v31 = vld [vmem:[#allocation14 + $0x74] sm:$0xf0]  ;;  %v1052_v15 = vpop.f32.mrf.mxu1  ;;  %v3409_v63 = vor.u32 %v3654_v20, %v3406_v44  ;;  %v3221_v55 = vor.u32 %v3608_v56, %v3220_v34 }
 0x1ad   : > { %v1467_v58 = vmul.f32 %v6220_v57, %v6179_v17  ;;  %v6221_v29 = vld [vmem:[#allocation63_spill] sm:$0xff]  ;;  %v1635_v59 = vand.u32 2147483647, %v5726_v37  ;;  %2653 = vmatpush.bf16.msra.mxu2 %v3421_v2  ;;  %2667 = vmatpush.bf16.msra.mxu3 %v3233_v30  ;;  %v1557_v12 = vadd.f32 %v1461_v52, %v5393_v40  ;;  %v1641_v21 = vand.u32 2147483647, %v1545_v47  ;;  %v6224_v38 = vld [vmem:[#allocation66_spill] sm:$0xff] }
 0x1ae   : > { %v1927_v9 = vmul.f32 %v6221_v29, %v1623_v1  ;;  %v3556_v25 = vld [vmem:[#allocation14 + $0x70] sm:$0xf]  ;;  %v2046_v60 = vadd.f32 %v2045_v41, %v1921_v53  ;;  %2678 = vmatpush.bf16.msrb.mxu0 %v3365_v51  ;;  %v3353_v23 = vor.u32 %v3641_v45, %v3352_v48  ;;  %v3497_v27 = vor.u32 %v3677_v36, %v3496_v10  ;;  %v3340_v1 = vld [vmem:[#allocation12 + $0xf8] sm:$0xf]  ;;  %v3638_v37 = vld [vmem:[#allocation12 + $0x100] sm:$0xf0] }
 0x1af   : > { %v6222_v7 = vld [vmem:[#allocation75_spill] sm:$0xff]  ;;  %v3557_v16 = vor.u32 %v3693_v31, %v3556_v25  ;;  %v3484_v39 = vld [vmem:[#allocation12 + $0x218] sm:$0xf]  ;;  %v3674_v8 = vld [vmem:[#allocation12 + $0x220] sm:$0xf0]  ;;  %v6223_v14 = vperm.slane %v5459_v62, 0  ;;  %v1563_v35 = vadd.f32 %v1467_v58, %v5393_v40  ;;  %v1163_v3 = vmul.f32 %v1155_v46, %v6179_v17 }
 0x1b0   : > { %v1933_v42 = vmul.f32 %v6222_v7, %v1629_v33  ;;  %v2047_v4 = vadd.f32 %v2046_v60, %v1927_v9  ;;  %v6225_v19 = vperm.slane %v5459_v62, 6  ;;  %2640 = vmatpush.bf16.msra.mxu1 %v3313_v54  ;;  %v3548_v2 = vld [vmem:[#allocation14 + $0x60] sm:$0xf]  ;;  %v3691_v30 = vld [vmem:[#allocation14 + $0x64] sm:$0xf0]  ;;  %v3341_v47 = vor.u32 %v3638_v37, %v3340_v1  ;;  %v6227_v34 = vld [vmem:[#allocation72_spill] sm:$0xff] }
 0x1b1   : > { %v969_v26 = vadd.f32 %v6224_v38, %v6223_v14  ;;  %v1647_v6 = vand.u32 2147483647, %v1551_v61  ;;  %v6226_v24 = vld [vmem:[#allocation74_spill] sm:$0xff]  ;;  %2654 = vmatpush.bf16.msra.mxu2 %v3409_v63  ;;  %2668 = vmatpush.bf16.msra.mxu3 %v3221_v55  ;;  %v1653_v52 = vand.u32 2147483647, %v1557_v12  ;;  %v3485_v51 = vor.u32 %v3674_v8, %v3484_v39 }
 0x1b2   : > { %v1053_v22 = vadd.f32 %v1052_v15, %v6225_v19  ;;  %v1939_v33 = vmul.f32 %v6226_v24, %v1635_v59  ;;  %v2048_v20 = vadd.f32 %v2047_v4, %v1933_v42  ;;  %2679 = vmatpush.bf16.msrb.mxu0 %v3353_v23  ;;  %v3328_v44 = vld [vmem:[#allocation12 + $0xe0] sm:$0xf]  ;;  %v1945_v56 = vmul.f32 %v6227_v34, %v1641_v21  ;;  %v3635_v41 = vld [vmem:[#allocation12 + $0xe8] sm:$0xf0]  ;;  %v3540_v57 = vld [vmem:[#allocation14 + $0x50] sm:$0xf] }
 0x1b3   : > { %v3549_v53 = vor.u32 %v3691_v30, %v3548_v2  ;;  %v3472_v48 = vld [vmem:[#allocation12 + $0x200] sm:$0xf]  ;;  %v3671_v45 = vld [vmem:[#allocation12 + $0x208] sm:$0xf0]  ;;  %2641 = vmatmul.bf16.vlgmr.msra.gmra.mxu1 %v5708_v5  ;;  %v1011_v17 = vadd.f32 %v5508_v18, %v767_v13  ;;  %v3689_v58 = vld [vmem:[#allocation14 + $0x54] sm:$0xf0]  ;;  %v1181_v61 = vmul.f32 %v5497_v49, %v5393_v40  ;;  %v1951_v9 = vmul.f32 %v6178_v0, %v1647_v6 }
 0x1b4   : > { %2689 = vmatpush.bf16.msrb.mxu1 %v3497_v27  ;;  %v2049_v11 = vadd.f32 %v2048_v20, %v1939_v33  ;;  %v1060_v10 = vmul.f32 %v1053_v22, %v969_v26  ;;  %v1659_v29 = vand.u32 2147483647, %v1563_v35  ;;  %v3329_v36 = vor.u32 %v3635_v41, %v3328_v44  ;;  %v3316_v31 = vld [vmem:[#allocation12 + $0xc8] sm:$0xf]  ;;  %v3632_v18 = vld [vmem:[#allocation12 + $0xd0] sm:$0xf0] }
 0x1b5   : > { %2800 = vmatpush.bf16.msrb.mxu2 %v3557_v16  ;;  %v3473_v25 = vor.u32 %v3671_v45, %v3472_v48  ;;  %v1187_v15 = vadd.f32 %v1181_v61, %v1163_v3  ;;  %v1957_v62 = vmul.f32 %v6184_v28, %v1653_v52  ;;  %v3541_v13 = vor.u32 %v3689_v58, %v3540_v57  ;;  %v3460_v60 = vld [vmem:[#allocation12 + $0x1e8] sm:$0xf]  ;;  %v3668_v63 = vld [vmem:[#allocation12 + $0x1f0] sm:$0xf0]  ;;  %v3532_v40 = vld [vmem:[#allocation14 + $0x40] sm:$0xf] }
 0x1b6   : > { %v2050_v54 = vadd.f32 %v2049_v11, %v1945_v56  ;;  %2680 = vmatpush.bf16.msrb.mxu0 %v3341_v47  ;;  %v1066_v55 = vadd.f32 %v1060_v10, %v1011_v17  ;;  %v3687_v49 = vld [vmem:[#allocation14 + $0x44] sm:$0xf0]  ;;  %v1963_v0 = vmul.f32 %v6186_v50, %v1659_v29  ;;  %v3317_v21 = vor.u32 %v3632_v18, %v3316_v31  ;;  %v3448_v46 = vld [vmem:[#allocation12 + $0x1d0] sm:$0xf]  ;;  %v3665_v7 = vld [vmem:[#allocation12 + $0x1d8] sm:$0xf0] }
 0x1b7   : > { %v3461_v23 = vor.u32 %v3668_v63, %v3460_v60  ;;  %v2065_v1 = vmul.f32 0.505, %v1187_v15  ;;  %v3533_v28 = vor.u32 %v3687_v49, %v3532_v40  ;;  %v3524_v4 = vld [vmem:[#allocation14 + $0x30] sm:$0xf]  ;;  %v3685_v16 = vld [vmem:[#allocation14 + $0x34] sm:$0xf0]  ;;  %v3449_v50 = vor.u32 %v3665_v7, %v3448_v46 }
 0x1b8   : > { %2690 = vmatpush.bf16.msrb.mxu1 %v3485_v51  ;;  %v2051_v59 = vadd.f32 %v2050_v54, %v1951_v9  ;;  %v1078_v42 = vmul.f32 0.01, %v1066_v55  ;;  %vm1072_vm7 = vcmp.gt.f32.partialorder %v1066_v55, 0.0  ;;  %v3692_v39 = vld [vmem:[#allocation14 + $0x74] sm:$0xf]  ;;  %v3525_v38 = vor.u32 %v3685_v16, %v3524_v4  ;;  %v5769_v54 = vld [vmem:[%s4467_s23] sm:$0xff] }
 0x1b9   : > { %2801 = vmatpush.bf16.msrb.mxu2 %v3549_v53  ;;  %v3558_v14 = vld [vmem:[#allocation14 + $0x78] sm:$0xf0]  ;;  %v3436_v26 = vld [vmem:[#allocation12 + $0x1b8] sm:$0xf]  ;;  %v3662_v19 = vld [vmem:[#allocation12 + $0x1c0] sm:$0xf0] }
 0x1ba   : > { %v2052_v12 = vadd.f32 %v2051_v59, %v1957_v62  ;;  %2681 = vmatpush.bf16.msrb.mxu0 %v3329_v36  ;;  %v1084_v22 = vsel %vm1072_vm7, %v1066_v55, %v1078_v42  ;;  %v3516_v2 = vld [vmem:[#allocation14 + $0x20] sm:$0xf]  ;;  %v3683_v30 = vld [vmem:[#allocation14 + $0x24] sm:$0xf0]  ;;  %v3561_v6 = vor.u32 %v3692_v39, %v3558_v14  ;;  %v3690_v24 = vld [vmem:[#allocation14 + $0x64] sm:$0xf]  ;;  %v3437_v33 = vor.u32 %v3662_v19, %v3436_v26 }
 0x1bb   : > { %v3550_v3 = vld [vmem:[#allocation14 + $0x68] sm:$0xf0]  ;;  %v3517_v52 = vor.u32 %v3683_v30, %v3516_v2  ;;  %v3424_v47 = vld [vmem:[#allocation12 + $0x1a0] sm:$0xf]  ;;  %v3508_v44 = vld [vmem:[#allocation14 + $0x10] sm:$0xf] }
 0x1bc   : > { %2691 = vmatpush.bf16.msrb.mxu1 %v3473_v25  ;;  %v2053_v27 = vadd.f32 %v2052_v12, %v1963_v0  ;;  %v3659_v51 = vld [vmem:[#allocation12 + $0x1a8] sm:$0xf0]  ;;  %v3681_v34 = vld [vmem:[#allocation14 + $0x14] sm:$0xf0]  ;;  %v3553_v56 = vor.u32 %v3690_v24, %v3550_v3  ;;  %v3688_v11 = vld [vmem:[#allocation14 + $0x54] sm:$0xf] }
 0x1bd   : > { %2802 = vmatpush.bf16.msrb.mxu2 %v3541_v13  ;;  %v3542_v53 = vld [vmem:[#allocation14 + $0x58] sm:$0xf0]  ;;  %v3509_v41 = vor.u32 %v3681_v34, %v3508_v44  ;;  %v3412_v48 = vld [vmem:[#allocation12 + $0x188] sm:$0xf]  ;;  %v3500_v45 = vld [vmem:[#allocation14] sm:$0xf] }
 0x1be   : > { %v2071_v37 = vmul.f32 0.495, %v2053_v27  ;;  %2682 = vmatpush.bf16.msrb.mxu0 %v3317_v21  ;;  %v3679_v17 = vld [vmem:[#allocation14 + $0x4] sm:$0xf0]  ;;  %v3545_v10 = vor.u32 %v3688_v11, %v3542_v53  ;;  %v3686_v58 = vld [vmem:[#allocation14 + $0x44] sm:$0xf] }
 0x1bf   : > { %v3534_v61 = vld [vmem:[#allocation14 + $0x48] sm:$0xf0]  ;;  %v3501_v29 = vor.u32 %v3679_v17, %v3500_v45  ;;  %v5772_v36 = vld [vmem:[%s4467_s23 + $0x8] sm:$0xff]  ;;  %v3526_v31 = vld [vmem:[#allocation14 + $0x38] sm:$0xf0]  ;;  %s6230_s23 = sld [smem:[#allocation90_spill]] }
 0x1c0   : > { %2692 = vmatpush.bf16.msrb.mxu1 %v3461_v23  ;;  %v2077_v8 = vadd.f32 %v2071_v37, %v2065_v1  ;;  %v3537_v9 = vor.u32 %v3686_v58, %v3534_v61  ;;  %v3684_v25 = vld [vmem:[#allocation14 + $0x34] sm:$0xf]  ;;  %v2703_v15 = vpack.c.bf16 %v5772_v36, %v5769_v54  ;;  %v3682_v59 = vld [vmem:[#allocation14 + $0x24] sm:$0xf]  ;;  %v3518_v13 = vld [vmem:[#allocation14 + $0x28] sm:$0xf0] }
 0x1c1   : > { %2803 = vmatpush.bf16.msrb.mxu2 %v3533_v28  ;;  %2683 = vmatmul.bf16.vlgmr.msrb.gmra.mxu0 %v5708_v5  ;;  %v3425_v5 = vor.u32 %v3659_v51, %v3424_v47  ;;  %v3529_v62 = vor.u32 %v3684_v25, %v3526_v31  ;;  %v3521_v18 = vor.u32 %v3682_v59, %v3518_v13  ;;  %v3680_v60 = vld [vmem:[#allocation14 + $0x14] sm:$0xf]  ;;  %v3510_v63 = vld [vmem:[#allocation14 + $0x18] sm:$0xf0]  ;;  %v3678_v40 = vld [vmem:[#allocation14 + $0x4] sm:$0xf] }
 0x1c2   : > { %v2083_v35 = vadd.f32 %v2077_v8, %v1084_v22  ;;  %v3513_v55 = vor.u32 %v3680_v60, %v3510_v63  ;;  %v3502_v49 = vld [vmem:[#allocation14 + $0x8] sm:$0xf0]  ;;  %v3701_v4 = vld [vmem:[%s6229_s10 + $0x38] sm:$0xff]  ;;  %v3700_v16 = vld [vmem:[%s6229_s10 + $0x30] sm:$0xff] }
 0x1c3   : > { %v3505_v0 = vor.u32 %v3678_v40, %v3502_v49  ;;  %v5780_v12 = vld [vmem:[%s6228_s12] sm:$0x7]  ;;  %2903 = vmatpush.bf16.msra.mxu0 %v3701_v4  ;;  %v3699_v37 = vld [vmem:[%s6229_s10 + $0x28] sm:$0xff]  ;;  %v3697_v26 = vld [vmem:[%s6229_s10 + $0x18] sm:$0xff]  ;;  %s645_s12 = scalar_lea.vmem [#allocation15], %s3161_s16 }
 0x1c4   : > { %2693 = vmatpush.bf16.msrb.mxu1 %v3449_v50  ;;  %v2088_v20 = vpack.c.bf16 %v2083_v35, %v5604_v43  ;;  %v3656_v43 = vld [vmem:[#allocation12 + $0x190] sm:$0xf0]  ;;  %v3696_v22 = vld [vmem:[%s6229_s10 + $0x10] sm:$0xff]  ;;  %v3694_v24 = vld [vmem:[%s6229_s10] sm:$0xff]  ;;  %s2950_s22 = sshll.u32 %s645_s12, 4  ;;  %s2951_s22 = int_to_ptr.vmem [resolvable:$true] %s2950_s22 }
 0x1c5   : > { %2804 = vmatpush.bf16.msrb.mxu2 %v3525_v38  ;;  %v3413_v57 = vor.u32 %v3656_v43, %v3412_v48  ;;  %v3698_v38 = vld [vmem:[%s6229_s10 + $0x20] sm:$0xff]  ;;  %v3695_v2 = vld [vmem:[%s6229_s10 + $0x8] sm:$0xff]  ;;  %s2949_s5 = scalar_lea.hbm %s6230_s23, %s3702_s13  ;;  %s4172_s13 = scalar_lea.hbm %s6230_s23, 32 }
 0x1c6   : > { %2613 = vmatmul.bf16.vlgmr.msrb.gmra.mxu3 %v2088_v20  ;;  %2655 = vmatmul.bf16.vlgmr.msra.gmra.mxu2 %v2088_v20  ;;  %s2952_s21 = sshll.u32 %s2949_s5, 4  ;;  %s2953_s21 = int_to_ptr.hbm [resolvable:$true] %s2952_s21 }
 0x1c7   : > { %2814 = vmatpush.bf16.msrb.mxu3 %v3561_v6  ;;  %2904 = vmatpush.bf16.msra.mxu0 %v3700_v16  ;;  %s4166_s19 = sshra.s32 %s2953_s21, 4  ;;  %s4167_s19 = int_to_ptr.hbm [resolvable:$true] %s4166_s19 }
 0x1c8   : > { %2694 = vmatpush.bf16.msrb.mxu1 %v3437_v33  ;;  %s4168_s15 = scalar_lea.hbm %s4167_s19, 16  ;;  %p4173_p10 = scmp.lt.s32.totalorder %s4167_s19, %s6230_s23 }
 0x1c9   : > { %2805 = vmatpush.bf16.msrb.mxu2 %v3517_v52  ;;  %p4169_p1 = scmp.ne.s32.totalorder %s4167_s19, %s4168_s15  ;;  %p4174_p12 = scmp.lt.s32.totalorder %s4172_s13, %s4168_s15 }
 0x1cb   : > { %2815 = vmatpush.bf16.msrb.mxu3 %v3553_v56  ;;  %2905 = vmatpush.bf16.msra.mxu0 %v3699_v37  ;;  %p4170_p8 = pnand %p4169_p1, %p4438_p0  ;;  %p4175_p13 = por %p4174_p12, %p4173_p10 }
 0x1cc   : > { %2695 = vmatpush.bf16.msrb.mxu1 %v3425_v5 }
 0x1cd   : > { %2806 = vmatpush.bf16.msrb.mxu2 %v3509_v41  ;;  %p4171_p9 = pneg %p4170_p8 }
 0x1cf   : > { %2816 = vmatpush.bf16.msrb.mxu3 %v3545_v10  ;;  %2906 = vmatpush.bf16.msra.mxu0 %v3698_v38  ;;  %p4176_p2 = pnand %p4175_p13, %p4171_p9 }
 0x1d0   : > { %2696 = vmatpush.bf16.msrb.mxu1 %v3413_v57 }
 0x1d1   : > { %2807 = vmatpush.bf16.msrb.mxu2 %v3501_v29 }
 0x1d3   : > { %2697 = vmatmul.bf16.vlgmr.msrb.gmra.mxu1 %v2088_v20  ;;  %2817 = vmatpush.bf16.msrb.mxu3 %v3537_v9  ;;  %v2188_v20 = vperm.slane %v5780_v12, 1  ;;  %v2189_v9 = vperm.slane %v5780_v12, 2 }
 0x1d4   : > { %2907 = vmatpush.bf16.msra.mxu0 %v3697_v26 }
 0x1d6   : > { %2669 = vmatmul.bf16.vlgmr.msra.gmra.mxu3 %v5706_v32  ;;  %2808 = vmatmul.bf16.vlgmr.msrb.gmra.mxu2 %v2703_v15  ;;  %v2187_v32 = vperm.slane %v5780_v12, 0 }
 0x1d7   : > { %2818 = vmatpush.bf16.msrb.mxu3 %v3529_v62 }
 0x1d8   : > { %2908 = vmatpush.bf16.msra.mxu0 %v3696_v22 }
 0x1db   : > { %2819 = vmatpush.bf16.msrb.mxu3 %v3521_v18 }
 0x1dc   : > { %2909 = vmatpush.bf16.msra.mxu0 %v3695_v2 }
 0x1df   : > { %2820 = vmatpush.bf16.msrb.mxu3 %v3513_v55 }
 0x1e0   : > { %2910 = vmatpush.bf16.msra.mxu0 %v3694_v24 }
 0x1e3   : > { %2821 = vmatpush.bf16.msrb.mxu3 %v3505_v0 }
 0x1e6   : > { %2822 = vmatmul.bf16.vlgmr.msrb.gmra.mxu3 %v2703_v15 }
 0x220   : > { %v2586_v21 = vpop.f32.mrf.mxu1  ;;  %v2628_v30 = vpop.f32.mrf.mxu0 }
 0x221   : > { %v2587_v23 = vadd.f32 %v2586_v21, %v2187_v32  ;;  %v2629_v3 = vadd.f32 %v2628_v30, %v2188_v20 }
 0x227   : > { %v2600_v27 = vpop.f32.mrf.mxu2 }
 0x228   : > { %v2601_v1 = vadd.f32 %v2600_v27, %v2587_v23  ;;  %v2588_v28 = vpop.f32.mrf.mxu1  ;;  %v2630_v52 = vpop.f32.mrf.mxu0 }
 0x229   : > { %v2589_v46 = vadd.f32 %v2588_v28, %v2187_v32  ;;  %v2631_v34 = vadd.f32 %v2630_v52, %v2188_v20 }
 0x22f   : > { %v2602_v7 = vpop.f32.mrf.mxu2 }
 0x230   : > { %v2603_v42 = vadd.f32 %v2602_v7, %v2589_v46  ;;  %v2642_v35 = vpop.f32.mrf.mxu1 }
 0x231   : > { %v2643_v51 = vadd.f32 %v2642_v35, %v2629_v3 }
 0x238   : > { %v2644_v44 = vpop.f32.mrf.mxu1 }
 0x239   : > { %v2645_v5 = vadd.f32 %v2644_v44, %v2631_v34 }
 0x23e   : > { %v2684_v61 = vpop.f32.mrf.mxu0 }
 0x246   : > { %v2686_v31 = vpop.f32.mrf.mxu0 }
 0x249   : > { %v2614_v39 = vpop.f32.mrf.mxu3  ;;  %v2656_v33 = vpop.f32.mrf.mxu2 }
 0x24a   : > { %v2615_v50 = vadd.f32 %v2614_v39, %v2601_v1  ;;  %v2657_v56 = vadd.f32 %v2656_v33, %v2643_v51 }
 0x250   : > { %v2698_v62 = vpop.f32.mrf.mxu1 }
 0x251   : > { %v2616_v8 = vpop.f32.mrf.mxu3  ;;  %v2658_v11 = vpop.f32.mrf.mxu2 }
 0x252   : > { %v2617_v14 = vadd.f32 %v2616_v8, %v2603_v42  ;;  %v2659_v41 = vadd.f32 %v2658_v11, %v2645_v5 }
 0x258   : > { %v2700_v21 = vpop.f32.mrf.mxu1 }
 0x259   : > { %v2670_v19 = vpop.f32.mrf.mxu3  ;;  %v2809_v29 = vpop.f32.mrf.mxu2 }
 0x25a   : > { %v2828_v25 = vadd.f32 %v2809_v29, %v2615_v50  ;;  %v2671_v15 = vadd.f32 %v2670_v19, %v2189_v9 }
 0x25c   : > { %v2685_v13 = vadd.f32 %v2684_v61, %v2671_v15 }
 0x25e   : > { %v2699_v18 = vadd.f32 %v2698_v62, %v2685_v13 }
 0x261   : > { %v2672_v6 = vpop.f32.mrf.mxu3  ;;  %v2811_v59 = vpop.f32.mrf.mxu2 }
 0x262   : > { %v2829_v60 = vadd.f32 %v2811_v59, %v2617_v14  ;;  %v2673_v40 = vadd.f32 %v2672_v6, %v2189_v9 }
 0x264   : > { %v2687_v32 = vadd.f32 %v2686_v31, %v2673_v40 }
 0x266   : > { %v2701_v28 = vadd.f32 %v2700_v21, %v2687_v32 }
 0x269   : > { %v2823_v47 = vpop.f32.mrf.mxu3 }
 0x26a   : > { %v2832_v53 = vadd.f32 %v2823_v47, %v2657_v56 }
 0x26c   : > { %3933 = vtanh.f32 %v2832_v53 }
 0x271   : > { %v2825_v48 = vpop.f32.mrf.mxu3 }
 0x272   : > { %v2833_v43 = vadd.f32 %v2825_v48, %v2659_v41  ;;  %v3934_v45 = vpop.eup %3933 }
 0x273   : > { %v2836_v10 = vmul.f32 %v3934_v45, %v5769_v54 }
 0x274   : > { %3935 = vtanh.f32 %v2833_v43 }
 0x275   : > { %3937 = vtanh.f32 %v2828_v25 }
 0x276   : > { %3939 = vtanh.f32 %v2829_v60 }
 0x27a   : > { %v3936_v17 = vpop.eup %3935 }
 0x27b   : > { %v2837_v57 = vmul.f32 %v3936_v17, %v5772_v36  ;;  %v3938_v55 = vpop.eup %3937 }
 0x27c   : > { %v2927_v12 = vsub.f32 1.0, %v3938_v55  ;;  %v2925_v27 = vmul.f32 %v3938_v55, %v5769_v54  ;;  %v3940_v42 = vpop.eup %3939 }
 0x27d   : > { %v2838_v58 = vpack.c.bf16 %v2837_v57, %v2836_v10  ;;  %v2928_v37 = vsub.f32 1.0, %v3940_v42  ;;  %v2926_v39 = vmul.f32 %v3940_v42, %v5772_v36 }
 0x27f   : > { %2911 = vmatmul.bf16.vlgmr.msra.gmra.mxu0 %v2838_v58 }
 0x2fc   : > { %v2912_v63 = vpop.f32.mrf.mxu0 }
 0x2fd   : > { %v2917_v49 = vadd.f32 %v2912_v63, %v2699_v18 }
 0x2ff   : > { %vm2919_vm8 = vcmp.gt.f32.partialorder %v2917_v49, 0.0  ;;  %v2921_v0 = vmul.f32 0.01, %v2917_v49 }
 0x301   : > { %v2923_v23 = vsel %vm2919_vm8, %v2917_v49, %v2921_v0 }
 0x302   : > { %v2929_v1 = vmul.f32 %v2927_v12, %v2923_v23 }
 0x304   : > { %v2931_v46 = vadd.f32 %v2929_v1, %v2925_v27  ;;  %v2914_v7 = vpop.f32.mrf.mxu0 }
 0x305   : > { %v2918_v4 = vadd.f32 %v2914_v7, %v2701_v28 }
 0x306   : > { %2933 = vst [vmem:[%s645_s12] sm:$0xff] %v2931_v46 }
 0x307   : > { %vm2920_vm9 = vcmp.gt.f32.partialorder %v2918_v4, 0.0  ;;  %v2922_v16 = vmul.f32 0.01, %v2918_v4 }
 0x309   : > { %v2924_v54 = vsel %vm2920_vm9, %v2918_v4, %v2922_v16 }
 0x30a   : > { %v2930_v50 = vmul.f32 %v2928_v37, %v2924_v54 }
 0x30c   : > { %v2932_v8 = vadd.f32 %v2930_v50, %v2926_v39 }
 0x30e   : > { %2934 = vst [vmem:[%s645_s12 + $0x8] sm:$0xff] %v2932_v8 }
 0x30f   : > { %4179 = shalt.err (!%p4176_p2)
}
 0x310   : > { %s4261_s4 = smov 128   ;;  %s4262_s5 = smov 8  }
 0x311   : > { %3733 = dma.vmem_to_hbm [thread:$0]  (%p4438_p0), %s2951_s22, 256, %s2953_s21, %s2936_s28, %s4261_s4, %s4261_s4, %s4262_s5  }
 0x312 PF: > { %s2967_s12 = sand.u32 1, %s4226_s25   ;;  %p3759_p4 = pnand %p3156_p6, %p4445_p5 }
 0x313   : > { %s2968_s16 = scalar_lea.sflag [#allocation5], %s2967_s12 }
 0x314   : > { %p3760_p7 = pneg %p3759_p4 }
 0x316   : > { %4221 = dma.done.wait (%p3760_p7), %s2968_s16, 256  }
 0x317   : > { %4223 = vsyncadd (%p3760_p7), %s2968_s16, 4294967040  ;;  %s32_s30 = sadd.s32 1, %s4246_s30   ;;  %s6231_s25 = smov %s4230_s26 }
 0x318   : > { %p29_p11 = scmp.ge.s32.totalorder %s32_s30, 4   ;;  %s6232_s26 = smov %s4234_s27 }
 0x319   : > { %s6233_s27 = smov %s4443_s3  ;;  %s6234_s28 = smov %s4242_s29 }
 0x31a   : > { %s6235_s29 = smov %s6237_s24  ;;  %31 = sbr.rel (!%p29_p11) target bundleno = 19 (0x13), region = 158 }
 0x31f   :  { %2974 = vsyncpa [#allocation4], 1 }
 0x320   :  { %2976 = vsyncpa [#allocation4 + $0x1], 1 }
 0x321   :  { %2977 = vsyncpa [#allocation7], 1 }
 0x322   :  { %2978 = vsyncpa [#allocation10], 1 }
 0x323   :  { %2979 = vsyncpa [#allocation13], 1 }
 0x324   :  { %2980 = vsyncpa [#allocation5], 1 }
 0x325   :  { %2982 = vsyncpa [#allocation5 + $0x1], 1 }

</bundles_post_ra>
